<compile_context>
chip_gen: v5e
topology: v5e:2x2
jax: 0.10.0
libtpu: 0.0.40
codegen_flags: <defaults>
</compile_context>

<pallas_src>
import jax
import jax.numpy as jnp
from jax.experimental import pallas as pl
from jax.experimental.pallas import tpu as pltpu

# ---------------- alphabet constants (ESM-1b alphabet) ----------------
ALPHABET_SIZE = 33
CLS_IDX, PAD_IDX, EOS_IDX, MASK_IDX = 0, 1, 2, 32
PREPEND_BOS, APPEND_EOS = True, True

# ---------------- small model hyper-parameters ----------------
NUM_LAYERS = 2
EMBED_DIM = 32
NUM_HEADS = 4
HEAD_DIM = EMBED_DIM // NUM_HEADS
HALF_DIM = HEAD_DIM // 2
FFN_DIM = 4 * EMBED_DIM
LN_EPS = 1e-12                 # ESM1bLayerNorm default eps
_INV_SQRT2 = 0.7071067811865476

VOCAB_PAD = 128                # lane-dense packed head output width
SUP_COL = ALPHABET_SIZE        # lane 33: supervised head
STR_COL = ALPHABET_SIZE + 1    # lanes 34..36: structure head

VMEM_LIMIT = 32 * 1024 * 1024


# ============================ in-kernel helpers ============================

def _ln(x, g, b):
    mu = jnp.mean(x, axis=-1, keepdims=True)
    xc = x - mu
    var = jnp.mean(xc * xc, axis=-1, keepdims=True)
    return xc * jax.lax.rsqrt(var + LN_EPS) * g + b


def _gelu(x):
    # exact erf GELU, same as esm.modules.gelu
    return 0.5 * x * (1.0 + jax.lax.erf(x * _INV_SQRT2))


# ============================ Pallas kernels ============================

def _layer_kernel(x_ref, bias_ref, cos_ref, sin_ref,
                  ln1g_ref, ln1b_ref, qkvw_ref, qkvb_ref, ow_ref, ob_ref,
                  ln2g_ref, ln2b_ref, f1w_ref, f1b_ref, f2w_ref, f2b_ref,
                  xo_ref, aw_ref, ctx_ref):
    """Full pre-LN transformer layer for BB batch elements (grid=(B//BB,))."""
    E, Dh, H, HALF = EMBED_DIM, HEAD_DIM, NUM_HEADS, HALF_DIM
    BB, T, _ = x_ref.shape

    # ---- fold BB*T rows into one M dimension for all dense layers ----
    x = x_ref[...].reshape(BB * T, E)
    xn = _ln(x, ln1g_ref[...], ln1b_ref[...])
    qkv = jnp.dot(xn, qkvw_ref[...],
                  preferred_element_type=jnp.float32) + qkvb_ref[...]   # (BB*T, 3E)
    q = qkv[:, :E]
    k = qkv[:, E:2 * E]
    v = qkv[:, 2 * E:]

    cos = cos_ref[...]                         # (T, HALF) identical for all heads
    sin = sin_ref[...]                         # (T, HALF)

    # TODO(synk): convert the (bb, h) Python unroll to lax.fori_loop at real H.
    for bb in range(BB):
        r0 = bb * T
        # hoisted out of the head loop (broadcast_in_dim is not CSE'd by JAX)
        bias_full = jnp.broadcast_to(bias_ref[bb], (T, T))
        for h in range(H):
            o = h * Dh
            q1 = q[r0:r0 + T, o:o + HALF]
            q2 = q[r0:r0 + T, o + HALF:o + Dh]
            k1 = k[r0:r0 + T, o:o + HALF]
            k2 = k[r0:r0 + T, o + HALF:o + Dh]
            # rotary:  q_rot = [q1*c - q2*s, q2*c + q1*s]  (and same for k).
            # The score splits over the two halves, so rotate_half never has to be
            # materialized: no roll / concat / MXU matmul, just VPU mul/add.
            qr1 = q1 * cos - q2 * sin
            qr2 = q2 * cos + q1 * sin
            kr1 = k1 * cos - k2 * sin
            kr2 = k2 * cos + k1 * sin
            s = (jax.lax.dot_general(qr1, kr1, (((1,), (1,)), ((), ())),
                                     preferred_element_type=jnp.float32)
                 + jax.lax.dot_general(qr2, kr2, (((1,), (1,)), ((), ())),
                                       preferred_element_type=jnp.float32)
                 + bias_full)                                            # (T, T)
            m = jnp.max(s, axis=-1, keepdims=True)
            p = jnp.exp(s - m)
            p = p * pl.reciprocal(jnp.sum(p, axis=-1, keepdims=True), approx=True)
            aw_ref[bb, h] = p                  # per-head attention weights
            ctx_ref[r0:r0 + T, o:o + Dh] = jnp.dot(
                p, v[r0:r0 + T, o:o + Dh], preferred_element_type=jnp.float32)

    # single fused out-projection over all heads / batch rows + residual
    attn = x + jnp.dot(ctx_ref[...], ow_ref[...],
                       preferred_element_type=jnp.float32) + ob_ref[...]

    # ---- feed-forward block ----
    xn2 = _ln(attn, ln2g_ref[...], ln2b_ref[...])
    hdn = _gelu(jnp.dot(xn2, f1w_ref[...],
                        preferred_element_type=jnp.float32) + f1b_ref[...])
    ffn = jnp.dot(hdn, f2w_ref[...],
                  preferred_element_type=jnp.float32) + f2b_ref[...]
    xo_ref[...] = (attn + ffn).reshape(BB, T, E)


def _heads_kernel(x_ref, flng_ref, flnb_ref, smallw_ref, smallb_ref,
                  ldw_ref, ldb_ref, llng_ref, llnb_ref, lpw_ref, lpb_ref,
                  out_ref):
    """final LN + RobertaLMHead + supervised/structure heads, ONE lane-dense output.

    Output lanes: [0, 33) LM logits, 33 supervised, [34, 37) structure, rest zero.
    """
    xn = _ln(x_ref[...], flng_ref[...], flnb_ref[...])
    small = jnp.dot(xn, smallw_ref[...],
                    preferred_element_type=jnp.float32) + smallb_ref[...]
    h = _gelu(jnp.dot(xn, ldw_ref[...],
                      preferred_element_type=jnp.float32) + ldb_ref[...])
    h = _ln(h, llng_ref[...], llnb_ref[...])
    out_ref[...] = (jnp.dot(h, lpw_ref[...],
                            preferred_element_type=jnp.float32)
                    + lpb_ref[...] + small)


def _contact_kernel(mrow_ref, mcol_ref, w_ref, b_ref, *aw_refs_and_out):
    """Symmetrize + APC + regression + sigmoid, with masking/transpose in-kernel.

    Inputs: per-batch row/col masks, regression weights/bias, one attention tensor
    per layer (never stacked/copied in HBM). Output: (1, T, T) contact map; the
    bos/eos rows/cols are zero-masked (so they do not affect the APC sums) and
    sliced off outside.
    """
    aw_refs = aw_refs_and_out[:-1]
    c_ref = aw_refs_and_out[-1]
    T = c_ref.shape[-1]

    m2 = mrow_ref[0] * mcol_ref[0]                       # (T,1)*(1,T) -> (T,T)
    logits = jnp.broadcast_to(b_ref[...], (T, T))

    # TODO(synk): at real L*H (=660) vectorize over heads / use a channel grid axis
    # with an accumulator instead of this Python unroll.
    c = 0
    for aw_ref in aw_refs:                               # one ref per layer
        for h in range(NUM_HEADS):
            a = aw_ref[0, h] * m2                        # masked (T,T)
            sym = a + a.T                                # in-kernel transpose
            a1 = jnp.sum(sym, axis=-1, keepdims=True)    # (T,1)
            a2 = jnp.sum(sym, axis=-2, keepdims=True)    # (1,T)
            a12 = jnp.sum(sym, keepdims=True)            # (1,1)
            norm = sym - (a1 * a2) * pl.reciprocal(a12, approx=True)
            logits = logits + norm * w_ref[c]
            c += 1
    c_ref[0] = jax.nn.sigmoid(logits)


# ============================ pallas_call wrappers ============================

def _pick_bb(B):
    """Batch elements per layer-kernel grid step: fold rows but keep >=2 parallel
    steps (one per v7x TensorCore) whenever B >= 2."""
    for bb in range(B // 2, 0, -1):
        if B % bb == 0:
            return bb
    return 1


def _pick_tm(M):
    """Row-tile for the heads kernel: as big as possible (<=256) while keeping
    >=2 grid steps when M allows it."""
    for tm in (256, 128, 64, 32, 16, 8):
        if M % tm == 0 and M // tm >= 2:
            return tm
    for tm in (256, 128, 64, 32, 16, 8):
        if M % tm == 0:
            return tm
    return M


def pallas_transformer_layer(x, key_bias, cos_h, sin_h, p):
    B, T, E = x.shape
    H = NUM_HEADS
    BB = _pick_bb(B)

    # TODO(synk): single-buffer these constant weight blocks
    # (pipeline_mode=pl.Buffered(1)) at real E to halve weight VMEM.
    def const(shape):
        return pl.BlockSpec(shape, lambda b, _s=shape: (0,) * len(_s))

    x_spec = pl.BlockSpec((BB, T, E), lambda b: (b, 0, 0))
    bias_spec = pl.BlockSpec((BB, 1, T), lambda b: (b, 0, 0))
    aw_spec = pl.BlockSpec((BB, H, T, T), lambda b: (b, 0, 0, 0))

    return pl.pallas_call(
        _layer_kernel,
        out_shape=(jax.ShapeDtypeStruct((B, T, E), jnp.float32),
                   jax.ShapeDtypeStruct((B, H, T, T), jnp.float32)),
        grid=(B // BB,),
        in_specs=[x_spec, bias_spec,
                  const((T, HALF_DIM)), const((T, HALF_DIM)),
                  const((1, E)), const((1, E)),
                  const((E, 3 * E)), const((1, 3 * E)),
                  const((E, E)), const((1, E)),
                  const((1, E)), const((1, E)),
                  const((E, FFN_DIM)), const((1, FFN_DIM)),
                  const((FFN_DIM, E)), const((1, E))],
        out_specs=(x_spec, aw_spec),
        scratch_shapes=[pltpu.VMEM((BB * T, E), jnp.float32)],
        compiler_params=pltpu.CompilerParams(
            dimension_semantics=("parallel",), vmem_limit_bytes=VMEM_LIMIT),
    )(x, key_bias, cos_h, sin_h,
      p["ln1_g"], p["ln1_b"], p["qkv_w"], p["qkv_b"], p["o_w"], p["o_b"],
      p["ln2_g"], p["ln2_b"], p["fc1_w"], p["fc1_b"], p["fc2_w"], p["fc2_b"])


def pallas_heads(x2, pp):
    M, E = x2.shape
    TM = _pick_tm(M)

    def row(shape):
        return pl.BlockSpec(shape, lambda i: (i, 0))

    def const(shape):
        return pl.BlockSpec(shape, lambda i: (0, 0))

    return pl.pallas_call(
        _heads_kernel,
        out_shape=jax.ShapeDtypeStruct((M, VOCAB_PAD), jnp.float32),
        grid=(M // TM,),
        in_specs=[row((TM, E)),
                  const((1, E)), const((1, E)),
                  const((E, VOCAB_PAD)), const((1, VOCAB_PAD)),
                  const((E, E)), const((1, E)),
                  const((1, E)), const((1, E)),
                  const((E, VOCAB_PAD)), const((1, VOCAB_PAD))],
        out_specs=row((TM, VOCAB_PAD)),
        compiler_params=pltpu.CompilerParams(
            dimension_semantics=("parallel",), vmem_limit_bytes=VMEM_LIMIT),
    )(x2, pp["final_ln_g"], pp["final_ln_b"], pp["small_w"], pp["small_b"],
      pp["lm_dense_w"], pp["lm_dense_b"], pp["lm_ln_g"], pp["lm_ln_b"],
      pp["lm_w_pad"], pp["lm_b_pad"])


def pallas_contact(attn_list, mrow, mcol, w, b):
    B, H, T, _ = attn_list[0].shape
    C = NUM_LAYERS * NUM_HEADS
    aw_spec = pl.BlockSpec((1, H, T, T), lambda i: (i, 0, 0, 0))
    return pl.pallas_call(
        _contact_kernel,
        out_shape=jax.ShapeDtypeStruct((B, T, T), jnp.float32),
        grid=(B,),
        in_specs=[pl.BlockSpec((1, T, 1), lambda i: (i, 0, 0)),
                  pl.BlockSpec((1, 1, T), lambda i: (i, 0, 0)),
                  pl.BlockSpec((C, 1, 1), lambda i: (0, 0, 0)),
                  pl.BlockSpec((1, 1), lambda i: (0, 0))]
                 + [aw_spec] * len(attn_list),
        out_specs=pl.BlockSpec((1, T, T), lambda i: (i, 0, 0)),
        compiler_params=pltpu.CompilerParams(
            dimension_semantics=("parallel",), vmem_limit_bytes=VMEM_LIMIT),
    )(mrow, mcol, w, b, *attn_list)


# ============================ model glue (plain JAX, jitted) ============================

def _rotary_tables(T):
    inv_freq = 1.0 / (10000.0 ** (jnp.arange(0, HEAD_DIM, 2, dtype=jnp.float32)
                                  / HEAD_DIM))
    t = jnp.arange(T, dtype=jnp.float32)
    freqs = t[:, None] * inv_freq[None, :]                 # (T, HALF_DIM)
    return jnp.cos(freqs), jnp.sin(freqs)


def _esm2_forward(params, tokens):
    B, T = tokens.shape
    E = EMBED_DIM
    pad_mask = tokens == PAD_IDX

    # embedding (embed_scale = 1) + token-dropout rescale   (gather stays in XLA)
    x = jnp.take(params["embed"], tokens, axis=0)          # (B, T, E)
    mask_tok = tokens == MASK_IDX
    x = jnp.where(mask_tok[..., None], 0.0, x)
    mask_ratio_train = 0.15 * 0.8
    src_lengths = jnp.sum(~pad_mask, axis=-1).astype(jnp.float32)
    mask_ratio_observed = jnp.sum(mask_tok, axis=-1).astype(jnp.float32) / src_lengths
    x = x * (1.0 - mask_ratio_train) / (1.0 - mask_ratio_observed)[:, None, None]
    x = x * (1.0 - pad_mask[..., None].astype(jnp.float32))

    # additive key-padding bias, applied unconditionally (0 where not padded)
    key_bias = jnp.where(pad_mask, -1e9, 0.0).astype(jnp.float32)[:, None, :]  # (B,1,T)

    cos_h, sin_h = _rotary_tables(T)

    # TODO(synk): at real sizes, avoid writing the (B,L,H,T,T) attention weights to
    # HBM (streaming attention + incremental contact-feature accumulation).
    attn_ws = []
    for lp in params["layers"]:
        x, aw = pallas_transformer_layer(x, key_bias, cos_h, sin_h, lp)
        attn_ws.append(aw)                                  # (B, H, T, T)

    # fused final-LN + heads; single lane-dense (., 128) output, sliced outside
    packed = pallas_heads(x.reshape(B * T, E), params).reshape(B, T, VOCAB_PAD)
    logits = packed[..., :ALPHABET_SIZE]
    x_supervised = packed[:, 0, SUP_COL:SUP_COL + 1]        # (B, 1)   CLS position
    x_structure = packed[..., STR_COL:STR_COL + 3]          # (B, T, 3)

    # contact head: pad/eos/bos masking, symmetrize + APC + regression all in-kernel
    mvec = ((tokens != PAD_IDX) & (tokens != EOS_IDX)).astype(jnp.float32)
    mvec = mvec.at[:, 0].set(0.0)                           # bos column/row removed
    mrow = mvec[:, :, None]                                 # (B, T, 1)
    mcol = mvec[:, None, :]                                 # (B, 1, T)
    contacts_full = pallas_contact(attn_ws, mrow, mcol,
                                   params["contact_w"], params["contact_b"])
    contacts = contacts_full[:, 1:-1, 1:-1]                 # drop bos / eos rows+cols

    return {
        "logits": logits,
        "logits_supervised": x_supervised,
        "logits_structure": x_structure,
        "representations": {},       # repr_layers=[] (default)
        "contacts": contacts,
    }


esm2_forward = jax.jit(_esm2_forward)


# ============================ parameter init & prep ============================

def init_params(key):
    keys = iter(jax.random.split(key, 256))

    def nrm(shape, scale=0.02):
        return scale * jax.random.normal(next(keys), shape, jnp.float32)

    params = {}
    emb = nrm((ALPHABET_SIZE, EMBED_DIM), scale=1.0)
    emb = emb.at[PAD_IDX].set(0.0)        # nn.Embedding padding_idx row is zero
    params["embed"] = emb

    layers = []
    for _ in range(NUM_LAYERS):
        layers.append(dict(
            ln1_g=jnp.ones((EMBED_DIM,), jnp.float32),
            ln1_b=jnp.zeros((EMBED_DIM,), jnp.float32),
            q_w=nrm((EMBED_DIM, EMBED_DIM)), q_b=nrm((EMBED_DIM,)),
            k_w=nrm((EMBED_DIM, EMBED_DIM)), k_b=nrm((EMBED_DIM,)),
            v_w=nrm((EMBED_DIM, EMBED_DIM)), v_b=nrm((EMBED_DIM,)),
            o_w=nrm((EMBED_DIM, EMBED_DIM)), o_b=nrm((EMBED_DIM,)),
            ln2_g=jnp.ones((EMBED_DIM,), jnp.float32),
            ln2_b=jnp.zeros((EMBED_DIM,), jnp.float32),
            fc1_w=nrm((EMBED_DIM, FFN_DIM)), fc1_b=nrm((FFN_DIM,)),
            fc2_w=nrm((FFN_DIM, EMBED_DIM)), fc2_b=nrm((EMBED_DIM,)),
        ))
    params["layers"] = layers

    params["final_ln_g"] = jnp.ones((EMBED_DIM,), jnp.float32)
    params["final_ln_b"] = jnp.zeros((EMBED_DIM,), jnp.float32)

    params["lm_dense_w"] = nrm((EMBED_DIM, EMBED_DIM))
    params["lm_dense_b"] = nrm((EMBED_DIM,))
    params["lm_ln_g"] = jnp.ones((EMBED_DIM,), jnp.float32)
    params["lm_ln_b"] = jnp.zeros((EMBED_DIM,), jnp.float32)
    params["lm_bias"] = jnp.zeros((ALPHABET_SIZE,), jnp.float32)

    params["sup_w"] = nrm((EMBED_DIM, 1));  params["sup_b"] = nrm((1,))
    params["str_w"] = nrm((EMBED_DIM, 3));  params["str_b"] = nrm((3,))
    params["contact_w"] = nrm((NUM_LAYERS * NUM_HEADS,))
    params["contact_b"] = nrm((1,))
    return params


def prepare_params(raw):
    """Fold/concat weights once: fused QKV (1/sqrt(d) folded into Q), lane-dense
    padded LM projection + supervised/structure head packed into lanes 33..36,
    2D row-vector biases."""
    scaling = HEAD_DIM ** -0.5
    E = EMBED_DIM

    def row(v):
        return v.reshape(1, -1)

    layers = []
    for p in raw["layers"]:
        layers.append(dict(
            ln1_g=row(p["ln1_g"]), ln1_b=row(p["ln1_b"]),
            qkv_w=jnp.concatenate([p["q_w"] * scaling, p["k_w"], p["v_w"]], axis=1),
            qkv_b=row(jnp.concatenate([p["q_b"] * scaling, p["k_b"], p["v_b"]])),
            o_w=p["o_w"], o_b=row(p["o_b"]),
            ln2_g=row(p["ln2_g"]), ln2_b=row(p["ln2_b"]),
            fc1_w=p["fc1_w"], fc1_b=row(p["fc1_b"]),
            fc2_w=p["fc2_w"], fc2_b=row(p["fc2_b"]),
        ))

    lm_w_pad = (jnp.zeros((E, VOCAB_PAD), jnp.float32)
                .at[:, :ALPHABET_SIZE].set(raw["embed"].T))
    lm_b_pad = (jnp.zeros((1, VOCAB_PAD), jnp.float32)
                .at[0, :ALPHABET_SIZE].set(raw["lm_bias"]))
    small_w = (jnp.zeros((E, VOCAB_PAD), jnp.float32)
               .at[:, SUP_COL:SUP_COL + 1].set(raw["sup_w"])
               .at[:, STR_COL:STR_COL + 3].set(raw["str_w"]))
    small_b = (jnp.zeros((1, VOCAB_PAD), jnp.float32)
               .at[0, SUP_COL].set(raw["sup_b"][0])
               .at[0, STR_COL:STR_COL + 3].set(raw["str_b"]))

    C = NUM_LAYERS * NUM_HEADS
    return dict(
        embed=raw["embed"],
        layers=layers,
        final_ln_g=row(raw["final_ln_g"]), final_ln_b=row(raw["final_ln_b"]),
        lm_dense_w=raw["lm_dense_w"], lm_dense_b=row(raw["lm_dense_b"]),
        lm_ln_g=row(raw["lm_ln_g"]), lm_ln_b=row(raw["lm_ln_b"]),
        lm_w_pad=lm_w_pad, lm_b_pad=lm_b_pad,
        small_w=small_w, small_b=small_b,
        contact_w=raw["contact_w"].reshape(C, 1, 1),
        contact_b=raw["contact_b"].reshape(1, 1),
    )


# ============================ main ============================

if __name__ == "__main__":
    key = jax.random.PRNGKey(0)
    pkey, tkey = jax.random.split(key)
    raw_params = init_params(pkey)
    params = prepare_params(raw_params)

    B, T = 2, 8
    tokens = jax.random.randint(tkey, (B, T), 4, 24, dtype=jnp.int32)
    tokens = tokens.at[:, 0].set(CLS_IDX)        # prepend_bos
    tokens = tokens.at[0, T - 1].set(EOS_IDX)    # append_eos
    tokens = tokens.at[0, 3].set(MASK_IDX)       # one masked token
    tokens = tokens.at[1, 5].set(EOS_IDX)
    tokens = tokens.at[1, 6:].set(PAD_IDX)       # trailing padding

    out = esm2_forward(params, tokens)
    jax.tree_util.tree_map(jax.block_until_ready, out)

    # basic shape sanity
    assert out["logits"].shape == (B, T, ALPHABET_SIZE)
    assert out["logits_supervised"].shape == (B, 1)
    assert out["logits_structure"].shape == (B, T, 3)
    assert out["contacts"].shape == (B, T - 2, T - 2)
    assert bool(jnp.all(jnp.isfinite(out["logits"])))
    print("KERNEL_OK")
</pallas_src>

<mosaic_0001>
module attributes {stable_mosaic.version = 11 : i64} {
  func.func @_layer_kernel(%arg0: i32, %arg1: memref<1x8x32xf32, #tpu.memory_space<vmem>>, %arg2: memref<1x1x8xf32, #tpu.memory_space<vmem>>, %arg3: memref<8x4xf32, #tpu.memory_space<vmem>>, %arg4: memref<8x4xf32, #tpu.memory_space<vmem>>, %arg5: memref<1x32xf32, #tpu.memory_space<vmem>>, %arg6: memref<1x32xf32, #tpu.memory_space<vmem>>, %arg7: memref<32x96xf32, #tpu.memory_space<vmem>>, %arg8: memref<1x96xf32, #tpu.memory_space<vmem>>, %arg9: memref<32x32xf32, #tpu.memory_space<vmem>>, %arg10: memref<1x32xf32, #tpu.memory_space<vmem>>, %arg11: memref<1x32xf32, #tpu.memory_space<vmem>>, %arg12: memref<1x32xf32, #tpu.memory_space<vmem>>, %arg13: memref<32x128xf32, #tpu.memory_space<vmem>>, %arg14: memref<1x128xf32, #tpu.memory_space<vmem>>, %arg15: memref<128x32xf32, #tpu.memory_space<vmem>>, %arg16: memref<1x32xf32, #tpu.memory_space<vmem>>, %arg17: memref<1x8x32xf32, #tpu.memory_space<vmem>>, %arg18: memref<1x4x8x8xf32, #tpu.memory_space<vmem>>, %arg19: memref<8x32xf32, #tpu.memory_space<vmem>>) attributes {dimension_semantics = [#tpu.dimension_semantics<parallel>], iteration_bounds = array<i64: 2>, scalar_prefetch = 0 : i64, scratch_operands = 1 : i64, tpu.core_type = #tpu.core_type<tc>, window_params = [{transform_indices = @transform_0, window_bounds = array<i64: 1, 8, 32>}, {transform_indices = @transform_1, window_bounds = array<i64: 1, 1, 8>}, {pipeline_mode = #tpu.pipeline_mode<synchronous>, transform_indices = @transform_2, window_bounds = array<i64: 8, 4>}, {pipeline_mode = #tpu.pipeline_mode<synchronous>, transform_indices = @transform_3, window_bounds = array<i64: 8, 4>}, {pipeline_mode = #tpu.pipeline_mode<synchronous>, transform_indices = @transform_4, window_bounds = array<i64: 1, 32>}, {pipeline_mode = #tpu.pipeline_mode<synchronous>, transform_indices = @transform_5, window_bounds = array<i64: 1, 32>}, {pipeline_mode = #tpu.pipeline_mode<synchronous>, transform_indices = @transform_6, window_bounds = array<i64: 32, 96>}, {pipeline_mode = #tpu.pipeline_mode<synchronous>, transform_indices = @transform_7, window_bounds = array<i64: 1, 96>}, {pipeline_mode = #tpu.pipeline_mode<synchronous>, transform_indices = @transform_8, window_bounds = array<i64: 32, 32>}, {pipeline_mode = #tpu.pipeline_mode<synchronous>, transform_indices = @transform_9, window_bounds = array<i64: 1, 32>}, {pipeline_mode = #tpu.pipeline_mode<synchronous>, transform_indices = @transform_10, window_bounds = array<i64: 1, 32>}, {pipeline_mode = #tpu.pipeline_mode<synchronous>, transform_indices = @transform_11, window_bounds = array<i64: 1, 32>}, {pipeline_mode = #tpu.pipeline_mode<synchronous>, transform_indices = @transform_12, window_bounds = array<i64: 32, 128>}, {pipeline_mode = #tpu.pipeline_mode<synchronous>, transform_indices = @transform_13, window_bounds = array<i64: 1, 128>}, {pipeline_mode = #tpu.pipeline_mode<synchronous>, transform_indices = @transform_14, window_bounds = array<i64: 128, 32>}, {pipeline_mode = #tpu.pipeline_mode<synchronous>, transform_indices = @transform_15, window_bounds = array<i64: 1, 32>}, {transform_indices = @transform_16, window_bounds = array<i64: 1, 8, 32>}, {transform_indices = @transform_17, window_bounds = array<i64: 1, 4, 8, 8>}]} {
    %c0 = arith.constant 0 : index
    %c0_0 = arith.constant 0 : index
    %c0_1 = arith.constant 0 : index
    %0 = vector.load %arg1[%c0, %c0_0, %c0_1] : memref<1x8x32xf32, #tpu.memory_space<vmem>>, vector<1x8x32xf32>
    %1 = vector.shape_cast %0 : vector<1x8x32xf32> to vector<8x32xf32>
    %c0_2 = arith.constant 0 : index
    %c0_3 = arith.constant 0 : index
    %2 = vector.load %arg5[%c0_2, %c0_3] : memref<1x32xf32, #tpu.memory_space<vmem>>, vector<1x32xf32>
    %c0_4 = arith.constant 0 : index
    %c0_5 = arith.constant 0 : index
    %3 = vector.load %arg6[%c0_4, %c0_5] : memref<1x32xf32, #tpu.memory_space<vmem>>, vector<1x32xf32>
    %cst = arith.constant dense<0.000000e+00> : vector<8xf32>
    %4 = vector.multi_reduction <add>, %1, %cst [1] : vector<8x32xf32> to vector<8xf32>
    %5 = vector.shape_cast %4 : vector<8xf32> to vector<8x1xf32>
    %cst_6 = arith.constant 3.200000e+01 : f32
    %6 = vector.broadcast %cst_6 : f32 to vector<8x1xf32>
    %7 = arith.divf %5, %6 : vector<8x1xf32>
    %8 = vector.broadcast %7 : vector<8x1xf32> to vector<8x32xf32>
    %9 = arith.subf %1, %8 : vector<8x32xf32>
    %10 = arith.mulf %9, %9 : vector<8x32xf32>
    %cst_7 = arith.constant dense<0.000000e+00> : vector<8xf32>
    %11 = vector.multi_reduction <add>, %10, %cst_7 [1] : vector<8x32xf32> to vector<8xf32>
    %12 = vector.shape_cast %11 : vector<8xf32> to vector<8x1xf32>
    %cst_8 = arith.constant 3.200000e+01 : f32
    %13 = vector.broadcast %cst_8 : f32 to vector<8x1xf32>
    %14 = arith.divf %12, %13 : vector<8x1xf32>
    %cst_9 = arith.constant 9.99999996E-13 : f32
    %15 = vector.broadcast %cst_9 : f32 to vector<8x1xf32>
    %16 = arith.addf %14, %15 : vector<8x1xf32>
    %17 = math.rsqrt %16 : vector<8x1xf32>
    %18 = vector.broadcast %17 : vector<8x1xf32> to vector<8x32xf32>
    %19 = arith.mulf %9, %18 : vector<8x32xf32>
    %20 = vector.broadcast %2 : vector<1x32xf32> to vector<8x32xf32>
    %21 = arith.mulf %19, %20 : vector<8x32xf32>
    %22 = vector.broadcast %3 : vector<1x32xf32> to vector<8x32xf32>
    %23 = arith.addf %21, %22 : vector<8x32xf32>
    %c0_10 = arith.constant 0 : index
    %c0_11 = arith.constant 0 : index
    %24 = vector.load %arg7[%c0_10, %c0_11] : memref<32x96xf32, #tpu.memory_space<vmem>>, vector<32x96xf32>
    %cst_12 = arith.constant dense<0.000000e+00> : vector<8x96xf32>
    %25 = tpu.matmul %23, %24, %cst_12 {dimension_numbers = #tpu.dot_dimension_numbers<[1], [0], [0], [1], [0, 0, 1, 1], [], []>} : vector<8x32xf32>, vector<32x96xf32>, vector<8x96xf32> -> vector<8x96xf32>
    %c0_13 = arith.constant 0 : index
    %c0_14 = arith.constant 0 : index
    %26 = vector.load %arg8[%c0_13, %c0_14] : memref<1x96xf32, #tpu.memory_space<vmem>>, vector<1x96xf32>
    %27 = vector.broadcast %26 : vector<1x96xf32> to vector<8x96xf32>
    %28 = arith.addf %25, %27 : vector<8x96xf32>
    %29 = vector.extract_strided_slice %28 {offsets = [0, 0], sizes = [8, 32], strides = [1, 1]} : vector<8x96xf32> to vector<8x32xf32>
    %30 = vector.extract_strided_slice %28 {offsets = [0, 32], sizes = [8, 32], strides = [1, 1]} : vector<8x96xf32> to vector<8x32xf32>
    %31 = vector.extract_strided_slice %28 {offsets = [0, 64], sizes = [8, 32], strides = [1, 1]} : vector<8x96xf32> to vector<8x32xf32>
    %c0_15 = arith.constant 0 : index
    %c0_16 = arith.constant 0 : index
    %32 = vector.load %arg3[%c0_15, %c0_16] : memref<8x4xf32, #tpu.memory_space<vmem>>, vector<8x4xf32>
    %c0_17 = arith.constant 0 : index
    %c0_18 = arith.constant 0 : index
    %33 = vector.load %arg4[%c0_17, %c0_18] : memref<8x4xf32, #tpu.memory_space<vmem>>, vector<8x4xf32>
    %c0_19 = arith.constant 0 : index
    %c0_20 = arith.constant 0 : index
    %c0_21 = arith.constant 0 : index
    %34 = vector.load %arg2[%c0_19, %c0_20, %c0_21] : memref<1x1x8xf32, #tpu.memory_space<vmem>>, vector<1x1x8xf32>
    %35 = vector.shape_cast %34 : vector<1x1x8xf32> to vector<1x8xf32>
    %36 = vector.shape_cast %35 : vector<1x8xf32> to vector<1x8xf32>
    %37 = vector.broadcast %36 : vector<1x8xf32> to vector<8x8xf32>
    %38 = vector.extract_strided_slice %29 {offsets = [0, 0], sizes = [8, 4], strides = [1, 1]} : vector<8x32xf32> to vector<8x4xf32>
    %39 = vector.extract_strided_slice %29 {offsets = [0, 4], sizes = [8, 4], strides = [1, 1]} : vector<8x32xf32> to vector<8x4xf32>
    %40 = vector.extract_strided_slice %30 {offsets = [0, 0], sizes = [8, 4], strides = [1, 1]} : vector<8x32xf32> to vector<8x4xf32>
    %41 = vector.extract_strided_slice %30 {offsets = [0, 4], sizes = [8, 4], strides = [1, 1]} : vector<8x32xf32> to vector<8x4xf32>
    %42 = arith.mulf %38, %32 : vector<8x4xf32>
    %43 = arith.mulf %39, %33 : vector<8x4xf32>
    %44 = arith.subf %42, %43 : vector<8x4xf32>
    %45 = arith.mulf %39, %32 : vector<8x4xf32>
    %46 = arith.mulf %38, %33 : vector<8x4xf32>
    %47 = arith.addf %45, %46 : vector<8x4xf32>
    %48 = arith.mulf %40, %32 : vector<8x4xf32>
    %49 = arith.mulf %41, %33 : vector<8x4xf32>
    %50 = arith.subf %48, %49 : vector<8x4xf32>
    %51 = arith.mulf %41, %32 : vector<8x4xf32>
    %52 = arith.mulf %40, %33 : vector<8x4xf32>
    %53 = arith.addf %51, %52 : vector<8x4xf32>
    %cst_22 = arith.constant dense<0.000000e+00> : vector<8x8xf32>
    %54 = tpu.matmul %44, %50, %cst_22 {dimension_numbers = #tpu.dot_dimension_numbers<[1], [1], [0], [0], [0, 0, 1, 0], [], []>} : vector<8x4xf32>, vector<8x4xf32>, vector<8x8xf32> -> vector<8x8xf32>
    %cst_23 = arith.constant dense<0.000000e+00> : vector<8x8xf32>
    %55 = tpu.matmul %47, %53, %cst_23 {dimension_numbers = #tpu.dot_dimension_numbers<[1], [1], [0], [0], [0, 0, 1, 0], [], []>} : vector<8x4xf32>, vector<8x4xf32>, vector<8x8xf32> -> vector<8x8xf32>
    %56 = arith.addf %54, %55 : vector<8x8xf32>
    %57 = arith.addf %56, %37 : vector<8x8xf32>
    %cst_24 = arith.constant dense<0xFF800000> : vector<8xf32>
    %58 = vector.multi_reduction <maximumf>, %57, %cst_24 [1] : vector<8x8xf32> to vector<8xf32>
    %59 = vector.shape_cast %58 : vector<8xf32> to vector<8x1xf32>
    %60 = vector.broadcast %59 : vector<8x1xf32> to vector<8x8xf32>
    %61 = arith.subf %57, %60 : vector<8x8xf32>
    %62 = math.exp %61 : vector<8x8xf32>
    %cst_25 = arith.constant dense<0.000000e+00> : vector<8xf32>
    %63 = vector.multi_reduction <add>, %62, %cst_25 [1] : vector<8x8xf32> to vector<8xf32>
    %64 = vector.shape_cast %63 : vector<8xf32> to vector<8x1xf32>
    %65 = tpu.reciprocal %64 {approx = true} : vector<8x1xf32> -> vector<8x1xf32>
    %66 = vector.broadcast %65 : vector<8x1xf32> to vector<8x8xf32>
    %67 = arith.mulf %62, %66 : vector<8x8xf32>
    %c0_26 = arith.constant 0 : index
    %c0_27 = arith.constant 0 : index
    %c0_28 = arith.constant 0 : index
    %c0_29 = arith.constant 0 : index
    %68 = vector.load %arg18[%c0_26, %c0_27, %c0_28, %c0_29] : memref<1x4x8x8xf32, #tpu.memory_space<vmem>>, vector<1x1x8x8xf32>
    %69 = vector.shape_cast %68 : vector<1x1x8x8xf32> to vector<8x8xf32>
    %70 = vector.shape_cast %67 : vector<8x8xf32> to vector<1x1x8x8xf32>
    tpu.vector_store %arg18[%c0_26, %c0_27, %c0_28, %c0_29], %70 {strides = array<i32>} : memref<1x4x8x8xf32, #tpu.memory_space<vmem>>, vector<1x1x8x8xf32>,
    %71 = vector.extract_strided_slice %31 {offsets = [0, 0], sizes = [8, 8], strides = [1, 1]} : vector<8x32xf32> to vector<8x8xf32>
    %cst_30 = arith.constant dense<0.000000e+00> : vector<8x8xf32>
    %72 = tpu.matmul %67, %71, %cst_30 {dimension_numbers = #tpu.dot_dimension_numbers<[1], [0], [0], [1], [0, 0, 1, 1], [], []>} : vector<8x8xf32>, vector<8x8xf32>, vector<8x8xf32> -> vector<8x8xf32>
    %c0_31 = arith.constant 0 : index
    %c0_32 = arith.constant 0 : index
    %73 = vector.load %arg19[%c0_31, %c0_32] : memref<8x32xf32, #tpu.memory_space<vmem>>, vector<8x8xf32>
    tpu.vector_store %arg19[%c0_31, %c0_32], %72 {strides = array<i32>} : memref<8x32xf32, #tpu.memory_space<vmem>>, vector<8x8xf32>,
    %74 = vector.extract_strided_slice %29 {offsets = [0, 8], sizes = [8, 4], strides = [1, 1]} : vector<8x32xf32> to vector<8x4xf32>
    %75 = vector.extract_strided_slice %29 {offsets = [0, 12], sizes = [8, 4], strides = [1, 1]} : vector<8x32xf32> to vector<8x4xf32>
    %76 = vector.extract_strided_slice %30 {offsets = [0, 8], sizes = [8, 4], strides = [1, 1]} : vector<8x32xf32> to vector<8x4xf32>
    %77 = vector.extract_strided_slice %30 {offsets = [0, 12], sizes = [8, 4], strides = [1, 1]} : vector<8x32xf32> to vector<8x4xf32>
    %78 = arith.mulf %74, %32 : vector<8x4xf32>
    %79 = arith.mulf %75, %33 : vector<8x4xf32>
    %80 = arith.subf %78, %79 : vector<8x4xf32>
    %81 = arith.mulf %75, %32 : vector<8x4xf32>
    %82 = arith.mulf %74, %33 : vector<8x4xf32>
    %83 = arith.addf %81, %82 : vector<8x4xf32>
    %84 = arith.mulf %76, %32 : vector<8x4xf32>
    %85 = arith.mulf %77, %33 : vector<8x4xf32>
    %86 = arith.subf %84, %85 : vector<8x4xf32>
    %87 = arith.mulf %77, %32 : vector<8x4xf32>
    %88 = arith.mulf %76, %33 : vector<8x4xf32>
    %89 = arith.addf %87, %88 : vector<8x4xf32>
    %cst_33 = arith.constant dense<0.000000e+00> : vector<8x8xf32>
    %90 = tpu.matmul %80, %86, %cst_33 {dimension_numbers = #tpu.dot_dimension_numbers<[1], [1], [0], [0], [0, 0, 1, 0], [], []>} : vector<8x4xf32>, vector<8x4xf32>, vector<8x8xf32> -> vector<8x8xf32>
    %cst_34 = arith.constant dense<0.000000e+00> : vector<8x8xf32>
    %91 = tpu.matmul %83, %89, %cst_34 {dimension_numbers = #tpu.dot_dimension_numbers<[1], [1], [0], [0], [0, 0, 1, 0], [], []>} : vector<8x4xf32>, vector<8x4xf32>, vector<8x8xf32> -> vector<8x8xf32>
    %92 = arith.addf %90, %91 : vector<8x8xf32>
    %93 = arith.addf %92, %37 : vector<8x8xf32>
    %cst_35 = arith.constant dense<0xFF800000> : vector<8xf32>
    %94 = vector.multi_reduction <maximumf>, %93, %cst_35 [1] : vector<8x8xf32> to vector<8xf32>
    %95 = vector.shape_cast %94 : vector<8xf32> to vector<8x1xf32>
    %96 = vector.broadcast %95 : vector<8x1xf32> to vector<8x8xf32>
    %97 = arith.subf %93, %96 : vector<8x8xf32>
    %98 = math.exp %97 : vector<8x8xf32>
    %cst_36 = arith.constant dense<0.000000e+00> : vector<8xf32>
    %99 = vector.multi_reduction <add>, %98, %cst_36 [1] : vector<8x8xf32> to vector<8xf32>
    %100 = vector.shape_cast %99 : vector<8xf32> to vector<8x1xf32>
    %101 = tpu.reciprocal %100 {approx = true} : vector<8x1xf32> -> vector<8x1xf32>
    %102 = vector.broadcast %101 : vector<8x1xf32> to vector<8x8xf32>
    %103 = arith.mulf %98, %102 : vector<8x8xf32>
    %c0_37 = arith.constant 0 : index
    %c1 = arith.constant 1 : index
    %c0_38 = arith.constant 0 : index
    %c0_39 = arith.constant 0 : index
    %104 = vector.load %arg18[%c0_37, %c1, %c0_38, %c0_39] : memref<1x4x8x8xf32, #tpu.memory_space<vmem>>, vector<1x1x8x8xf32>
    %105 = vector.shape_cast %104 : vector<1x1x8x8xf32> to vector<8x8xf32>
    %106 = vector.shape_cast %103 : vector<8x8xf32> to vector<1x1x8x8xf32>
    tpu.vector_store %arg18[%c0_37, %c1, %c0_38, %c0_39], %106 {strides = array<i32>} : memref<1x4x8x8xf32, #tpu.memory_space<vmem>>, vector<1x1x8x8xf32>,
    %107 = vector.extract_strided_slice %31 {offsets = [0, 8], sizes = [8, 8], strides = [1, 1]} : vector<8x32xf32> to vector<8x8xf32>
    %cst_40 = arith.constant dense<0.000000e+00> : vector<8x8xf32>
    %108 = tpu.matmul %103, %107, %cst_40 {dimension_numbers = #tpu.dot_dimension_numbers<[1], [0], [0], [1], [0, 0, 1, 1], [], []>} : vector<8x8xf32>, vector<8x8xf32>, vector<8x8xf32> -> vector<8x8xf32>
    %c0_41 = arith.constant 0 : index
    %c8 = arith.constant 8 : index
    %109 = vector.load %arg19[%c0_41, %c8] : memref<8x32xf32, #tpu.memory_space<vmem>>, vector<8x8xf32>
    tpu.vector_store %arg19[%c0_41, %c8], %108 {strides = array<i32>} : memref<8x32xf32, #tpu.memory_space<vmem>>, vector<8x8xf32>,
    %110 = vector.extract_strided_slice %29 {offsets = [0, 16], sizes = [8, 4], strides = [1, 1]} : vector<8x32xf32> to vector<8x4xf32>
    %111 = vector.extract_strided_slice %29 {offsets = [0, 20], sizes = [8, 4], strides = [1, 1]} : vector<8x32xf32> to vector<8x4xf32>
    %112 = vector.extract_strided_slice %30 {offsets = [0, 16], sizes = [8, 4], strides = [1, 1]} : vector<8x32xf32> to vector<8x4xf32>
    %113 = vector.extract_strided_slice %30 {offsets = [0, 20], sizes = [8, 4], strides = [1, 1]} : vector<8x32xf32> to vector<8x4xf32>
    %114 = arith.mulf %110, %32 : vector<8x4xf32>
    %115 = arith.mulf %111, %33 : vector<8x4xf32>
    %116 = arith.subf %114, %115 : vector<8x4xf32>
    %117 = arith.mulf %111, %32 : vector<8x4xf32>
    %118 = arith.mulf %110, %33 : vector<8x4xf32>
    %119 = arith.addf %117, %118 : vector<8x4xf32>
    %120 = arith.mulf %112, %32 : vector<8x4xf32>
    %121 = arith.mulf %113, %33 : vector<8x4xf32>
    %122 = arith.subf %120, %121 : vector<8x4xf32>
    %123 = arith.mulf %113, %32 : vector<8x4xf32>
    %124 = arith.mulf %112, %33 : vector<8x4xf32>
    %125 = arith.addf %123, %124 : vector<8x4xf32>
    %cst_42 = arith.constant dense<0.000000e+00> : vector<8x8xf32>
    %126 = tpu.matmul %116, %122, %cst_42 {dimension_numbers = #tpu.dot_dimension_numbers<[1], [1], [0], [0], [0, 0, 1, 0], [], []>} : vector<8x4xf32>, vector<8x4xf32>, vector<8x8xf32> -> vector<8x8xf32>
    %cst_43 = arith.constant dense<0.000000e+00> : vector<8x8xf32>
    %127 = tpu.matmul %119, %125, %cst_43 {dimension_numbers = #tpu.dot_dimension_numbers<[1], [1], [0], [0], [0, 0, 1, 0], [], []>} : vector<8x4xf32>, vector<8x4xf32>, vector<8x8xf32> -> vector<8x8xf32>
    %128 = arith.addf %126, %127 : vector<8x8xf32>
    %129 = arith.addf %128, %37 : vector<8x8xf32>
    %cst_44 = arith.constant dense<0xFF800000> : vector<8xf32>
    %130 = vector.multi_reduction <maximumf>, %129, %cst_44 [1] : vector<8x8xf32> to vector<8xf32>
    %131 = vector.shape_cast %130 : vector<8xf32> to vector<8x1xf32>
    %132 = vector.broadcast %131 : vector<8x1xf32> to vector<8x8xf32>
    %133 = arith.subf %129, %132 : vector<8x8xf32>
    %134 = math.exp %133 : vector<8x8xf32>
    %cst_45 = arith.constant dense<0.000000e+00> : vector<8xf32>
    %135 = vector.multi_reduction <add>, %134, %cst_45 [1] : vector<8x8xf32> to vector<8xf32>
    %136 = vector.shape_cast %135 : vector<8xf32> to vector<8x1xf32>
    %137 = tpu.reciprocal %136 {approx = true} : vector<8x1xf32> -> vector<8x1xf32>
    %138 = vector.broadcast %137 : vector<8x1xf32> to vector<8x8xf32>
    %139 = arith.mulf %134, %138 : vector<8x8xf32>
    %c0_46 = arith.constant 0 : index
    %c2 = arith.constant 2 : index
    %c0_47 = arith.constant 0 : index
    %c0_48 = arith.constant 0 : index
    %140 = vector.load %arg18[%c0_46, %c2, %c0_47, %c0_48] : memref<1x4x8x8xf32, #tpu.memory_space<vmem>>, vector<1x1x8x8xf32>
    %141 = vector.shape_cast %140 : vector<1x1x8x8xf32> to vector<8x8xf32>
    %142 = vector.shape_cast %139 : vector<8x8xf32> to vector<1x1x8x8xf32>
    tpu.vector_store %arg18[%c0_46, %c2, %c0_47, %c0_48], %142 {strides = array<i32>} : memref<1x4x8x8xf32, #tpu.memory_space<vmem>>, vector<1x1x8x8xf32>,
    %143 = vector.extract_strided_slice %31 {offsets = [0, 16], sizes = [8, 8], strides = [1, 1]} : vector<8x32xf32> to vector<8x8xf32>
    %cst_49 = arith.constant dense<0.000000e+00> : vector<8x8xf32>
    %144 = tpu.matmul %139, %143, %cst_49 {dimension_numbers = #tpu.dot_dimension_numbers<[1], [0], [0], [1], [0, 0, 1, 1], [], []>} : vector<8x8xf32>, vector<8x8xf32>, vector<8x8xf32> -> vector<8x8xf32>
    %c0_50 = arith.constant 0 : index
    %c16 = arith.constant 16 : index
    %145 = vector.load %arg19[%c0_50, %c16] : memref<8x32xf32, #tpu.memory_space<vmem>>, vector<8x8xf32>
    tpu.vector_store %arg19[%c0_50, %c16], %144 {strides = array<i32>} : memref<8x32xf32, #tpu.memory_space<vmem>>, vector<8x8xf32>,
    %146 = vector.extract_strided_slice %29 {offsets = [0, 24], sizes = [8, 4], strides = [1, 1]} : vector<8x32xf32> to vector<8x4xf32>
    %147 = vector.extract_strided_slice %29 {offsets = [0, 28], sizes = [8, 4], strides = [1, 1]} : vector<8x32xf32> to vector<8x4xf32>
    %148 = vector.extract_strided_slice %30 {offsets = [0, 24], sizes = [8, 4], strides = [1, 1]} : vector<8x32xf32> to vector<8x4xf32>
    %149 = vector.extract_strided_slice %30 {offsets = [0, 28], sizes = [8, 4], strides = [1, 1]} : vector<8x32xf32> to vector<8x4xf32>
    %150 = arith.mulf %146, %32 : vector<8x4xf32>
    %151 = arith.mulf %147, %33 : vector<8x4xf32>
    %152 = arith.subf %150, %151 : vector<8x4xf32>
    %153 = arith.mulf %147, %32 : vector<8x4xf32>
    %154 = arith.mulf %146, %33 : vector<8x4xf32>
    %155 = arith.addf %153, %154 : vector<8x4xf32>
    %156 = arith.mulf %148, %32 : vector<8x4xf32>
    %157 = arith.mulf %149, %33 : vector<8x4xf32>
    %158 = arith.subf %156, %157 : vector<8x4xf32>
    %159 = arith.mulf %149, %32 : vector<8x4xf32>
    %160 = arith.mulf %148, %33 : vector<8x4xf32>
    %161 = arith.addf %159, %160 : vector<8x4xf32>
    %cst_51 = arith.constant dense<0.000000e+00> : vector<8x8xf32>
    %162 = tpu.matmul %152, %158, %cst_51 {dimension_numbers = #tpu.dot_dimension_numbers<[1], [1], [0], [0], [0, 0, 1, 0], [], []>} : vector<8x4xf32>, vector<8x4xf32>, vector<8x8xf32> -> vector<8x8xf32>
    %cst_52 = arith.constant dense<0.000000e+00> : vector<8x8xf32>
    %163 = tpu.matmul %155, %161, %cst_52 {dimension_numbers = #tpu.dot_dimension_numbers<[1], [1], [0], [0], [0, 0, 1, 0], [], []>} : vector<8x4xf32>, vector<8x4xf32>, vector<8x8xf32> -> vector<8x8xf32>
    %164 = arith.addf %162, %163 : vector<8x8xf32>
    %165 = arith.addf %164, %37 : vector<8x8xf32>
    %cst_53 = arith.constant dense<0xFF800000> : vector<8xf32>
    %166 = vector.multi_reduction <maximumf>, %165, %cst_53 [1] : vector<8x8xf32> to vector<8xf32>
    %167 = vector.shape_cast %166 : vector<8xf32> to vector<8x1xf32>
    %168 = vector.broadcast %167 : vector<8x1xf32> to vector<8x8xf32>
    %169 = arith.subf %165, %168 : vector<8x8xf32>
    %170 = math.exp %169 : vector<8x8xf32>
    %cst_54 = arith.constant dense<0.000000e+00> : vector<8xf32>
    %171 = vector.multi_reduction <add>, %170, %cst_54 [1] : vector<8x8xf32> to vector<8xf32>
    %172 = vector.shape_cast %171 : vector<8xf32> to vector<8x1xf32>
    %173 = tpu.reciprocal %172 {approx = true} : vector<8x1xf32> -> vector<8x1xf32>
    %174 = vector.broadcast %173 : vector<8x1xf32> to vector<8x8xf32>
    %175 = arith.mulf %170, %174 : vector<8x8xf32>
    %c0_55 = arith.constant 0 : index
    %c3 = arith.constant 3 : index
    %c0_56 = arith.constant 0 : index
    %c0_57 = arith.constant 0 : index
    %176 = vector.load %arg18[%c0_55, %c3, %c0_56, %c0_57] : memref<1x4x8x8xf32, #tpu.memory_space<vmem>>, vector<1x1x8x8xf32>
    %177 = vector.shape_cast %176 : vector<1x1x8x8xf32> to vector<8x8xf32>
    %178 = vector.shape_cast %175 : vector<8x8xf32> to vector<1x1x8x8xf32>
    tpu.vector_store %arg18[%c0_55, %c3, %c0_56, %c0_57], %178 {strides = array<i32>} : memref<1x4x8x8xf32, #tpu.memory_space<vmem>>, vector<1x1x8x8xf32>,
    %179 = vector.extract_strided_slice %31 {offsets = [0, 24], sizes = [8, 8], strides = [1, 1]} : vector<8x32xf32> to vector<8x8xf32>
    %cst_58 = arith.constant dense<0.000000e+00> : vector<8x8xf32>
    %180 = tpu.matmul %175, %179, %cst_58 {dimension_numbers = #tpu.dot_dimension_numbers<[1], [0], [0], [1], [0, 0, 1, 1], [], []>} : vector<8x8xf32>, vector<8x8xf32>, vector<8x8xf32> -> vector<8x8xf32>
    %c0_59 = arith.constant 0 : index
    %c24 = arith.constant 24 : index
    %181 = vector.load %arg19[%c0_59, %c24] : memref<8x32xf32, #tpu.memory_space<vmem>>, vector<8x8xf32>
    tpu.vector_store %arg19[%c0_59, %c24], %180 {strides = array<i32>} : memref<8x32xf32, #tpu.memory_space<vmem>>, vector<8x8xf32>,
    %c0_60 = arith.constant 0 : index
    %c0_61 = arith.constant 0 : index
    %182 = vector.load %arg19[%c0_60, %c0_61] : memref<8x32xf32, #tpu.memory_space<vmem>>, vector<8x32xf32>
    %c0_62 = arith.constant 0 : index
    %c0_63 = arith.constant 0 : index
    %183 = vector.load %arg9[%c0_62, %c0_63] : memref<32x32xf32, #tpu.memory_space<vmem>>, vector<32x32xf32>
    %cst_64 = arith.constant dense<0.000000e+00> : vector<8x32xf32>
    %184 = tpu.matmul %182, %183, %cst_64 {dimension_numbers = #tpu.dot_dimension_numbers<[1], [0], [0], [1], [0, 0, 1, 1], [], []>} : vector<8x32xf32>, vector<32x32xf32>, vector<8x32xf32> -> vector<8x32xf32>
    %185 = arith.addf %1, %184 : vector<8x32xf32>
    %c0_65 = arith.constant 0 : index
    %c0_66 = arith.constant 0 : index
    %186 = vector.load %arg10[%c0_65, %c0_66] : memref<1x32xf32, #tpu.memory_space<vmem>>, vector<1x32xf32>
    %187 = vector.broadcast %186 : vector<1x32xf32> to vector<8x32xf32>
    %188 = arith.addf %185, %187 : vector<8x32xf32>
    %c0_67 = arith.constant 0 : index
    %c0_68 = arith.constant 0 : index
    %189 = vector.load %arg11[%c0_67, %c0_68] : memref<1x32xf32, #tpu.memory_space<vmem>>, vector<1x32xf32>
    %c0_69 = arith.constant 0 : index
    %c0_70 = arith.constant 0 : index
    %190 = vector.load %arg12[%c0_69, %c0_70] : memref<1x32xf32, #tpu.memory_space<vmem>>, vector<1x32xf32>
    %cst_71 = arith.constant dense<0.000000e+00> : vector<8xf32>
    %191 = vector.multi_reduction <add>, %188, %cst_71 [1] : vector<8x32xf32> to vector<8xf32>
    %192 = vector.shape_cast %191 : vector<8xf32> to vector<8x1xf32>
    %cst_72 = arith.constant 3.200000e+01 : f32
    %193 = vector.broadcast %cst_72 : f32 to vector<8x1xf32>
    %194 = arith.divf %192, %193 : vector<8x1xf32>
    %195 = vector.broadcast %194 : vector<8x1xf32> to vector<8x32xf32>
    %196 = arith.subf %188, %195 : vector<8x32xf32>
    %197 = arith.mulf %196, %196 : vector<8x32xf32>
    %cst_73 = arith.constant dense<0.000000e+00> : vector<8xf32>
    %198 = vector.multi_reduction <add>, %197, %cst_73 [1] : vector<8x32xf32> to vector<8xf32>
    %199 = vector.shape_cast %198 : vector<8xf32> to vector<8x1xf32>
    %cst_74 = arith.constant 3.200000e+01 : f32
    %200 = vector.broadcast %cst_74 : f32 to vector<8x1xf32>
    %201 = arith.divf %199, %200 : vector<8x1xf32>
    %cst_75 = arith.constant 9.99999996E-13 : f32
    %202 = vector.broadcast %cst_75 : f32 to vector<8x1xf32>
    %203 = arith.addf %201, %202 : vector<8x1xf32>
    %204 = math.rsqrt %203 : vector<8x1xf32>
    %205 = vector.broadcast %204 : vector<8x1xf32> to vector<8x32xf32>
    %206 = arith.mulf %196, %205 : vector<8x32xf32>
    %207 = vector.broadcast %189 : vector<1x32xf32> to vector<8x32xf32>
    %208 = arith.mulf %206, %207 : vector<8x32xf32>
    %209 = vector.broadcast %190 : vector<1x32xf32> to vector<8x32xf32>
    %210 = arith.addf %208, %209 : vector<8x32xf32>
    %c0_76 = arith.constant 0 : index
    %c0_77 = arith.constant 0 : index
    %211 = vector.load %arg13[%c0_76, %c0_77] : memref<32x128xf32, #tpu.memory_space<vmem>>, vector<32x128xf32>
    %cst_78 = arith.constant dense<0.000000e+00> : vector<8x128xf32>
    %212 = tpu.matmul %210, %211, %cst_78 {dimension_numbers = #tpu.dot_dimension_numbers<[1], [0], [0], [1], [0, 0, 1, 1], [], []>} : vector<8x32xf32>, vector<32x128xf32>, vector<8x128xf32> -> vector<8x128xf32>
    %c0_79 = arith.constant 0 : index
    %c0_80 = arith.constant 0 : index
    %213 = vector.load %arg14[%c0_79, %c0_80] : memref<1x128xf32, #tpu.memory_space<vmem>>, vector<1x128xf32>
    %214 = vector.broadcast %213 : vector<1x128xf32> to vector<8x128xf32>
    %215 = arith.addf %212, %214 : vector<8x128xf32>
    %cst_81 = arith.constant 5.000000e-01 : f32
    %216 = vector.broadcast %cst_81 : f32 to vector<8x128xf32>
    %217 = arith.mulf %216, %215 : vector<8x128xf32>
    %cst_82 = arith.constant 0.707106769 : f32
    %218 = vector.broadcast %cst_82 : f32 to vector<8x128xf32>
    %219 = arith.mulf %215, %218 : vector<8x128xf32>
    %220 = math.erf %219 : vector<8x128xf32>
    %cst_83 = arith.constant 1.000000e+00 : f32
    %221 = vector.broadcast %cst_83 : f32 to vector<8x128xf32>
    %222 = arith.addf %221, %220 : vector<8x128xf32>
    %223 = arith.mulf %217, %222 : vector<8x128xf32>
    %c0_84 = arith.constant 0 : index
    %c0_85 = arith.constant 0 : index
    %224 = vector.load %arg15[%c0_84, %c0_85] : memref<128x32xf32, #tpu.memory_space<vmem>>, vector<128x32xf32>
    %cst_86 = arith.constant dense<0.000000e+00> : vector<8x32xf32>
    %225 = tpu.matmul %223, %224, %cst_86 {dimension_numbers = #tpu.dot_dimension_numbers<[1], [0], [0], [1], [0, 0, 1, 1], [], []>} : vector<8x128xf32>, vector<128x32xf32>, vector<8x32xf32> -> vector<8x32xf32>
    %c0_87 = arith.constant 0 : index
    %c0_88 = arith.constant 0 : index
    %226 = vector.load %arg16[%c0_87, %c0_88] : memref<1x32xf32, #tpu.memory_space<vmem>>, vector<1x32xf32>
    %227 = vector.broadcast %226 : vector<1x32xf32> to vector<8x32xf32>
    %228 = arith.addf %225, %227 : vector<8x32xf32>
    %229 = arith.addf %188, %228 : vector<8x32xf32>
    %230 = vector.shape_cast %229 : vector<8x32xf32> to vector<1x8x32xf32>
    %c0_89 = arith.constant 0 : index
    %c0_90 = arith.constant 0 : index
    %c0_91 = arith.constant 0 : index
    %231 = vector.load %arg17[%c0_89, %c0_90, %c0_91] : memref<1x8x32xf32, #tpu.memory_space<vmem>>, vector<1x8x32xf32>
    tpu.vector_store %arg17[%c0_89, %c0_90, %c0_91], %230 {strides = array<i32>} : memref<1x8x32xf32, #tpu.memory_space<vmem>>, vector<1x8x32xf32>,
    return
  }
  func.func @transform_0(%arg0: i32) -> (i32, i32, i32) {
    %c0_i32 = arith.constant 0 : i32
    %c0_i32_0 = arith.constant 0 : i32
    %c0_i32_1 = arith.constant 0 : i32
    return %arg0, %c0_i32, %c0_i32_0 : i32, i32, i32
  }
  func.func @transform_1(%arg0: i32) -> (i32, i32, i32) {
    %c0_i32 = arith.constant 0 : i32
    %c0_i32_0 = arith.constant 0 : i32
    %c0_i32_1 = arith.constant 0 : i32
    return %arg0, %c0_i32, %c0_i32_0 : i32, i32, i32
  }
  func.func @transform_2(%arg0: i32) -> (i32, i32) {
    %c0_i32 = arith.constant 0 : i32
    %c0_i32_0 = arith.constant 0 : i32
    %c0_i32_1 = arith.constant 0 : i32
    return %c0_i32, %c0_i32_0 : i32, i32
  }
  func.func @transform_3(%arg0: i32) -> (i32, i32) {
    %c0_i32 = arith.constant 0 : i32
    %c0_i32_0 = arith.constant 0 : i32
    %c0_i32_1 = arith.constant 0 : i32
    return %c0_i32, %c0_i32_0 : i32, i32
  }
  func.func @transform_4(%arg0: i32) -> (i32, i32) {
    %c0_i32 = arith.constant 0 : i32
    %c0_i32_0 = arith.constant 0 : i32
    %c0_i32_1 = arith.constant 0 : i32
    return %c0_i32, %c0_i32_0 : i32, i32
  }
  func.func @transform_5(%arg0: i32) -> (i32, i32) {
    %c0_i32 = arith.constant 0 : i32
    %c0_i32_0 = arith.constant 0 : i32
    %c0_i32_1 = arith.constant 0 : i32
    return %c0_i32, %c0_i32_0 : i32, i32
  }
  func.func @transform_6(%arg0: i32) -> (i32, i32) {
    %c0_i32 = arith.constant 0 : i32
    %c0_i32_0 = arith.constant 0 : i32
    %c0_i32_1 = arith.constant 0 : i32
    return %c0_i32, %c0_i32_0 : i32, i32
  }
  func.func @transform_7(%arg0: i32) -> (i32, i32) {
    %c0_i32 = arith.constant 0 : i32
    %c0_i32_0 = arith.constant 0 : i32
    %c0_i32_1 = arith.constant 0 : i32
    return %c0_i32, %c0_i32_0 : i32, i32
  }
  func.func @transform_8(%arg0: i32) -> (i32, i32) {
    %c0_i32 = arith.constant 0 : i32
    %c0_i32_0 = arith.constant 0 : i32
    %c0_i32_1 = arith.constant 0 : i32
    return %c0_i32, %c0_i32_0 : i32, i32
  }
  func.func @transform_9(%arg0: i32) -> (i32, i32) {
    %c0_i32 = arith.constant 0 : i32
    %c0_i32_0 = arith.constant 0 : i32
    %c0_i32_1 = arith.constant 0 : i32
    return %c0_i32, %c0_i32_0 : i32, i32
  }
  func.func @transform_10(%arg0: i32) -> (i32, i32) {
    %c0_i32 = arith.constant 0 : i32
    %c0_i32_0 = arith.constant 0 : i32
    %c0_i32_1 = arith.constant 0 : i32
    return %c0_i32, %c0_i32_0 : i32, i32
  }
  func.func @transform_11(%arg0: i32) -> (i32, i32) {
    %c0_i32 = arith.constant 0 : i32
    %c0_i32_0 = arith.constant 0 : i32
    %c0_i32_1 = arith.constant 0 : i32
    return %c0_i32, %c0_i32_0 : i32, i32
  }
  func.func @transform_12(%arg0: i32) -> (i32, i32) {
    %c0_i32 = arith.constant 0 : i32
    %c0_i32_0 = arith.constant 0 : i32
    %c0_i32_1 = arith.constant 0 : i32
    return %c0_i32, %c0_i32_0 : i32, i32
  }
  func.func @transform_13(%arg0: i32) -> (i32, i32) {
    %c0_i32 = arith.constant 0 : i32
    %c0_i32_0 = arith.constant 0 : i32
    %c0_i32_1 = arith.constant 0 : i32
    return %c0_i32, %c0_i32_0 : i32, i32
  }
  func.func @transform_14(%arg0: i32) -> (i32, i32) {
    %c0_i32 = arith.constant 0 : i32
    %c0_i32_0 = arith.constant 0 : i32
    %c0_i32_1 = arith.constant 0 : i32
    return %c0_i32, %c0_i32_0 : i32, i32
  }
  func.func @transform_15(%arg0: i32) -> (i32, i32) {
    %c0_i32 = arith.constant 0 : i32
    %c0_i32_0 = arith.constant 0 : i32
    %c0_i32_1 = arith.constant 0 : i32
    return %c0_i32, %c0_i32_0 : i32, i32
  }
  func.func @transform_16(%arg0: i32) -> (i32, i32, i32) {
    %c0_i32 = arith.constant 0 : i32
    %c0_i32_0 = arith.constant 0 : i32
    %c0_i32_1 = arith.constant 0 : i32
    return %arg0, %c0_i32, %c0_i32_0 : i32, i32, i32
  }
  func.func @transform_17(%arg0: i32) -> (i32, i32, i32, i32) {
    %c0_i32 = arith.constant 0 : i32
    %c0_i32_0 = arith.constant 0 : i32
    %c0_i32_1 = arith.constant 0 : i32
    %c0_i32_2 = arith.constant 0 : i32
    return %arg0, %c0_i32, %c0_i32_0, %c0_i32_1 : i32, i32, i32, i32
  }
}

module attributes {stable_mosaic.version = 11 : i64} {
  func.func @_contact_kernel(%arg0: i32, %arg1: memref<1x8x1xf32, #tpu.memory_space<vmem>>, %arg2: memref<1x1x8xf32, #tpu.memory_space<vmem>>, %arg3: memref<8x1x1xf32, #tpu.memory_space<vmem>>, %arg4: memref<1x1xf32, #tpu.memory_space<vmem>>, %arg5: memref<1x4x8x8xf32, #tpu.memory_space<vmem>>, %arg6: memref<1x4x8x8xf32, #tpu.memory_space<vmem>>, %arg7: memref<1x8x8xf32, #tpu.memory_space<vmem>>) attributes {dimension_semantics = [#tpu.dimension_semantics<parallel>], iteration_bounds = array<i64: 2>, scalar_prefetch = 0 : i64, scratch_operands = 0 : i64, tpu.core_type = #tpu.core_type<tc>, window_params = [{transform_indices = @transform_0, window_bounds = array<i64: 1, 8, 1>}, {transform_indices = @transform_1, window_bounds = array<i64: 1, 1, 8>}, {pipeline_mode = #tpu.pipeline_mode<synchronous>, transform_indices = @transform_2, window_bounds = array<i64: 8, 1, 1>}, {pipeline_mode = #tpu.pipeline_mode<synchronous>, transform_indices = @transform_3, window_bounds = array<i64: 1, 1>}, {transform_indices = @transform_4, window_bounds = array<i64: 1, 4, 8, 8>}, {transform_indices = @transform_5, window_bounds = array<i64: 1, 4, 8, 8>}, {transform_indices = @transform_6, window_bounds = array<i64: 1, 8, 8>}]} {
    %c0 = arith.constant 0 : index
    %c0_0 = arith.constant 0 : index
    %c0_1 = arith.constant 0 : index
    %0 = vector.load %arg1[%c0, %c0_0, %c0_1] : memref<1x8x1xf32, #tpu.memory_space<vmem>>, vector<1x8x1xf32>
    %1 = vector.shape_cast %0 : vector<1x8x1xf32> to vector<8x1xf32>
    %c0_2 = arith.constant 0 : index
    %c0_3 = arith.constant 0 : index
    %c0_4 = arith.constant 0 : index
    %2 = vector.load %arg2[%c0_2, %c0_3, %c0_4] : memref<1x1x8xf32, #tpu.memory_space<vmem>>, vector<1x1x8xf32>
    %3 = vector.shape_cast %2 : vector<1x1x8xf32> to vector<1x8xf32>
    %4 = vector.broadcast %1 : vector<8x1xf32> to vector<8x8xf32>
    %5 = vector.broadcast %3 : vector<1x8xf32> to vector<8x8xf32>
    %6 = arith.mulf %4, %5 : vector<8x8xf32>
    %c0_5 = arith.constant 0 : index
    %c0_6 = arith.constant 0 : index
    %7 = vector.load %arg4[%c0_5, %c0_6] : memref<1x1xf32, #tpu.memory_space<vmem>>, vector<1x1xf32>
    %8 = vector.shape_cast %7 : vector<1x1xf32> to vector<1x1xf32>
    %9 = vector.broadcast %8 : vector<1x1xf32> to vector<8x8xf32>
    %c0_7 = arith.constant 0 : index
    %c0_8 = arith.constant 0 : index
    %c0_9 = arith.constant 0 : index
    %c0_10 = arith.constant 0 : index
    %10 = vector.load %arg5[%c0_7, %c0_8, %c0_9, %c0_10] : memref<1x4x8x8xf32, #tpu.memory_space<vmem>>, vector<1x1x8x8xf32>
    %11 = vector.shape_cast %10 : vector<1x1x8x8xf32> to vector<8x8xf32>
    %12 = arith.mulf %11, %6 : vector<8x8xf32>
    %13 = tpu.transpose %12, [1, 0] : vector<8x8xf32> -> vector<8x8xf32>
    %14 = arith.addf %12, %13 : vector<8x8xf32>
    %cst = arith.constant dense<0.000000e+00> : vector<8xf32>
    %15 = vector.multi_reduction <add>, %14, %cst [1] : vector<8x8xf32> to vector<8xf32>
    %16 = vector.shape_cast %15 : vector<8xf32> to vector<8x1xf32>
    %cst_11 = arith.constant dense<0.000000e+00> : vector<8xf32>
    %17 = vector.multi_reduction <add>, %14, %cst_11 [0] : vector<8x8xf32> to vector<8xf32>
    %18 = vector.shape_cast %17 : vector<8xf32> to vector<1x8xf32>
    %19 = vector.shape_cast %14 : vector<8x8xf32> to vector<1x8x8xf32>
    %cst_12 = arith.constant dense<0.000000e+00> : vector<1xf32>
    %20 = vector.multi_reduction <add>, %19, %cst_12 [1, 2] : vector<1x8x8xf32> to vector<1xf32>
    %21 = vector.shape_cast %20 : vector<1xf32> to vector<1x1x1xf32>
    %22 = vector.extract %21[0, 0, 0] : f32 from vector<1x1x1xf32>
    %23 = vector.broadcast %22 : f32 to vector<1x1xf32>
    %24 = vector.broadcast %16 : vector<8x1xf32> to vector<8x8xf32>
    %25 = vector.broadcast %18 : vector<1x8xf32> to vector<8x8xf32>
    %26 = arith.mulf %24, %25 : vector<8x8xf32>
    %27 = tpu.reciprocal %23 {approx = true} : vector<1x1xf32> -> vector<1x1xf32>
    %28 = vector.broadcast %27 : vector<1x1xf32> to vector<8x8xf32>
    %29 = arith.mulf %26, %28 : vector<8x8xf32>
    %30 = arith.subf %14, %29 : vector<8x8xf32>
    %c0_13 = arith.constant 0 : index
    %c0_14 = arith.constant 0 : index
    %c0_15 = arith.constant 0 : index
    %31 = vector.load %arg3[%c0_13, %c0_14, %c0_15] : memref<8x1x1xf32, #tpu.memory_space<vmem>>, vector<1x1x1xf32>
    %32 = vector.shape_cast %31 : vector<1x1x1xf32> to vector<1x1xf32>
    %33 = vector.broadcast %32 : vector<1x1xf32> to vector<8x8xf32>
    %34 = arith.mulf %30, %33 : vector<8x8xf32>
    %35 = arith.addf %9, %34 : vector<8x8xf32>
    %c0_16 = arith.constant 0 : index
    %c1 = arith.constant 1 : index
    %c0_17 = arith.constant 0 : index
    %c0_18 = arith.constant 0 : index
    %36 = vector.load %arg5[%c0_16, %c1, %c0_17, %c0_18] : memref<1x4x8x8xf32, #tpu.memory_space<vmem>>, vector<1x1x8x8xf32>
    %37 = vector.shape_cast %36 : vector<1x1x8x8xf32> to vector<8x8xf32>
    %38 = arith.mulf %37, %6 : vector<8x8xf32>
    %39 = tpu.transpose %38, [1, 0] : vector<8x8xf32> -> vector<8x8xf32>
    %40 = arith.addf %38, %39 : vector<8x8xf32>
    %cst_19 = arith.constant dense<0.000000e+00> : vector<8xf32>
    %41 = vector.multi_reduction <add>, %40, %cst_19 [1] : vector<8x8xf32> to vector<8xf32>
    %42 = vector.shape_cast %41 : vector<8xf32> to vector<8x1xf32>
    %cst_20 = arith.constant dense<0.000000e+00> : vector<8xf32>
    %43 = vector.multi_reduction <add>, %40, %cst_20 [0] : vector<8x8xf32> to vector<8xf32>
    %44 = vector.shape_cast %43 : vector<8xf32> to vector<1x8xf32>
    %45 = vector.shape_cast %40 : vector<8x8xf32> to vector<1x8x8xf32>
    %cst_21 = arith.constant dense<0.000000e+00> : vector<1xf32>
    %46 = vector.multi_reduction <add>, %45, %cst_21 [1, 2] : vector<1x8x8xf32> to vector<1xf32>
    %47 = vector.shape_cast %46 : vector<1xf32> to vector<1x1x1xf32>
    %48 = vector.extract %47[0, 0, 0] : f32 from vector<1x1x1xf32>
    %49 = vector.broadcast %48 : f32 to vector<1x1xf32>
    %50 = vector.broadcast %42 : vector<8x1xf32> to vector<8x8xf32>
    %51 = vector.broadcast %44 : vector<1x8xf32> to vector<8x8xf32>
    %52 = arith.mulf %50, %51 : vector<8x8xf32>
    %53 = tpu.reciprocal %49 {approx = true} : vector<1x1xf32> -> vector<1x1xf32>
    %54 = vector.broadcast %53 : vector<1x1xf32> to vector<8x8xf32>
    %55 = arith.mulf %52, %54 : vector<8x8xf32>
    %56 = arith.subf %40, %55 : vector<8x8xf32>
    %c1_22 = arith.constant 1 : index
    %c0_23 = arith.constant 0 : index
    %c0_24 = arith.constant 0 : index
    %57 = vector.load %arg3[%c1_22, %c0_23, %c0_24] : memref<8x1x1xf32, #tpu.memory_space<vmem>>, vector<1x1x1xf32>
    %58 = vector.shape_cast %57 : vector<1x1x1xf32> to vector<1x1xf32>
    %59 = vector.broadcast %58 : vector<1x1xf32> to vector<8x8xf32>
    %60 = arith.mulf %56, %59 : vector<8x8xf32>
    %61 = arith.addf %35, %60 : vector<8x8xf32>
    %c0_25 = arith.constant 0 : index
    %c2 = arith.constant 2 : index
    %c0_26 = arith.constant 0 : index
    %c0_27 = arith.constant 0 : index
    %62 = vector.load %arg5[%c0_25, %c2, %c0_26, %c0_27] : memref<1x4x8x8xf32, #tpu.memory_space<vmem>>, vector<1x1x8x8xf32>
    %63 = vector.shape_cast %62 : vector<1x1x8x8xf32> to vector<8x8xf32>
    %64 = arith.mulf %63, %6 : vector<8x8xf32>
    %65 = tpu.transpose %64, [1, 0] : vector<8x8xf32> -> vector<8x8xf32>
    %66 = arith.addf %64, %65 : vector<8x8xf32>
    %cst_28 = arith.constant dense<0.000000e+00> : vector<8xf32>
    %67 = vector.multi_reduction <add>, %66, %cst_28 [1] : vector<8x8xf32> to vector<8xf32>
    %68 = vector.shape_cast %67 : vector<8xf32> to vector<8x1xf32>
    %cst_29 = arith.constant dense<0.000000e+00> : vector<8xf32>
    %69 = vector.multi_reduction <add>, %66, %cst_29 [0] : vector<8x8xf32> to vector<8xf32>
    %70 = vector.shape_cast %69 : vector<8xf32> to vector<1x8xf32>
    %71 = vector.shape_cast %66 : vector<8x8xf32> to vector<1x8x8xf32>
    %cst_30 = arith.constant dense<0.000000e+00> : vector<1xf32>
    %72 = vector.multi_reduction <add>, %71, %cst_30 [1, 2] : vector<1x8x8xf32> to vector<1xf32>
    %73 = vector.shape_cast %72 : vector<1xf32> to vector<1x1x1xf32>
    %74 = vector.extract %73[0, 0, 0] : f32 from vector<1x1x1xf32>
    %75 = vector.broadcast %74 : f32 to vector<1x1xf32>
    %76 = vector.broadcast %68 : vector<8x1xf32> to vector<8x8xf32>
    %77 = vector.broadcast %70 : vector<1x8xf32> to vector<8x8xf32>
    %78 = arith.mulf %76, %77 : vector<8x8xf32>
    %79 = tpu.reciprocal %75 {approx = true} : vector<1x1xf32> -> vector<1x1xf32>
    %80 = vector.broadcast %79 : vector<1x1xf32> to vector<8x8xf32>
    %81 = arith.mulf %78, %80 : vector<8x8xf32>
    %82 = arith.subf %66, %81 : vector<8x8xf32>
    %c2_31 = arith.constant 2 : index
    %c0_32 = arith.constant 0 : index
    %c0_33 = arith.constant 0 : index
    %83 = vector.load %arg3[%c2_31, %c0_32, %c0_33] : memref<8x1x1xf32, #tpu.memory_space<vmem>>, vector<1x1x1xf32>
    %84 = vector.shape_cast %83 : vector<1x1x1xf32> to vector<1x1xf32>
    %85 = vector.broadcast %84 : vector<1x1xf32> to vector<8x8xf32>
    %86 = arith.mulf %82, %85 : vector<8x8xf32>
    %87 = arith.addf %61, %86 : vector<8x8xf32>
    %c0_34 = arith.constant 0 : index
    %c3 = arith.constant 3 : index
    %c0_35 = arith.constant 0 : index
    %c0_36 = arith.constant 0 : index
    %88 = vector.load %arg5[%c0_34, %c3, %c0_35, %c0_36] : memref<1x4x8x8xf32, #tpu.memory_space<vmem>>, vector<1x1x8x8xf32>
    %89 = vector.shape_cast %88 : vector<1x1x8x8xf32> to vector<8x8xf32>
    %90 = arith.mulf %89, %6 : vector<8x8xf32>
    %91 = tpu.transpose %90, [1, 0] : vector<8x8xf32> -> vector<8x8xf32>
    %92 = arith.addf %90, %91 : vector<8x8xf32>
    %cst_37 = arith.constant dense<0.000000e+00> : vector<8xf32>
    %93 = vector.multi_reduction <add>, %92, %cst_37 [1] : vector<8x8xf32> to vector<8xf32>
    %94 = vector.shape_cast %93 : vector<8xf32> to vector<8x1xf32>
    %cst_38 = arith.constant dense<0.000000e+00> : vector<8xf32>
    %95 = vector.multi_reduction <add>, %92, %cst_38 [0] : vector<8x8xf32> to vector<8xf32>
    %96 = vector.shape_cast %95 : vector<8xf32> to vector<1x8xf32>
    %97 = vector.shape_cast %92 : vector<8x8xf32> to vector<1x8x8xf32>
    %cst_39 = arith.constant dense<0.000000e+00> : vector<1xf32>
    %98 = vector.multi_reduction <add>, %97, %cst_39 [1, 2] : vector<1x8x8xf32> to vector<1xf32>
    %99 = vector.shape_cast %98 : vector<1xf32> to vector<1x1x1xf32>
    %100 = vector.extract %99[0, 0, 0] : f32 from vector<1x1x1xf32>
    %101 = vector.broadcast %100 : f32 to vector<1x1xf32>
    %102 = vector.broadcast %94 : vector<8x1xf32> to vector<8x8xf32>
    %103 = vector.broadcast %96 : vector<1x8xf32> to vector<8x8xf32>
    %104 = arith.mulf %102, %103 : vector<8x8xf32>
    %105 = tpu.reciprocal %101 {approx = true} : vector<1x1xf32> -> vector<1x1xf32>
    %106 = vector.broadcast %105 : vector<1x1xf32> to vector<8x8xf32>
    %107 = arith.mulf %104, %106 : vector<8x8xf32>
    %108 = arith.subf %92, %107 : vector<8x8xf32>
    %c3_40 = arith.constant 3 : index
    %c0_41 = arith.constant 0 : index
    %c0_42 = arith.constant 0 : index
    %109 = vector.load %arg3[%c3_40, %c0_41, %c0_42] : memref<8x1x1xf32, #tpu.memory_space<vmem>>, vector<1x1x1xf32>
    %110 = vector.shape_cast %109 : vector<1x1x1xf32> to vector<1x1xf32>
    %111 = vector.broadcast %110 : vector<1x1xf32> to vector<8x8xf32>
    %112 = arith.mulf %108, %111 : vector<8x8xf32>
    %113 = arith.addf %87, %112 : vector<8x8xf32>
    %c0_43 = arith.constant 0 : index
    %c0_44 = arith.constant 0 : index
    %c0_45 = arith.constant 0 : index
    %c0_46 = arith.constant 0 : index
    %114 = vector.load %arg6[%c0_43, %c0_44, %c0_45, %c0_46] : memref<1x4x8x8xf32, #tpu.memory_space<vmem>>, vector<1x1x8x8xf32>
    %115 = vector.shape_cast %114 : vector<1x1x8x8xf32> to vector<8x8xf32>
    %116 = arith.mulf %115, %6 : vector<8x8xf32>
    %117 = tpu.transpose %116, [1, 0] : vector<8x8xf32> -> vector<8x8xf32>
    %118 = arith.addf %116, %117 : vector<8x8xf32>
    %cst_47 = arith.constant dense<0.000000e+00> : vector<8xf32>
    %119 = vector.multi_reduction <add>, %118, %cst_47 [1] : vector<8x8xf32> to vector<8xf32>
    %120 = vector.shape_cast %119 : vector<8xf32> to vector<8x1xf32>
    %cst_48 = arith.constant dense<0.000000e+00> : vector<8xf32>
    %121 = vector.multi_reduction <add>, %118, %cst_48 [0] : vector<8x8xf32> to vector<8xf32>
    %122 = vector.shape_cast %121 : vector<8xf32> to vector<1x8xf32>
    %123 = vector.shape_cast %118 : vector<8x8xf32> to vector<1x8x8xf32>
    %cst_49 = arith.constant dense<0.000000e+00> : vector<1xf32>
    %124 = vector.multi_reduction <add>, %123, %cst_49 [1, 2] : vector<1x8x8xf32> to vector<1xf32>
    %125 = vector.shape_cast %124 : vector<1xf32> to vector<1x1x1xf32>
    %126 = vector.extract %125[0, 0, 0] : f32 from vector<1x1x1xf32>
    %127 = vector.broadcast %126 : f32 to vector<1x1xf32>
    %128 = vector.broadcast %120 : vector<8x1xf32> to vector<8x8xf32>
    %129 = vector.broadcast %122 : vector<1x8xf32> to vector<8x8xf32>
    %130 = arith.mulf %128, %129 : vector<8x8xf32>
    %131 = tpu.reciprocal %127 {approx = true} : vector<1x1xf32> -> vector<1x1xf32>
    %132 = vector.broadcast %131 : vector<1x1xf32> to vector<8x8xf32>
    %133 = arith.mulf %130, %132 : vector<8x8xf32>
    %134 = arith.subf %118, %133 : vector<8x8xf32>
    %c4 = arith.constant 4 : index
    %c0_50 = arith.constant 0 : index
    %c0_51 = arith.constant 0 : index
    %135 = vector.load %arg3[%c4, %c0_50, %c0_51] : memref<8x1x1xf32, #tpu.memory_space<vmem>>, vector<1x1x1xf32>
    %136 = vector.shape_cast %135 : vector<1x1x1xf32> to vector<1x1xf32>
    %137 = vector.broadcast %136 : vector<1x1xf32> to vector<8x8xf32>
    %138 = arith.mulf %134, %137 : vector<8x8xf32>
    %139 = arith.addf %113, %138 : vector<8x8xf32>
    %c0_52 = arith.constant 0 : index
    %c1_53 = arith.constant 1 : index
    %c0_54 = arith.constant 0 : index
    %c0_55 = arith.constant 0 : index
    %140 = vector.load %arg6[%c0_52, %c1_53, %c0_54, %c0_55] : memref<1x4x8x8xf32, #tpu.memory_space<vmem>>, vector<1x1x8x8xf32>
    %141 = vector.shape_cast %140 : vector<1x1x8x8xf32> to vector<8x8xf32>
    %142 = arith.mulf %141, %6 : vector<8x8xf32>
    %143 = tpu.transpose %142, [1, 0] : vector<8x8xf32> -> vector<8x8xf32>
    %144 = arith.addf %142, %143 : vector<8x8xf32>
    %cst_56 = arith.constant dense<0.000000e+00> : vector<8xf32>
    %145 = vector.multi_reduction <add>, %144, %cst_56 [1] : vector<8x8xf32> to vector<8xf32>
    %146 = vector.shape_cast %145 : vector<8xf32> to vector<8x1xf32>
    %cst_57 = arith.constant dense<0.000000e+00> : vector<8xf32>
    %147 = vector.multi_reduction <add>, %144, %cst_57 [0] : vector<8x8xf32> to vector<8xf32>
    %148 = vector.shape_cast %147 : vector<8xf32> to vector<1x8xf32>
    %149 = vector.shape_cast %144 : vector<8x8xf32> to vector<1x8x8xf32>
    %cst_58 = arith.constant dense<0.000000e+00> : vector<1xf32>
    %150 = vector.multi_reduction <add>, %149, %cst_58 [1, 2] : vector<1x8x8xf32> to vector<1xf32>
    %151 = vector.shape_cast %150 : vector<1xf32> to vector<1x1x1xf32>
    %152 = vector.extract %151[0, 0, 0] : f32 from vector<1x1x1xf32>
    %153 = vector.broadcast %152 : f32 to vector<1x1xf32>
    %154 = vector.broadcast %146 : vector<8x1xf32> to vector<8x8xf32>
    %155 = vector.broadcast %148 : vector<1x8xf32> to vector<8x8xf32>
    %156 = arith.mulf %154, %155 : vector<8x8xf32>
    %157 = tpu.reciprocal %153 {approx = true} : vector<1x1xf32> -> vector<1x1xf32>
    %158 = vector.broadcast %157 : vector<1x1xf32> to vector<8x8xf32>
    %159 = arith.mulf %156, %158 : vector<8x8xf32>
    %160 = arith.subf %144, %159 : vector<8x8xf32>
    %c5 = arith.constant 5 : index
    %c0_59 = arith.constant 0 : index
    %c0_60 = arith.constant 0 : index
    %161 = vector.load %arg3[%c5, %c0_59, %c0_60] : memref<8x1x1xf32, #tpu.memory_space<vmem>>, vector<1x1x1xf32>
    %162 = vector.shape_cast %161 : vector<1x1x1xf32> to vector<1x1xf32>
    %163 = vector.broadcast %162 : vector<1x1xf32> to vector<8x8xf32>
    %164 = arith.mulf %160, %163 : vector<8x8xf32>
    %165 = arith.addf %139, %164 : vector<8x8xf32>
    %c0_61 = arith.constant 0 : index
    %c2_62 = arith.constant 2 : index
    %c0_63 = arith.constant 0 : index
    %c0_64 = arith.constant 0 : index
    %166 = vector.load %arg6[%c0_61, %c2_62, %c0_63, %c0_64] : memref<1x4x8x8xf32, #tpu.memory_space<vmem>>, vector<1x1x8x8xf32>
    %167 = vector.shape_cast %166 : vector<1x1x8x8xf32> to vector<8x8xf32>
    %168 = arith.mulf %167, %6 : vector<8x8xf32>
    %169 = tpu.transpose %168, [1, 0] : vector<8x8xf32> -> vector<8x8xf32>
    %170 = arith.addf %168, %169 : vector<8x8xf32>
    %cst_65 = arith.constant dense<0.000000e+00> : vector<8xf32>
    %171 = vector.multi_reduction <add>, %170, %cst_65 [1] : vector<8x8xf32> to vector<8xf32>
    %172 = vector.shape_cast %171 : vector<8xf32> to vector<8x1xf32>
    %cst_66 = arith.constant dense<0.000000e+00> : vector<8xf32>
    %173 = vector.multi_reduction <add>, %170, %cst_66 [0] : vector<8x8xf32> to vector<8xf32>
    %174 = vector.shape_cast %173 : vector<8xf32> to vector<1x8xf32>
    %175 = vector.shape_cast %170 : vector<8x8xf32> to vector<1x8x8xf32>
    %cst_67 = arith.constant dense<0.000000e+00> : vector<1xf32>
    %176 = vector.multi_reduction <add>, %175, %cst_67 [1, 2] : vector<1x8x8xf32> to vector<1xf32>
    %177 = vector.shape_cast %176 : vector<1xf32> to vector<1x1x1xf32>
    %178 = vector.extract %177[0, 0, 0] : f32 from vector<1x1x1xf32>
    %179 = vector.broadcast %178 : f32 to vector<1x1xf32>
    %180 = vector.broadcast %172 : vector<8x1xf32> to vector<8x8xf32>
    %181 = vector.broadcast %174 : vector<1x8xf32> to vector<8x8xf32>
    %182 = arith.mulf %180, %181 : vector<8x8xf32>
    %183 = tpu.reciprocal %179 {approx = true} : vector<1x1xf32> -> vector<1x1xf32>
    %184 = vector.broadcast %183 : vector<1x1xf32> to vector<8x8xf32>
    %185 = arith.mulf %182, %184 : vector<8x8xf32>
    %186 = arith.subf %170, %185 : vector<8x8xf32>
    %c6 = arith.constant 6 : index
    %c0_68 = arith.constant 0 : index
    %c0_69 = arith.constant 0 : index
    %187 = vector.load %arg3[%c6, %c0_68, %c0_69] : memref<8x1x1xf32, #tpu.memory_space<vmem>>, vector<1x1x1xf32>
    %188 = vector.shape_cast %187 : vector<1x1x1xf32> to vector<1x1xf32>
    %189 = vector.broadcast %188 : vector<1x1xf32> to vector<8x8xf32>
    %190 = arith.mulf %186, %189 : vector<8x8xf32>
    %191 = arith.addf %165, %190 : vector<8x8xf32>
    %c0_70 = arith.constant 0 : index
    %c3_71 = arith.constant 3 : index
    %c0_72 = arith.constant 0 : index
    %c0_73 = arith.constant 0 : index
    %192 = vector.load %arg6[%c0_70, %c3_71, %c0_72, %c0_73] : memref<1x4x8x8xf32, #tpu.memory_space<vmem>>, vector<1x1x8x8xf32>
    %193 = vector.shape_cast %192 : vector<1x1x8x8xf32> to vector<8x8xf32>
    %194 = arith.mulf %193, %6 : vector<8x8xf32>
    %195 = tpu.transpose %194, [1, 0] : vector<8x8xf32> -> vector<8x8xf32>
    %196 = arith.addf %194, %195 : vector<8x8xf32>
    %cst_74 = arith.constant dense<0.000000e+00> : vector<8xf32>
    %197 = vector.multi_reduction <add>, %196, %cst_74 [1] : vector<8x8xf32> to vector<8xf32>
    %198 = vector.shape_cast %197 : vector<8xf32> to vector<8x1xf32>
    %cst_75 = arith.constant dense<0.000000e+00> : vector<8xf32>
    %199 = vector.multi_reduction <add>, %196, %cst_75 [0] : vector<8x8xf32> to vector<8xf32>
    %200 = vector.shape_cast %199 : vector<8xf32> to vector<1x8xf32>
    %201 = vector.shape_cast %196 : vector<8x8xf32> to vector<1x8x8xf32>
    %cst_76 = arith.constant dense<0.000000e+00> : vector<1xf32>
    %202 = vector.multi_reduction <add>, %201, %cst_76 [1, 2] : vector<1x8x8xf32> to vector<1xf32>
    %203 = vector.shape_cast %202 : vector<1xf32> to vector<1x1x1xf32>
    %204 = vector.extract %203[0, 0, 0] : f32 from vector<1x1x1xf32>
    %205 = vector.broadcast %204 : f32 to vector<1x1xf32>
    %206 = vector.broadcast %198 : vector<8x1xf32> to vector<8x8xf32>
    %207 = vector.broadcast %200 : vector<1x8xf32> to vector<8x8xf32>
    %208 = arith.mulf %206, %207 : vector<8x8xf32>
    %209 = tpu.reciprocal %205 {approx = true} : vector<1x1xf32> -> vector<1x1xf32>
    %210 = vector.broadcast %209 : vector<1x1xf32> to vector<8x8xf32>
    %211 = arith.mulf %208, %210 : vector<8x8xf32>
    %212 = arith.subf %196, %211 : vector<8x8xf32>
    %c7 = arith.constant 7 : index
    %c0_77 = arith.constant 0 : index
    %c0_78 = arith.constant 0 : index
    %213 = vector.load %arg3[%c7, %c0_77, %c0_78] : memref<8x1x1xf32, #tpu.memory_space<vmem>>, vector<1x1x1xf32>
    %214 = vector.shape_cast %213 : vector<1x1x1xf32> to vector<1x1xf32>
    %215 = vector.broadcast %214 : vector<1x1xf32> to vector<8x8xf32>
    %216 = arith.mulf %212, %215 : vector<8x8xf32>
    %217 = arith.addf %191, %216 : vector<8x8xf32>
    %218 = arith.negf %217 : vector<8x8xf32>
    %219 = math.exp %218 : vector<8x8xf32>
    %cst_79 = arith.constant 1.000000e+00 : f32
    %220 = vector.broadcast %cst_79 : f32 to vector<8x8xf32>
    %221 = arith.addf %220, %219 : vector<8x8xf32>
    %222 = arith.divf %220, %221 : vector<8x8xf32>
    %c0_80 = arith.constant 0 : index
    %c0_81 = arith.constant 0 : index
    %c0_82 = arith.constant 0 : index
    %223 = vector.load %arg7[%c0_80, %c0_81, %c0_82] : memref<1x8x8xf32, #tpu.memory_space<vmem>>, vector<1x8x8xf32>
    %224 = vector.shape_cast %223 : vector<1x8x8xf32> to vector<8x8xf32>
    %225 = vector.shape_cast %222 : vector<8x8xf32> to vector<1x8x8xf32>
    tpu.vector_store %arg7[%c0_80, %c0_81, %c0_82], %225 {strides = array<i32>} : memref<1x8x8xf32, #tpu.memory_space<vmem>>, vector<1x8x8xf32>,
    return
  }
  func.func @transform_0(%arg0: i32) -> (i32, i32, i32) {
    %c0_i32 = arith.constant 0 : i32
    %c0_i32_0 = arith.constant 0 : i32
    %c0_i32_1 = arith.constant 0 : i32
    return %arg0, %c0_i32, %c0_i32_0 : i32, i32, i32
  }
  func.func @transform_1(%arg0: i32) -> (i32, i32, i32) {
    %c0_i32 = arith.constant 0 : i32
    %c0_i32_0 = arith.constant 0 : i32
    %c0_i32_1 = arith.constant 0 : i32
    return %arg0, %c0_i32, %c0_i32_0 : i32, i32, i32
  }
  func.func @transform_2(%arg0: i32) -> (i32, i32, i32) {
    %c0_i32 = arith.constant 0 : i32
    %c0_i32_0 = arith.constant 0 : i32
    %c0_i32_1 = arith.constant 0 : i32
    %c0_i32_2 = arith.constant 0 : i32
    return %c0_i32, %c0_i32_0, %c0_i32_1 : i32, i32, i32
  }
  func.func @transform_3(%arg0: i32) -> (i32, i32) {
    %c0_i32 = arith.constant 0 : i32
    %c0_i32_0 = arith.constant 0 : i32
    %c0_i32_1 = arith.constant 0 : i32
    return %c0_i32, %c0_i32_0 : i32, i32
  }
  func.func @transform_4(%arg0: i32) -> (i32, i32, i32, i32) {
    %c0_i32 = arith.constant 0 : i32
    %c0_i32_0 = arith.constant 0 : i32
    %c0_i32_1 = arith.constant 0 : i32
    %c0_i32_2 = arith.constant 0 : i32
    return %arg0, %c0_i32, %c0_i32_0, %c0_i32_1 : i32, i32, i32, i32
  }
  func.func @transform_5(%arg0: i32) -> (i32, i32, i32, i32) {
    %c0_i32 = arith.constant 0 : i32
    %c0_i32_0 = arith.constant 0 : i32
    %c0_i32_1 = arith.constant 0 : i32
    %c0_i32_2 = arith.constant 0 : i32
    return %arg0, %c0_i32, %c0_i32_0, %c0_i32_1 : i32, i32, i32, i32
  }
  func.func @transform_6(%arg0: i32) -> (i32, i32, i32) {
    %c0_i32 = arith.constant 0 : i32
    %c0_i32_0 = arith.constant 0 : i32
    %c0_i32_1 = arith.constant 0 : i32
    return %arg0, %c0_i32, %c0_i32_0 : i32, i32, i32
  }
}

module attributes {stable_mosaic.version = 11 : i64} {
  func.func @_heads_kernel(%arg0: i32, %arg1: memref<8x32xf32, #tpu.memory_space<vmem>>, %arg2: memref<1x32xf32, #tpu.memory_space<vmem>>, %arg3: memref<1x32xf32, #tpu.memory_space<vmem>>, %arg4: memref<32x128xf32, #tpu.memory_space<vmem>>, %arg5: memref<1x128xf32, #tpu.memory_space<vmem>>, %arg6: memref<32x32xf32, #tpu.memory_space<vmem>>, %arg7: memref<1x32xf32, #tpu.memory_space<vmem>>, %arg8: memref<1x32xf32, #tpu.memory_space<vmem>>, %arg9: memref<1x32xf32, #tpu.memory_space<vmem>>, %arg10: memref<32x128xf32, #tpu.memory_space<vmem>>, %arg11: memref<1x128xf32, #tpu.memory_space<vmem>>, %arg12: memref<8x128xf32, #tpu.memory_space<vmem>>) attributes {dimension_semantics = [#tpu.dimension_semantics<parallel>], iteration_bounds = array<i64: 2>, scalar_prefetch = 0 : i64, scratch_operands = 0 : i64, tpu.core_type = #tpu.core_type<tc>, window_params = [{transform_indices = @transform_0, window_bounds = array<i64: 8, 32>}, {pipeline_mode = #tpu.pipeline_mode<synchronous>, transform_indices = @transform_1, window_bounds = array<i64: 1, 32>}, {pipeline_mode = #tpu.pipeline_mode<synchronous>, transform_indices = @transform_2, window_bounds = array<i64: 1, 32>}, {pipeline_mode = #tpu.pipeline_mode<synchronous>, transform_indices = @transform_3, window_bounds = array<i64: 32, 128>}, {pipeline_mode = #tpu.pipeline_mode<synchronous>, transform_indices = @transform_4, window_bounds = array<i64: 1, 128>}, {pipeline_mode = #tpu.pipeline_mode<synchronous>, transform_indices = @transform_5, window_bounds = array<i64: 32, 32>}, {pipeline_mode = #tpu.pipeline_mode<synchronous>, transform_indices = @transform_6, window_bounds = array<i64: 1, 32>}, {pipeline_mode = #tpu.pipeline_mode<synchronous>, transform_indices = @transform_7, window_bounds = array<i64: 1, 32>}, {pipeline_mode = #tpu.pipeline_mode<synchronous>, transform_indices = @transform_8, window_bounds = array<i64: 1, 32>}, {pipeline_mode = #tpu.pipeline_mode<synchronous>, transform_indices = @transform_9, window_bounds = array<i64: 32, 128>}, {pipeline_mode = #tpu.pipeline_mode<synchronous>, transform_indices = @transform_10, window_bounds = array<i64: 1, 128>}, {transform_indices = @transform_11, window_bounds = array<i64: 8, 128>}]} {
    %c0 = arith.constant 0 : index
    %c0_0 = arith.constant 0 : index
    %0 = vector.load %arg1[%c0, %c0_0] : memref<8x32xf32, #tpu.memory_space<vmem>>, vector<8x32xf32>
    %c0_1 = arith.constant 0 : index
    %c0_2 = arith.constant 0 : index
    %1 = vector.load %arg2[%c0_1, %c0_2] : memref<1x32xf32, #tpu.memory_space<vmem>>, vector<1x32xf32>
    %c0_3 = arith.constant 0 : index
    %c0_4 = arith.constant 0 : index
    %2 = vector.load %arg3[%c0_3, %c0_4] : memref<1x32xf32, #tpu.memory_space<vmem>>, vector<1x32xf32>
    %cst = arith.constant dense<0.000000e+00> : vector<8xf32>
    %3 = vector.multi_reduction <add>, %0, %cst [1] : vector<8x32xf32> to vector<8xf32>
    %4 = vector.shape_cast %3 : vector<8xf32> to vector<8x1xf32>
    %cst_5 = arith.constant 3.200000e+01 : f32
    %5 = vector.broadcast %cst_5 : f32 to vector<8x1xf32>
    %6 = arith.divf %4, %5 : vector<8x1xf32>
    %7 = vector.broadcast %6 : vector<8x1xf32> to vector<8x32xf32>
    %8 = arith.subf %0, %7 : vector<8x32xf32>
    %9 = arith.mulf %8, %8 : vector<8x32xf32>
    %cst_6 = arith.constant dense<0.000000e+00> : vector<8xf32>
    %10 = vector.multi_reduction <add>, %9, %cst_6 [1] : vector<8x32xf32> to vector<8xf32>
    %11 = vector.shape_cast %10 : vector<8xf32> to vector<8x1xf32>
    %cst_7 = arith.constant 3.200000e+01 : f32
    %12 = vector.broadcast %cst_7 : f32 to vector<8x1xf32>
    %13 = arith.divf %11, %12 : vector<8x1xf32>
    %cst_8 = arith.constant 9.99999996E-13 : f32
    %14 = vector.broadcast %cst_8 : f32 to vector<8x1xf32>
    %15 = arith.addf %13, %14 : vector<8x1xf32>
    %16 = math.rsqrt %15 : vector<8x1xf32>
    %17 = vector.broadcast %16 : vector<8x1xf32> to vector<8x32xf32>
    %18 = arith.mulf %8, %17 : vector<8x32xf32>
    %19 = vector.broadcast %1 : vector<1x32xf32> to vector<8x32xf32>
    %20 = arith.mulf %18, %19 : vector<8x32xf32>
    %21 = vector.broadcast %2 : vector<1x32xf32> to vector<8x32xf32>
    %22 = arith.addf %20, %21 : vector<8x32xf32>
    %c0_9 = arith.constant 0 : index
    %c0_10 = arith.constant 0 : index
    %23 = vector.load %arg4[%c0_9, %c0_10] : memref<32x128xf32, #tpu.memory_space<vmem>>, vector<32x128xf32>
    %cst_11 = arith.constant dense<0.000000e+00> : vector<8x128xf32>
    %24 = tpu.matmul %22, %23, %cst_11 {dimension_numbers = #tpu.dot_dimension_numbers<[1], [0], [0], [1], [0, 0, 1, 1], [], []>} : vector<8x32xf32>, vector<32x128xf32>, vector<8x128xf32> -> vector<8x128xf32>
    %c0_12 = arith.constant 0 : index
    %c0_13 = arith.constant 0 : index
    %25 = vector.load %arg5[%c0_12, %c0_13] : memref<1x128xf32, #tpu.memory_space<vmem>>, vector<1x128xf32>
    %26 = vector.broadcast %25 : vector<1x128xf32> to vector<8x128xf32>
    %27 = arith.addf %24, %26 : vector<8x128xf32>
    %c0_14 = arith.constant 0 : index
    %c0_15 = arith.constant 0 : index
    %28 = vector.load %arg6[%c0_14, %c0_15] : memref<32x32xf32, #tpu.memory_space<vmem>>, vector<32x32xf32>
    %cst_16 = arith.constant dense<0.000000e+00> : vector<8x32xf32>
    %29 = tpu.matmul %22, %28, %cst_16 {dimension_numbers = #tpu.dot_dimension_numbers<[1], [0], [0], [1], [0, 0, 1, 1], [], []>} : vector<8x32xf32>, vector<32x32xf32>, vector<8x32xf32> -> vector<8x32xf32>
    %c0_17 = arith.constant 0 : index
    %c0_18 = arith.constant 0 : index
    %30 = vector.load %arg7[%c0_17, %c0_18] : memref<1x32xf32, #tpu.memory_space<vmem>>, vector<1x32xf32>
    %31 = vector.broadcast %30 : vector<1x32xf32> to vector<8x32xf32>
    %32 = arith.addf %29, %31 : vector<8x32xf32>
    %cst_19 = arith.constant 5.000000e-01 : f32
    %33 = vector.broadcast %cst_19 : f32 to vector<8x32xf32>
    %34 = arith.mulf %33, %32 : vector<8x32xf32>
    %cst_20 = arith.constant 0.707106769 : f32
    %35 = vector.broadcast %cst_20 : f32 to vector<8x32xf32>
    %36 = arith.mulf %32, %35 : vector<8x32xf32>
    %37 = math.erf %36 : vector<8x32xf32>
    %cst_21 = arith.constant 1.000000e+00 : f32
    %38 = vector.broadcast %cst_21 : f32 to vector<8x32xf32>
    %39 = arith.addf %38, %37 : vector<8x32xf32>
    %40 = arith.mulf %34, %39 : vector<8x32xf32>
    %c0_22 = arith.constant 0 : index
    %c0_23 = arith.constant 0 : index
    %41 = vector.load %arg8[%c0_22, %c0_23] : memref<1x32xf32, #tpu.memory_space<vmem>>, vector<1x32xf32>
    %c0_24 = arith.constant 0 : index
    %c0_25 = arith.constant 0 : index
    %42 = vector.load %arg9[%c0_24, %c0_25] : memref<1x32xf32, #tpu.memory_space<vmem>>, vector<1x32xf32>
    %cst_26 = arith.constant dense<0.000000e+00> : vector<8xf32>
    %43 = vector.multi_reduction <add>, %40, %cst_26 [1] : vector<8x32xf32> to vector<8xf32>
    %44 = vector.shape_cast %43 : vector<8xf32> to vector<8x1xf32>
    %cst_27 = arith.constant 3.200000e+01 : f32
    %45 = vector.broadcast %cst_27 : f32 to vector<8x1xf32>
    %46 = arith.divf %44, %45 : vector<8x1xf32>
    %47 = vector.broadcast %46 : vector<8x1xf32> to vector<8x32xf32>
    %48 = arith.subf %40, %47 : vector<8x32xf32>
    %49 = arith.mulf %48, %48 : vector<8x32xf32>
    %cst_28 = arith.constant dense<0.000000e+00> : vector<8xf32>
    %50 = vector.multi_reduction <add>, %49, %cst_28 [1] : vector<8x32xf32> to vector<8xf32>
    %51 = vector.shape_cast %50 : vector<8xf32> to vector<8x1xf32>
    %cst_29 = arith.constant 3.200000e+01 : f32
    %52 = vector.broadcast %cst_29 : f32 to vector<8x1xf32>
    %53 = arith.divf %51, %52 : vector<8x1xf32>
    %cst_30 = arith.constant 9.99999996E-13 : f32
    %54 = vector.broadcast %cst_30 : f32 to vector<8x1xf32>
    %55 = arith.addf %53, %54 : vector<8x1xf32>
    %56 = math.rsqrt %55 : vector<8x1xf32>
    %57 = vector.broadcast %56 : vector<8x1xf32> to vector<8x32xf32>
    %58 = arith.mulf %48, %57 : vector<8x32xf32>
    %59 = vector.broadcast %41 : vector<1x32xf32> to vector<8x32xf32>
    %60 = arith.mulf %58, %59 : vector<8x32xf32>
    %61 = vector.broadcast %42 : vector<1x32xf32> to vector<8x32xf32>
    %62 = arith.addf %60, %61 : vector<8x32xf32>
    %c0_31 = arith.constant 0 : index
    %c0_32 = arith.constant 0 : index
    %63 = vector.load %arg10[%c0_31, %c0_32] : memref<32x128xf32, #tpu.memory_space<vmem>>, vector<32x128xf32>
    %cst_33 = arith.constant dense<0.000000e+00> : vector<8x128xf32>
    %64 = tpu.matmul %62, %63, %cst_33 {dimension_numbers = #tpu.dot_dimension_numbers<[1], [0], [0], [1], [0, 0, 1, 1], [], []>} : vector<8x32xf32>, vector<32x128xf32>, vector<8x128xf32> -> vector<8x128xf32>
    %c0_34 = arith.constant 0 : index
    %c0_35 = arith.constant 0 : index
    %65 = vector.load %arg11[%c0_34, %c0_35] : memref<1x128xf32, #tpu.memory_space<vmem>>, vector<1x128xf32>
    %66 = vector.broadcast %65 : vector<1x128xf32> to vector<8x128xf32>
    %67 = arith.addf %64, %66 : vector<8x128xf32>
    %68 = arith.addf %67, %27 : vector<8x128xf32>
    %c0_36 = arith.constant 0 : index
    %c0_37 = arith.constant 0 : index
    %69 = vector.load %arg12[%c0_36, %c0_37] : memref<8x128xf32, #tpu.memory_space<vmem>>, vector<8x128xf32>
    tpu.vector_store %arg12[%c0_36, %c0_37], %68 {strides = array<i32>} : memref<8x128xf32, #tpu.memory_space<vmem>>, vector<8x128xf32>,
    return
  }
  func.func @transform_0(%arg0: i32) -> (i32, i32) {
    %c0_i32 = arith.constant 0 : i32
    %c0_i32_0 = arith.constant 0 : i32
    return %arg0, %c0_i32 : i32, i32
  }
  func.func @transform_1(%arg0: i32) -> (i32, i32) {
    %c0_i32 = arith.constant 0 : i32
    %c0_i32_0 = arith.constant 0 : i32
    %c0_i32_1 = arith.constant 0 : i32
    return %c0_i32, %c0_i32_0 : i32, i32
  }
  func.func @transform_2(%arg0: i32) -> (i32, i32) {
    %c0_i32 = arith.constant 0 : i32
    %c0_i32_0 = arith.constant 0 : i32
    %c0_i32_1 = arith.constant 0 : i32
    return %c0_i32, %c0_i32_0 : i32, i32
  }
  func.func @transform_3(%arg0: i32) -> (i32, i32) {
    %c0_i32 = arith.constant 0 : i32
    %c0_i32_0 = arith.constant 0 : i32
    %c0_i32_1 = arith.constant 0 : i32
    return %c0_i32, %c0_i32_0 : i32, i32
  }
  func.func @transform_4(%arg0: i32) -> (i32, i32) {
    %c0_i32 = arith.constant 0 : i32
    %c0_i32_0 = arith.constant 0 : i32
    %c0_i32_1 = arith.constant 0 : i32
    return %c0_i32, %c0_i32_0 : i32, i32
  }
  func.func @transform_5(%arg0: i32) -> (i32, i32) {
    %c0_i32 = arith.constant 0 : i32
    %c0_i32_0 = arith.constant 0 : i32
    %c0_i32_1 = arith.constant 0 : i32
    return %c0_i32, %c0_i32_0 : i32, i32
  }
  func.func @transform_6(%arg0: i32) -> (i32, i32) {
    %c0_i32 = arith.constant 0 : i32
    %c0_i32_0 = arith.constant 0 : i32
    %c0_i32_1 = arith.constant 0 : i32
    return %c0_i32, %c0_i32_0 : i32, i32
  }
  func.func @transform_7(%arg0: i32) -> (i32, i32) {
    %c0_i32 = arith.constant 0 : i32
    %c0_i32_0 = arith.constant 0 : i32
    %c0_i32_1 = arith.constant 0 : i32
    return %c0_i32, %c0_i32_0 : i32, i32
  }
  func.func @transform_8(%arg0: i32) -> (i32, i32) {
    %c0_i32 = arith.constant 0 : i32
    %c0_i32_0 = arith.constant 0 : i32
    %c0_i32_1 = arith.constant 0 : i32
    return %c0_i32, %c0_i32_0 : i32, i32
  }
  func.func @transform_9(%arg0: i32) -> (i32, i32) {
    %c0_i32 = arith.constant 0 : i32
    %c0_i32_0 = arith.constant 0 : i32
    %c0_i32_1 = arith.constant 0 : i32
    return %c0_i32, %c0_i32_0 : i32, i32
  }
  func.func @transform_10(%arg0: i32) -> (i32, i32) {
    %c0_i32 = arith.constant 0 : i32
    %c0_i32_0 = arith.constant 0 : i32
    %c0_i32_1 = arith.constant 0 : i32
    return %c0_i32, %c0_i32_0 : i32, i32
  }
  func.func @transform_11(%arg0: i32) -> (i32, i32) {
    %c0_i32 = arith.constant 0 : i32
    %c0_i32_0 = arith.constant 0 : i32
    return %arg0, %c0_i32 : i32, i32
  }
}

</mosaic_0001>

<bundles_post_ra>
// kernel: _esm2_forward.7
= control target key start
LH: loop header
LB: loop body
LE: loop exit
PB: predicated region body
PF: predicated region fallthrough
CT: control target
= control target key end

     0   :  { %s1096_s23 = smov 0   ;;  %s1233_s0 = inlined_call_operand.vmem [shape: f32[2,8,1], index: 0, kind: input, shape index: {}]   ;;  %s1234_s1 = inlined_call_operand.vmem [shape: f32[2,1,8], index: 1, kind: input, shape index: {}]   ;;  %s1235_s2 = inlined_call_operand.vmem [shape: f32[8,1,1], index: 2, kind: input, shape index: {}]   ;;  %s1236_s3 = inlined_call_operand.<no memory space> [shape: f32[1,1], index: 3, kind: input, shape index: {}]   ;;  %s1237_s4 = inlined_call_operand.vmem [shape: f32[2,4,8,8], index: 4, kind: input, shape index: {}]   ;;  %s1238_s5 = inlined_call_operand.vmem [shape: f32[2,4,8,8], index: 5, kind: input, shape index: {}]   ;;  %s1239_s6 = inlined_call_operand.vmem [shape: f32[2,8,8], index: 6, kind: output, shape index: {}]  }
   0x1   :  { %v11_v0 = vstv %s1236_s3 }
   0x2   :  { %12 = vst [vmem:[#allocation2] sm:$0x1] %v11_v0 }
   0x3 LB: > { %s961_s24 = sadd.s32 4294967295, %s1055_s23   ;;  %p965_p0 = scmp.ge.s32.totalorder %s1055_s23, 1  ;;  %s1055_s23 = sphi %s1096_s23, %s18_s23  }
   0x4   : > { %p241_p1 = scmp.lt.s32.totalorder %s1055_s23, 3 }
   0x6   : > { %p242_p2 = pnand %p965_p0, %p241_p1 }
   0x7   : > { %p282_p3 = scmp.lt.s32.totalorder (!%p242_p2), %s961_s24, 1 }
   0x8   : > { %245 = sbr.rel (%p242_p2) target bundleno = 603 (0x25b), region = 44 }
   0xd   : > { %v1057_v1 = vmov 0   ;;  %s1241_s24 = smov (!%p282_p3, %s961_s24), 1  ;;  %v1020_v22 = vld [vmem:[%s1235_s2] ss:$0 sm:$0xff]  ;;  %v1021_v23 = vld [vmem:[%s1235_s2 + $0x1] ss:$0 sm:$0xff] }
   0xe   : > { %1016 = vset.pattern.permute.xlu0 %v1057_v1  ;;  %s966_s3 = sshll.u32 %s1241_s24, 3  ;;  %s288_s27 = scalar_lea.vmem %s1234_s1, %s1241_s24  ;;  %vm356_vm0 = vcmask 64512   ;;  %v1022_v44 = vld [vmem:[%s1235_s2 + $0x2] ss:$0 sm:$0xff]  ;;  %v1023_v46 = vld [vmem:[%s1235_s2 + $0x3] ss:$0 sm:$0xff] }
   0xf   : > { %s285_s30 = scalar_lea.vmem %s1233_s0, %s966_s3  ;;  %s988_s7 = sshll.u32 %s1241_s24, 5  ;;  %v1019_v3 = vld [vmem:[%s288_s27] ss:$0 sm:$0xff]  ;;  %v1025_v48 = vld [vmem:[%s1235_s2 + $0x4] ss:$0 sm:$0xff] }
  0x10   : > { %v303_v2 = vld [vmem:[%s285_s30] sm:$0xff]  ;;  %s293_s10 = scalar_lea.vmem %s1237_s4, %s988_s7  ;;  %s298_s13 = scalar_lea.vmem %s1238_s5, %s988_s7 }
  0x11   : > { %307 = vperm.xlu0 %1016, %v303_v2   ;;  %v974_v4 = vld [vmem:[%s293_s10 + $0x10] sm:$0xff]  ;;  %v972_v5 = vld [vmem:[%s293_s10 + $0x8] sm:$0xff]  ;;  %v321_v7 = vld [vmem:[%s293_s10] sm:$0xff]  ;;  %s302_s18 = scalar_lea.vmem %s1239_s6, %s966_s3 }
  0x12   : > { %v588_v8 = vld [vmem:[%s298_s13] sm:$0xff]  ;;  %v976_v9 = vld [vmem:[%s293_s10 + $0x18] sm:$0xff]  ;;  %v979_v11 = vld [vmem:[%s298_s13 + $0x8] sm:$0xff] }
  0x13   : > { %v981_v12 = vld [vmem:[%s298_s13 + $0x10] sm:$0xff]  ;;  %v983_v13 = vld [vmem:[%s298_s13 + $0x18] sm:$0xff]  ;;  %v1024_v47 = vld [vmem:[#allocation2] ss:$0 sm:$0xff] }
  0x14   : > { %v1026_v49 = vld [vmem:[%s1235_s2 + $0x5] ss:$0 sm:$0xff]  ;;  %v1027_v50 = vld [vmem:[%s1235_s2 + $0x6] ss:$0 sm:$0xff]  ;;  %v1028_v51 = vld [vmem:[%s1235_s2 + $0x7] ss:$0 sm:$0xff] }
  0x83   : > { %v308_v6 = vpop.permute.xlu0 %307 }
  0x84   : > { %v313_v10 = vmul.f32 %v1019_v3, %v308_v6 }
  0x86   : > { %v456_v14 = vmul.f32 %v974_v4, %v313_v10  ;;  %v389_v15 = vmul.f32 %v972_v5, %v313_v10  ;;  %v322_v16 = vmul.f32 %v321_v7, %v313_v10  ;;  %v589_v17 = vmul.f32 %v588_v8, %v313_v10 }
  0x87   : > { %v523_v18 = vmul.f32 %v976_v9, %v313_v10  ;;  %v656_v19 = vmul.f32 %v979_v11, %v313_v10  ;;  %v723_v20 = vmul.f32 %v981_v12, %v313_v10  ;;  %v790_v21 = vmul.f32 %v983_v13, %v313_v10 }
  0x88   : > { %457 = vxpose.xlu0.b32.start.end [1/1] (short) (narrow) %v456_v14, 8  ;;  %390 = vxpose.xlu2.b32.start.end [1/1] (short) (narrow) %v389_v15, 8 }
  0x89   : > { %323 = vxpose.xlu1.b32.start.end [1/1] (short) (narrow) %v322_v16, 8 }
  0x90   : > { %590 = vxpose.xlu2.b32.start.end [1/1] (short) (narrow) %v589_v17, 8 }
  0x91   : > { %524 = vxpose.xlu1.b32.start.end [1/1] (short) (narrow) %v523_v18, 8 }
  0x98   : > { %657 = vxpose.xlu2.b32.start.end [1/1] (short) (narrow) %v656_v19, 8 }
  0xa0   : > { %724 = vxpose.xlu2.b32.start.end [1/1] (short) (narrow) %v723_v20, 8 }
  0xa8   : > { %791 = vxpose.xlu2.b32.start.end [1/1] (short) (narrow) %v790_v21, 8 }
  0xe4   : > { %1017 = vset.pattern.permute.xlu1 %v1057_v1 }
 0x10a   : > { %1018 = vset.pattern.permute.xlu2 %v1057_v1 }
 0x111   : > { %382 = vperm.xlu2 %1018, %v1020_v22  }
 0x119   : > { %449 = vperm.xlu2 %1018, %v1021_v23  }
 0x121   : > { %v406_v24 = vpop.trf.xlu2 }
 0x122   : > { %v1129_v25 = vadd.f32 %v406_v24, %v389_v15 }
 0x124   : > { %v423_v26 = vsel %vm356_vm0, %v1129_v25, 0.0 }
 0x125   : > { %424 = vadd.xlane.f32.xlu0 %v423_v26  ;;  %v426_v55 = vrot.slane %v423_v26, 4 }
 0x127   : > { %v427_v56 = vadd.f32 %v426_v55, %v423_v26 }
 0x129   : > { %v606_v30 = vpop.trf.xlu2  ;;  %v428_v57 = vrot.slane %v427_v56, 2 }
 0x12a   : > { %v1141_v34 = vadd.f32 %v606_v30, %v589_v17 }
 0x12b   : > { %v429_v59 = vadd.f32 %v428_v57, %v427_v56 }
 0x12c   : > { %v473_v27 = vpop.trf.xlu0  ;;  %v623_v35 = vsel %vm356_vm0, %v1141_v34, 0.0 }
 0x12d   : > { %v1133_v28 = vadd.f32 %v473_v27, %v456_v14  ;;  %v339_v29 = vpop.trf.xlu1  ;;  %v430_v63 = vrot.slane %v429_v59, 1  ;;  %v626_v1 = vrot.slane %v623_v35, 4 }
 0x12e   : > { %v1135_v31 = vadd.f32 %v339_v29, %v322_v16 }
 0x12f   : > { %v490_v32 = vsel %vm356_vm0, %v1133_v28, 0.0  ;;  %v431_v3 = vadd.f32 %v430_v63, %v429_v59  ;;  %v627_v7 = vadd.f32 %v626_v1, %v623_v35 }
 0x130   : > { %491 = vadd.xlane.f32.xlu0 %v490_v32  ;;  %v357_v33 = vsel %vm356_vm0, %v1135_v31, 0.0  ;;  %v493_v58 = vrot.slane %v490_v32, 4 }
 0x131   : > { %358 = vadd.xlane.f32.xlu1 %v357_v33  ;;  %v673_v36 = vpop.trf.xlu2  ;;  %v360_v60 = vrot.slane %v357_v33, 4  ;;  %v628_v10 = vrot.slane %v627_v7, 2 }
 0x132   : > { %v1145_v38 = vadd.f32 %v673_v36, %v656_v19  ;;  %v494_v61 = vadd.f32 %v493_v58, %v490_v32 }
 0x133   : > { %v361_v62 = vadd.f32 %v360_v60, %v357_v33  ;;  %v629_v16 = vadd.f32 %v628_v10, %v627_v7 }
 0x134   : > { %v690_v40 = vsel %vm356_vm0, %v1145_v38, 0.0  ;;  %v495_v0 = vrot.slane %v494_v61, 2 }
 0x135   : > { %v540_v37 = vpop.trf.xlu1  ;;  %v362_v2 = vrot.slane %v361_v62, 2  ;;  %v693_v11 = vrot.slane %v690_v40, 4 }
 0x136   : > { %v1147_v39 = vadd.f32 %v540_v37, %v523_v18  ;;  %v496_v6 = vadd.f32 %v495_v0, %v494_v61 }
 0x137   : > { %v363_v8 = vadd.f32 %v362_v2, %v361_v62  ;;  %v694_v17 = vadd.f32 %v693_v11, %v690_v40 }
 0x138   : > { %624 = vadd.xlane.f32.xlu0 %v623_v35  ;;  %v557_v41 = vsel %vm356_vm0, %v1147_v39, 0.0  ;;  %v497_v12 = vrot.slane %v496_v6, 1  ;;  %v630_v35 = vrot.slane %v629_v16, 1 }
 0x139   : > { %v740_v42 = vpop.trf.xlu2  ;;  %v560_v13 = vrot.slane %v557_v41, 4  ;;  %v364_v14 = vrot.slane %v363_v8, 1  ;;  %v695_v32 = vrot.slane %v694_v17, 2 }
 0x13a   : > { %v1153_v43 = vadd.f32 %v740_v42, %v723_v20  ;;  %v498_v18 = vadd.f32 %v497_v12, %v496_v6 }
 0x13b   : > { %v561_v19 = vadd.f32 %v560_v13, %v557_v41  ;;  %v365_v22 = vadd.f32 %v364_v14, %v363_v8 }
 0x13c   : > { %v1160_v45 = vsel %vm356_vm0, %v1153_v43, 0.0 }
 0x13d   : > { %v562_v36 = vrot.slane %v561_v19, 2 }
 0x140   : > { %691 = vadd.xlane.f32.xlu0 %v690_v40  ;;  %v760_v40 = vrot.slane %v1160_v45, 4 }
 0x141   : > { %v807_v52 = vpop.trf.xlu2 }
 0x142   : > { %558 = vadd.xlane.f32.xlu2 %v557_v41  ;;  %v1178_v53 = vadd.f32 %v807_v52, %v790_v21  ;;  %v761_v52 = vadd.f32 %v760_v40, %v1160_v45 }
 0x144   : > { %v1182_v54 = vsel %vm356_vm0, %v1178_v53, 0.0  ;;  %v762_v0 = vrot.slane %v761_v52, 2 }
 0x14a   : > { %516 = vperm.xlu1 %1017, %v1022_v44   ;;  %758 = vadd.xlane.f32.xlu2 %v1160_v45 }
 0x152   : > { %583 = vperm.xlu1 %1017, %v1023_v46   ;;  %v696_v46 = vadd.f32 %v695_v32, %v694_v17 }
 0x154   : > { %318 = vperm.xlu0 %1016, %v1024_v47   ;;  %v631_v47 = vadd.f32 %v630_v35, %v629_v16  ;;  %v697_v61 = vrot.slane %v696_v46, 1 }
 0x15c   : > { %649 = vperm.xlu0 %1016, %v1025_v48  }
 0x164   : > { %716 = vperm.xlu0 %1016, %v1026_v49   ;;  %v563_v49 = vadd.f32 %v562_v36, %v561_v19 }
 0x166   : > { %v564_v2 = vrot.slane %v563_v49, 1 }
 0x168   : > { %v565_v8 = vadd.f32 %v564_v2, %v563_v49 }
 0x16b   : > { %v1187_v20 = vpop.permute.xlu2 %382 }
 0x16c   : > { %783 = vperm.xlu0 %1016, %v1027_v50  }
 0x173   : > { %v1197_v58 = vpop.permute.xlu2 %449 }
 0x174   : > { %850 = vperm.xlu0 %1016, %v1028_v51  }
 0x17c   : > { %825 = vadd.xlane.f32.xlu1 %v1182_v54 }
 0x198   : > { %v425_v4 = vpop.xlane.xlu0 %424 }
 0x199   : > { %v1185_v5 = vmul.f32 %v431_v3, %v425_v4  ;;  %v432_v9 = vrot.slane %v425_v4, 4 }
 0x19b   : > { %v433_v15 = vadd.f32 %v432_v9, %v425_v4  ;;  %v698_v4 = vadd.f32 %v697_v61, %v696_v46  ;;  %v763_v9 = vadd.f32 %v762_v0, %v761_v52 }
 0x19d   : > { %v434_v27 = vrot.slane %v433_v15, 2  ;;  %v764_v16 = vrot.slane %v763_v9, 1 }
 0x19f   : > { %v435_v41 = vadd.f32 %v434_v27, %v433_v15 }
 0x1a1   : > { %v436_v56 = vrot.slane %v435_v41, 1 }
 0x1a3   : > { %v492_v21 = vpop.xlane.xlu0 %491  ;;  %v437_v1 = vadd.f32 %v436_v56, %v435_v41 }
 0x1a4   : > { %v499_v23 = vrot.slane %v492_v21, 4  ;;  %v1189_v24 = vmul.f32 %v498_v18, %v492_v21  ;;  %v359_v26 = vpop.xlane.xlu1 %358 }
 0x1a5   : > { %v366_v29 = vrot.slane %v359_v26, 4  ;;  %v1191_v30 = vmul.f32 %v365_v22, %v359_v26  ;;  %v765_v22 = vadd.f32 %v764_v16, %v763_v9 }
 0x1a6   : > { %v500_v33 = vadd.f32 %v499_v23, %v492_v21 }
 0x1a7   : > { %v367_v37 = vadd.f32 %v366_v29, %v359_v26 }
 0x1a8   : > { %v501_v42 = vrot.slane %v500_v33, 2 }
 0x1a9   : > { %v368_v44 = vrot.slane %v367_v37, 2 }
 0x1aa   : > { %v502_v48 = vadd.f32 %v501_v42, %v500_v33 }
 0x1ab   : > { %v625_v50 = vpop.xlane.xlu0 %624  ;;  %v369_v51 = vadd.f32 %v368_v44, %v367_v37 }
 0x1ac   : > { %v1195_v55 = vmul.f32 %v631_v47, %v625_v50  ;;  %v503_v57 = vrot.slane %v502_v48, 1  ;;  %v632_v59 = vrot.slane %v625_v50, 4 }
 0x1ad   : > { %v370_v60 = vrot.slane %v369_v51, 1 }
 0x1ae   : > { %v504_v63 = vadd.f32 %v503_v57, %v502_v48  ;;  %v633_v3 = vadd.f32 %v632_v59, %v625_v50  ;;  %v827_v48 = vrot.slane %v1182_v54, 4 }
 0x1af   : > { %v371_v62 = vadd.f32 %v370_v60, %v369_v51 }
 0x1b0   : > { %v634_v11 = vrot.slane %v633_v3, 2  ;;  %v828_v50 = vadd.f32 %v827_v48, %v1182_v54 }
 0x1b1   : > { %990 = vpush %v371_v62 }
 0x1b2   : > { %992 = vpush %v437_v1  ;;  %v635_v18 = vadd.f32 %v634_v11, %v633_v3  ;;  %v829_v51 = vrot.slane %v828_v50, 2 }
 0x1b3   : > { %994 = vpush %v504_v63  ;;  %v692_v45 = vpop.xlane.xlu0 %691 }
 0x1b4   : > { %v699_v6 = vrot.slane %v692_v45, 4  ;;  %v1199_v7 = vmul.f32 %v698_v4, %v692_v45  ;;  %v636_v27 = vrot.slane %v635_v18, 1  ;;  %v830_v59 = vadd.f32 %v829_v51, %v828_v50 }
 0x1b5   : > { %v559_v10 = vpop.xlane.xlu2 %558 }
 0x1b6   : > { %v700_v12 = vadd.f32 %v699_v6, %v692_v45  ;;  %v566_v13 = vrot.slane %v559_v10, 4  ;;  %v1201_v14 = vmul.f32 %v565_v8, %v559_v10  ;;  %v637_v40 = vadd.f32 %v636_v27, %v635_v18 }
 0x1b7   : > { %v831_v63 = vrot.slane %v830_v59, 1 }
 0x1b8   : > { %v567_v15 = vadd.f32 %v566_v13, %v559_v10  ;;  %v701_v17 = vrot.slane %v700_v12, 2 }
 0x1b9   : > { %v832_v6 = vadd.f32 %v831_v63, %v830_v59 }
 0x1ba   : > { %v568_v19 = vrot.slane %v567_v15, 2  ;;  %v702_v21 = vadd.f32 %v701_v17, %v700_v12 }
 0x1bc   : > { %v569_v23 = vadd.f32 %v568_v19, %v567_v15  ;;  %v703_v35 = vrot.slane %v702_v21, 1  ;;  %v517_v49 = vpop.permute.xlu1 %516 }
 0x1bd   : > { %v759_v26 = vpop.xlane.xlu2 %758 }
 0x1be   : > { %v766_v29 = vrot.slane %v759_v26, 4  ;;  %v1203_v32 = vmul.f32 %v765_v22, %v759_v26  ;;  %v570_v33 = vrot.slane %v569_v23, 1  ;;  %v704_v42 = vadd.f32 %v703_v35, %v702_v21 }
 0x1c0   : > { %v767_v36 = vadd.f32 %v766_v29, %v759_v26  ;;  %v571_v37 = vadd.f32 %v570_v33, %v569_v23 }
 0x1c2   : > { %v768_v41 = vrot.slane %v767_v36, 2  ;;  %996 = vpush %v571_v37 }
 0x1c3   : > { %998 = vpush %v637_v40 }
 0x1c4   : > { %1000 = vpush %v704_v42  ;;  %v769_v44 = vadd.f32 %v768_v41, %v767_v36  ;;  %v584_v60 = vpop.permute.xlu1 %583 }
 0x1c6   : > { %v770_v46 = vrot.slane %v769_v44, 1  ;;  %v319_v61 = vpop.permute.xlu0 %318 }
 0x1c8   : > { %v771_v47 = vadd.f32 %v770_v46, %v769_v44 }
 0x1ca   : > { %1002 = vpush %v771_v47 }
 0x1e2   : > { %s991_s8 = spop %990 }
 0x1e3   : > { %v373_v52 = vstv %s991_s8  ;;  %s993_s9 = spop %992 }
 0x1e4   : > { %1029 = vrcp.f32 %v373_v52  ;;  %v439_v56 = vstv %s993_s9  ;;  %s995_s10 = spop %994 }
 0x1e5   : > { %1031 = vrcp.f32 %v439_v56  ;;  %v506_v57 = vstv %s995_s10 }
 0x1e6   : > { %1033 = vrcp.f32 %v506_v57 }
 0x1ea   : > { %v1030_v62 = vpop.eup %1029 }
 0x1eb   : > { %v1032_v0 = vpop.eup %1031  ;;  %v376_v1 = vmul.f32 %v1030_v62, %v1191_v30 }
 0x1ec   : > { %v1034_v2 = vpop.eup %1033  ;;  %v442_v54 = vmul.f32 %v1032_v0, %v1185_v5  ;;  %v650_v5 = vpop.permute.xlu0 %649 }
 0x1ed   : > { %v377_v3 = vsub.f32 %v1135_v31, %v376_v1  ;;  %v509_v4 = vmul.f32 %v1034_v2, %v1189_v24 }
 0x1ee   : > { %v443_v45 = vsub.f32 %v1129_v25, %v442_v54 }
 0x1ef   : > { %v385_v8 = vmul.f32 %v1187_v20, %v377_v3  ;;  %v510_v9 = vsub.f32 %v1133_v28, %v509_v4  ;;  %v826_v10 = vpop.xlane.xlu1 %825 }
 0x1f0   : > { %v452_v11 = vmul.f32 %v1197_v58, %v443_v45  ;;  %v833_v12 = vrot.slane %v826_v10, 4  ;;  %v841_v13 = vmul.f32 %v832_v6, %v826_v10 }
 0x1f1   : > { %v386_v30 = vadd.f32 %v385_v8, %v319_v61  ;;  %v519_v15 = vmul.f32 %v517_v49, %v510_v9 }
 0x1f2   : > { %v834_v16 = vadd.f32 %v833_v12, %v826_v10 }
 0x1f3   : > { %v453_v17 = vadd.f32 %v452_v11, %v386_v30  ;;  %s997_s11 = spop %996 }
 0x1f4   : > { %v835_v31 = vrot.slane %v834_v16, 2  ;;  %v573_v24 = vstv %s997_s11  ;;  %s999_s12 = spop %998  ;;  %v717_v29 = vpop.permute.xlu0 %716 }
 0x1f5   : > { %v520_v25 = vadd.f32 %v519_v15, %v453_v17  ;;  %1035 = vrcp.f32 %v573_v24  ;;  %v639_v18 = vstv %s999_s12  ;;  %s1001_s13 = spop %1000 }
 0x1f6   : > { %1037 = vrcp.f32 %v639_v18  ;;  %v706_v28 = vstv %s1001_s13  ;;  %v836_v20 = vadd.f32 %v835_v31, %v834_v16 }
 0x1f7   : > { %1039 = vrcp.f32 %v706_v28 }
 0x1f8   : > { %v837_v58 = vrot.slane %v836_v20, 1 }
 0x1fa   : > { %v838_v19 = vadd.f32 %v837_v58, %v836_v20 }
 0x1fb   : > { %v1036_v21 = vpop.eup %1035  ;;  %s1003_s14 = spop %1002 }
 0x1fc   : > { %v1038_v22 = vpop.eup %1037  ;;  %v576_v23 = vmul.f32 %v1036_v21, %v1201_v14  ;;  %v773_v26 = vstv %s1003_s14  ;;  %1004 = vpush %v838_v19  ;;  %v784_v50 = vpop.permute.xlu0 %783 }
 0x1fd   : > { %v1040_v27 = vpop.eup %1039  ;;  %v642_v33 = vmul.f32 %v1038_v22, %v1195_v55  ;;  %1041 = vrcp.f32 %v773_v26 }
 0x1fe   : > { %v577_v35 = vsub.f32 %v1147_v39, %v576_v23  ;;  %v709_v36 = vmul.f32 %v1040_v27, %v1199_v7 }
 0x1ff   : > { %v643_v37 = vsub.f32 %v1141_v34, %v642_v33 }
 0x200   : > { %v586_v40 = vmul.f32 %v584_v60, %v577_v35  ;;  %v710_v41 = vsub.f32 %v1145_v38, %v709_v36 }
 0x201   : > { %v652_v44 = vmul.f32 %v650_v5, %v643_v37 }
 0x202   : > { %v587_v42 = vadd.f32 %v586_v40, %v520_v25  ;;  %v719_v47 = vmul.f32 %v717_v29, %v710_v41 }
 0x203   : > { %v1042_v46 = vpop.eup %1041 }
 0x204   : > { %v653_v14 = vadd.f32 %v652_v44, %v587_v42  ;;  %v776_v48 = vmul.f32 %v1042_v46, %v1203_v32  ;;  %v851_v56 = vpop.permute.xlu0 %850 }
 0x206   : > { %v720_v49 = vadd.f32 %v719_v47, %v653_v14  ;;  %v777_v55 = vsub.f32 %v1153_v43, %v776_v48 }
 0x208   : > { %v786_v51 = vmul.f32 %v784_v50, %v777_v55 }
 0x20a   : > { %v787_v39 = vadd.f32 %v786_v51, %v720_v49 }
 0x22d   : > { %s1005_s15 = spop %1004 }
 0x22e   : > { %v840_v7 = vstv %s1005_s15 }
 0x22f   : > { %1043 = vrcp.f32 %v840_v7 }
 0x235   : > { %v1044_v34 = vpop.eup %1043 }
 0x236   : > { %v843_v52 = vmul.f32 %v1044_v34, %v841_v13 }
 0x238   : > { %v844_v38 = vsub.f32 %v1178_v53, %v843_v52 }
 0x23a   : > { %v853_v57 = vmul.f32 %v851_v56, %v844_v38 }
 0x23c   : > { %v854_v59 = vadd.f32 %v853_v57, %v787_v39 }
 0x23e   : > { %v985_v60 = vmul.f32 -1.442695, %v854_v59 }
 0x240   : > { %1045 = vpow2.f32 %v985_v60 }
 0x246   : > { %v1046_v32 = vpop.eup %1045 }
 0x247   : > { %v858_v61 = vadd.f32 1.0, %v1046_v32 }
 0x249   : > { %1047 = vrcp.f32 %v858_v61  ;;  %v870_v0 = vand.u32 2147483648, %v858_v61  ;;  %v868_v2 = vand.u32 2147483647, %v858_v61  ;;  %vm864_vm2 = vweird.f32 %v858_v61 }
 0x24b   : > { %v871_v53 = vor.u32 1.1754944e-38, %v870_v0  ;;  %vm869_vm4 = vcmp.eq.f32.partialorder %v868_v2, 8.507059e+37 }
 0x24f   : > { %v1048_v43 = vpop.eup %1047 }
 0x250   : > { %v860_v62 = vmul.f32 %v1048_v43, %v858_v61  ;;  %vm865_vm1 = vweird.f32 %v1048_v43 }
 0x251   : > { %vm866_vm3 = vmor %vm864_vm2, %vm865_vm1 }
 0x252   : > { %v861_v63 = vsub.f32 1.0, %v860_v62 }
 0x254   : > { %v862_v1 = vmul.f32 %v1048_v43, %v861_v63 }
 0x256   : > { %v863_v54 = vadd.f32 %v1048_v43, %v862_v1 }
 0x258   : > { %v867_v3 = vsel %vm866_vm3, %v1048_v43, %v863_v54 }
 0x259   : > { %v872_v4 = vsel %vm869_vm4, %v871_v53, %v867_v3 }
 0x25a   : > { %874 = vst.msk [vmem:[%s302_s18] sm:$0xff] %vm356_vm0, %v872_v4 }
 0x25b PF: > { %s18_s23 = sadd.s32 1, %s1055_s23  }
 0x25c   : > { %p15_p4 = scmp.ge.s32.totalorder %s18_s23, 4  }
 0x25e   :  { %17 = sbr.rel (!%p15_p4) target bundleno = 3 (0x3), region = 96 }

// kernel: _esm2_forward.6
= control target key start
LH: loop header
LB: loop body
LE: loop exit
PB: predicated region body
PF: predicated region fallthrough
CT: control target
= control target key end

     0   :  { %s750_s17 = smov 0   ;;  %s844_s0 = inlined_call_operand.vmem [shape: f32[16,32], index: 0, kind: input, shape index: {}]   ;;  %s845_s1 = inlined_call_operand.vmem [shape: f32[1,32], index: 1, kind: input, shape index: {}]   ;;  %s846_s2 = inlined_call_operand.vmem [shape: f32[1,32], index: 2, kind: input, shape index: {}]   ;;  %s847_s3 = inlined_call_operand.vmem [shape: f32[32,128], index: 3, kind: input, shape index: {}]   ;;  %s848_s4 = inlined_call_operand.vmem [shape: f32[1,128], index: 4, kind: input, shape index: {}]   ;;  %s849_s5 = inlined_call_operand.vmem [shape: f32[32,32], index: 5, kind: input, shape index: {}]   ;;  %s850_s6 = inlined_call_operand.vmem [shape: f32[1,32], index: 6, kind: input, shape index: {}]   ;;  %s851_s7 = inlined_call_operand.vmem [shape: f32[1,32], index: 7, kind: input, shape index: {}]   ;;  %s852_s8 = inlined_call_operand.vmem [shape: f32[1,32], index: 8, kind: input, shape index: {}]   ;;  %s853_s9 = inlined_call_operand.vmem [shape: f32[32,128], index: 9, kind: input, shape index: {}]   ;;  %s854_s10 = inlined_call_operand.vmem [shape: f32[1,128], index: 10, kind: input, shape index: {}]   ;;  %s855_s11 = inlined_call_operand.vmem [shape: f32[16,128], index: 11, kind: output, shape index: {}]  }
   0x1 LB: > { %s644_s18 = sadd.s32 4294967295, %s687_s17   ;;  %p648_p0 = scmp.ge.s32.totalorder %s687_s17, 1  ;;  %s687_s17 = sphi %s750_s17, %s21_s17  }
   0x2   : > { %p336_p1 = scmp.lt.s32.totalorder %s687_s17, 3 }
   0x4   : > { %p337_p2 = pnand %p648_p0, %p336_p1 }
   0x5   : > { %p374_p3 = scmp.lt.s32.totalorder (!%p337_p2), %s644_s18, 1 }
   0x6   : > { %340 = sbr.rel (%p337_p2) target bundleno = 867 (0x363), region = 64 }
   0xb   : > { %s857_s18 = smov (!%p374_p3, %s644_s18), 1  ;;  %vm385_vm0 = vcmask 261120   ;;  %v689_v2 = vmov 32.0   ;;  %v426_v14 = vld [vmem:[%s847_s3 + $0x18] sm:$0xff]  ;;  %v425_v16 = vld [vmem:[%s847_s3 + $0x10] sm:$0xff]  ;;  %v424_v18 = vld [vmem:[%s847_s3 + $0x8] sm:$0xff] }
   0xc   : > { %s649_s19 = sshll.u32 %s857_s18, 3  ;;  %673 = vrcp.f32 %v689_v2  ;;  %v457_v15 = vld [vmem:[%s849_s5 + $0x18] sm:$0xff]  ;;  %446 = vmatpush.msra.mxu0 %v426_v14  ;;  %v456_v17 = vld [vmem:[%s849_s5 + $0x10] sm:$0xff]  ;;  %v455_v19 = vld [vmem:[%s849_s5 + $0x8] sm:$0xff] }
   0xd   : > { %s377_s22 = scalar_lea.vmem %s844_s0, %s649_s19  ;;  %474 = vmatpush.msra.mxu1 %v457_v15  ;;  %v423_v20 = vld [vmem:[%s847_s3] sm:$0xff]  ;;  %s381_s12 = scalar_lea.vmem %s855_s11, %s649_s19 }
   0xe   : > { %v382_v0 = vld [vmem:[%s377_s22] sm:$0xff]  ;;  %447 = vmatpush.msra.mxu0 %v425_v16 }
   0xf   : > { %v386_v1 = vsel %vm385_vm0, %v382_v0, 0.0  ;;  %475 = vmatpush.msra.mxu1 %v456_v17  ;;  %v454_v21 = vld [vmem:[%s849_s5] sm:$0xff] }
  0x10   : > { %387 = vadd.xlane.f32.xlu0 %v386_v1  ;;  %448 = vmatpush.msra.mxu0 %v424_v18  ;;  %v666_v31 = vld [vmem:[%s845_s1] ss:$0 sm:$0xff] }
  0x11   : > { %476 = vmatpush.msra.mxu1 %v455_v19  ;;  %v667_v34 = vld [vmem:[%s846_s2] ss:$0 sm:$0xff] }
  0x12   : > { %v674_v3 = vpop.eup %673  ;;  %449 = vmatpush.msra.mxu0 %v423_v20  ;;  %v669_v37 = vld [vmem:[%s850_s6] ss:$0 sm:$0xff] }
  0x13   : > { %v390_v4 = vmul.f32 32.0, %v674_v3  ;;  %vm394_vm1 = vweird.f32 %v674_v3  ;;  %477 = vmatpush.msra.mxu1 %v454_v21 }
  0x15   : > { %v391_v5 = vsub.f32 1.0, %v390_v4 }
  0x17   : > { %v392_v6 = vmul.f32 %v674_v3, %v391_v5 }
  0x19   : > { %v393_v7 = vadd.f32 %v674_v3, %v392_v6 }
  0x1b   : > { %v767_v8 = vsel %vm394_vm1, %v674_v3, %v393_v7 }
  0x83   : > { %v388_v9 = vpop.xlane.xlu0 %387 }
  0x84   : > { %v396_v10 = vmul.f32 %v767_v8, %v388_v9 }
  0x86   : > { %v397_v11 = vsub.f32 %v382_v0, %v396_v10 }
  0x88   : > { %v398_v12 = vmul.f32 %v397_v11, %v397_v11 }
  0x8a   : > { %v399_v13 = vsel %vm385_vm0, %v398_v12, 0.0 }
  0x8b   : > { %400 = vadd.xlane.f32.xlu0 %v399_v13 }
  0xfe   : > { %v401_v22 = vpop.xlane.xlu0 %400 }
  0xff   : > { %v402_v23 = vmul.f32 %v401_v22, %v767_v8  ;;  %v561_v22 = vld [vmem:[%s853_s9 + $0x18] sm:$0xff] }
 0x100   : > { %581 = vmatpush.msra.mxu2 %v561_v22 }
 0x101   : > { %v403_v24 = vadd.f32 1e-12, %v402_v23  ;;  %v560_v23 = vld [vmem:[%s853_s9 + $0x10] sm:$0xff] }
 0x102   : > { %582 = vmatpush.msra.mxu2 %v560_v23 }
 0x103   : > { %675 = vrsqrt.f32 %v403_v24  ;;  %vm410_vm3 = vweird.f32 %v403_v24 }
 0x109   : > { %v676_v25 = vpop.eup %675 }
 0x10a   : > { %v405_v26 = vmul.f32 %v676_v25, %v403_v24  ;;  %vm411_vm2 = vweird.f32 %v676_v25  ;;  %v559_v24 = vld [vmem:[%s853_s9 + $0x8] sm:$0xff] }
 0x10b   : > { %vm412_vm4 = vmor %vm410_vm3, %vm411_vm2  ;;  %583 = vmatpush.msra.mxu2 %v559_v24 }
 0x10c   : > { %v406_v27 = vmul.f32 %v676_v25, %v405_v26 }
 0x10e   : > { %v407_v28 = vmul.f32 0.5, %v406_v27 }
 0x110   : > { %v408_v29 = vsub.f32 1.5, %v407_v28 }
 0x112   : > { %v409_v30 = vmul.f32 %v676_v25, %v408_v29 }
 0x114   : > { %v413_v32 = vsel %vm412_vm4, %v676_v25, %v409_v30  ;;  %v558_v25 = vld [vmem:[%s853_s9] sm:$0xff] }
 0x115   : > { %v414_v33 = vmul.f32 %v413_v32, %v397_v11  ;;  %584 = vmatpush.msra.mxu2 %v558_v25 }
 0x117   : > { %v418_v35 = vmul.f32 %v666_v31, %v414_v33 }
 0x119   : > { %v422_v36 = vadd.f32 %v667_v34, %v418_v35  ;;  %v670_v35 = vld [vmem:[%s851_s7] ss:$0 sm:$0xff] }
 0x11b   : > { %651 = vmatmul.msk.f32.vlgmr.msra.gmra.mxu0 %vm385_vm0, %v422_v36  ;;  %652 = vmatmul.msk.f32.vlgmr.msra.gmra.mxu1 %vm385_vm0, %v422_v36 }
 0x198   : > { %v479_v38 = vpop.f32.mrf.mxu1 }
 0x199   : > { %v480_v39 = vadd.f32 %v669_v37, %v479_v38 }
 0x19b   : > { %v483_v40 = vmul.f32 0.70710677, %v480_v39  ;;  %v482_v13 = vmul.f32 0.5, %v480_v39 }
 0x19d   : > { %v484_v41 = vmul.f32 %v483_v40, %v483_v40 }
 0x19f   : > { %v485_v42 = vmin.f32 %v484_v41, 16.0  ;;  %v672_v41 = vld [vmem:[%s854_s10] ss:$0 sm:$0xff] }
 0x1a1   : > { %v486_v43 = vmul.f32 2.1237322e-06, %v485_v42  ;;  %v497_v44 = vmul.f32 3.8918573e-05, %v485_v42 }
 0x1a3   : > { %v487_v45 = vadd.f32 0.00028619796, %v486_v43  ;;  %v498_v46 = vadd.f32 0.001143296, %v497_v44 }
 0x1a5   : > { %v488_v47 = vmul.f32 %v487_v45, %v485_v42  ;;  %v499_v48 = vmul.f32 %v498_v46, %v485_v42 }
 0x1a7   : > { %v500_v49 = vadd.f32 0.014752088, %v499_v48  ;;  %v489_v50 = vadd.f32 0.0036580483, %v488_v47 }
 0x1a9   : > { %v501_v51 = vmul.f32 %v500_v49, %v485_v42  ;;  %v490_v53 = vmul.f32 %v489_v50, %v485_v42 }
 0x1ab   : > { %v502_v52 = vadd.f32 0.112945676, %v501_v51  ;;  %v491_v56 = vadd.f32 0.05243302, %v490_v53 }
 0x1ad   : > { %v503_v54 = vmul.f32 %v502_v52, %v485_v42  ;;  %v492_v59 = vmul.f32 %v491_v56, %v485_v42 }
 0x1af   : > { %v504_v55 = vadd.f32 0.4994258, %v503_v54  ;;  %v493_v60 = vadd.f32 0.18741608, %v492_v59 }
 0x1b1   : > { %v505_v57 = vmul.f32 %v504_v55, %v485_v42  ;;  %v494_v62 = vmul.f32 %v493_v60, %v485_v42  ;;  %v451_v42 = vpop.f32.mrf.mxu0 }
 0x1b3   : > { %v506_v58 = vadd.f32 1.0, %v505_v57  ;;  %v495_v2 = vadd.f32 1.1283791, %v494_v62 }
 0x1b5   : > { %677 = vrcp.f32 %v506_v58  ;;  %v518_v1 = vand.u32 2147483648, %v506_v58  ;;  %v516_v4 = vand.u32 2147483647, %v506_v58  ;;  %vm512_vm6 = vweird.f32 %v506_v58 }
 0x1b6   : > { %v496_v7 = vmul.f32 %v495_v2, %v483_v40  ;;  %v668_v40 = vld [vmem:[%s848_s4] ss:$0 sm:$0xff] }
 0x1b7   : > { %v519_v6 = vor.u32 1.1754944e-38, %v518_v1  ;;  %vm517_vm8 = vcmp.eq.f32.partialorder %v516_v4, 8.507059e+37  ;;  %v452_v44 = vadd.f32 %v668_v40, %v451_v42 }
 0x1bb   : > { %v678_v61 = vpop.eup %677 }
 0x1bc   : > { %v508_v63 = vmul.f32 %v678_v61, %v506_v58  ;;  %vm513_vm5 = vweird.f32 %v678_v61 }
 0x1bd   : > { %vm514_vm7 = vmor %vm512_vm6, %vm513_vm5 }
 0x1be   : > { %v509_v0 = vsub.f32 1.0, %v508_v63 }
 0x1c0   : > { %v510_v3 = vmul.f32 %v678_v61, %v509_v0 }
 0x1c2   : > { %v511_v5 = vadd.f32 %v678_v61, %v510_v3 }
 0x1c4   : > { %v515_v9 = vsel %vm514_vm7, %v678_v61, %v511_v5 }
 0x1c5   : > { %v520_v10 = vsel %vm517_vm8, %v519_v6, %v515_v9 }
 0x1c6   : > { %v521_v11 = vmul.f32 %v520_v10, %v496_v7 }
 0x1c8   : > { %v653_v12 = vclamps-f32 %v521_v11, 1.0 }
 0x1ca   : > { %v524_v14 = vadd.f32 1.0, %v653_v12 }
 0x1cc   : > { %v525_v15 = vmul.f32 %v524_v14, %v482_v13 }
 0x1ce   : > { %v528_v16 = vsel %vm385_vm0, %v525_v15, 0.0 }
 0x1cf   : > { %529 = vadd.xlane.f32.xlu1 %v528_v16 }
 0x242   : > { %v530_v17 = vpop.xlane.xlu1 %529 }
 0x243   : > { %v531_v18 = vmul.f32 %v530_v17, %v767_v8 }
 0x245   : > { %v532_v19 = vsub.f32 %v525_v15, %v531_v18 }
 0x247   : > { %v533_v20 = vmul.f32 %v532_v19, %v532_v19 }
 0x249   : > { %v534_v21 = vsel %vm385_vm0, %v533_v20, 0.0 }
 0x24a   : > { %535 = vadd.xlane.f32.xlu1 %v534_v21 }
 0x2bd   : > { %v536_v26 = vpop.xlane.xlu1 %535 }
 0x2be   : > { %v537_v27 = vmul.f32 %v536_v26, %v767_v8  ;;  %v671_v8 = vld [vmem:[%s852_s8] ss:$0 sm:$0xff] }
 0x2c0   : > { %v538_v28 = vadd.f32 1e-12, %v537_v27 }
 0x2c2   : > { %679 = vrsqrt.f32 %v538_v28  ;;  %vm545_vm10 = vweird.f32 %v538_v28 }
 0x2c8   : > { %v680_v29 = vpop.eup %679 }
 0x2c9   : > { %v540_v30 = vmul.f32 %v680_v29, %v538_v28  ;;  %vm546_vm9 = vweird.f32 %v680_v29 }
 0x2ca   : > { %vm547_vm11 = vmor %vm545_vm10, %vm546_vm9 }
 0x2cb   : > { %v541_v31 = vmul.f32 %v680_v29, %v540_v30 }
 0x2cd   : > { %v542_v32 = vmul.f32 0.5, %v541_v31 }
 0x2cf   : > { %v543_v33 = vsub.f32 1.5, %v542_v32 }
 0x2d1   : > { %v544_v34 = vmul.f32 %v680_v29, %v543_v33 }
 0x2d3   : > { %v548_v36 = vsel %vm547_vm11, %v680_v29, %v544_v34 }
 0x2d4   : > { %v549_v37 = vmul.f32 %v548_v36, %v532_v19 }
 0x2d6   : > { %v553_v38 = vmul.f32 %v670_v35, %v549_v37 }
 0x2d8   : > { %v557_v39 = vadd.f32 %v671_v8, %v553_v38 }
 0x2da   : > { %654 = vmatmul.msk.f32.vlgmr.msra.gmra.mxu2 %vm385_vm0, %v557_v39 }
 0x35d   : > { %v586_v43 = vpop.f32.mrf.mxu2 }
 0x35e   : > { %v587_v45 = vadd.f32 %v672_v41, %v586_v43 }
 0x360   : > { %v589_v46 = vadd.f32 %v587_v45, %v452_v44 }
 0x362   : > { %590 = vst [vmem:[%s381_s12] sm:$0xff] %v589_v46 }
 0x363 PF: > { %s21_s17 = sadd.s32 1, %s687_s17  }
 0x364   : > { %p18_p4 = scmp.ge.s32.totalorder %s21_s17, 4  }
 0x366   :  { %20 = sbr.rel (!%p18_p4) target bundleno = 1 (0x1), region = 94 }

// kernel: _esm2_forward.4
= control target key start
LH: loop header
LB: loop body
LE: loop exit
PB: predicated region body
PF: predicated region fallthrough
CT: control target
= control target key end

     0   :  { %s1792_s24 = smov 0   ;;  %s2138_s0 = inlined_call_operand.vmem [shape: f32[2,8,32], index: 0, kind: input, shape index: {}]   ;;  %s2139_s1 = inlined_call_operand.vmem [shape: f32[2,1,8], index: 1, kind: input, shape index: {}]   ;;  %s2140_s2 = inlined_call_operand.vmem [shape: f32[8,4], index: 2, kind: input, shape index: {}]   ;;  %s2141_s3 = inlined_call_operand.vmem [shape: f32[8,4], index: 3, kind: input, shape index: {}]   ;;  %s2142_s4 = inlined_call_operand.vmem [shape: f32[1,32], index: 4, kind: input, shape index: {}]   ;;  %s2143_s5 = inlined_call_operand.vmem [shape: f32[1,32], index: 5, kind: input, shape index: {}]   ;;  %s2144_s6 = inlined_call_operand.vmem [shape: f32[32,96], index: 6, kind: input, shape index: {}]   ;;  %s2145_s7 = inlined_call_operand.vmem [shape: f32[1,96], index: 7, kind: input, shape index: {}]   ;;  %s2146_s8 = inlined_call_operand.vmem [shape: f32[32,32], index: 8, kind: input, shape index: {}]   ;;  %s2147_s9 = inlined_call_operand.vmem [shape: f32[1,32], index: 9, kind: input, shape index: {}]   ;;  %s2148_s10 = inlined_call_operand.vmem [shape: f32[1,32], index: 10, kind: input, shape index: {}]   ;;  %s2149_s11 = inlined_call_operand.vmem [shape: f32[1,32], index: 11, kind: input, shape index: {}]   ;;  %s2150_s12 = inlined_call_operand.vmem [shape: f32[32,128], index: 12, kind: input, shape index: {}]   ;;  %s2151_s13 = inlined_call_operand.vmem [shape: f32[1,128], index: 13, kind: input, shape index: {}]   ;;  %s2152_s14 = inlined_call_operand.vmem [shape: f32[128,32], index: 14, kind: input, shape index: {}]   ;;  %s2153_s15 = inlined_call_operand.vmem [shape: f32[1,32], index: 15, kind: input, shape index: {}]   ;;  %s2154_s16 = inlined_call_operand.vmem [shape: f32[2,8,32], index: 16, kind: output, shape index: {0}]   ;;  %s2155_s17 = inlined_call_operand.vmem [shape: f32[2,4,8,8], index: 17, kind: output, shape index: {1}]  }
   0x1   :  { %2160 = sst [smem:[#allocation3_spill]] %s2138_s0 }
   0x2   :  { %2161 = sst [smem:[#allocation4_spill]] %s2139_s1 }
   0x3 LB: > { %s1550_s25 = sadd.s32 4294967295, %s1668_s24   ;;  %p1554_p0 = scmp.ge.s32.totalorder %s1668_s24, 1  ;;  %s1668_s24 = sphi %s1792_s24, %s28_s24  }
   0x4   : > { %p497_p1 = scmp.lt.s32.totalorder %s1668_s24, 3 }
   0x6   : > { %p498_p2 = pnand %p1554_p0, %p497_p1 }
   0x7   : > { %p555_p3 = scmp.lt.s32.totalorder (!%p498_p2), %s1550_s25, 1  ;;  %s2162_s29 = sld [smem:[#allocation3_spill]] (!%p498_p2) }
   0x8   : > { %501 = sbr.rel (%p498_p2) target bundleno = 2423 (0x977), region = 84  ;;  %s1671_s19 = smov (!%p498_p2), 36  }
   0x9   : > { %s1672_s1 = smov (!%p498_p2), 44   ;;  %s1673_s20 = smov (!%p498_p2), 40  }
   0xa   : > { %s1676_s23 = smov (!%p498_p2), 12   ;;  %s1677_s27 = smov (!%p498_p2), 4  }
   0xb   : > { %s1678_s18 = smov (!%p498_p2), 124   ;;  %s1679_s21 = smov (!%p498_p2), 92  }
   0xc   : > { %s1680_s22 = smov (!%p498_p2), 96   ;;  %s1683_s28 = smov (!%p498_p2), 116  }
   0xd   : > { %s2168_s25 = smov (!%p555_p3, %s1550_s25), 1  ;;  %vm574_vm0 = vcmask 261120   ;;  %v1670_v2 = vmov 32.0   ;;  %v1820_v14 = vld [vmem:[%s2141_s3] sm:$0xff]  ;;  %v615_v15 = vld [vmem:[%s2144_s6 + $0x18] sm:$0xff]  ;;  %v614_v16 = vld [vmem:[%s2144_s6 + $0x10] sm:$0xff] }
   0xe   : > { %s2157_s26 = sshll.u32 %s2168_s25, 3  ;;  %1638 = vrcp.f32 %v1670_v2  ;;  %675 = vrot.lane.b32.xlu1 %v1820_v14, %s1671_s19  ;;  %841 = vrot.lane.b32.xlu2 %v1820_v14, %s1673_s20  ;;  %v613_v17 = vld [vmem:[%s2144_s6 + $0x8] sm:$0xff]  ;;  %v612_v18 = vld [vmem:[%s2144_s6] sm:$0xff]  ;;  %s1687_s30 = smov 24   ;;  %vm703_vm5 = vcmask 31744   ;;  %vm757_vm6 = vcmask 64512  }
   0xf   : > { %s558_s0 = scalar_lea.vmem %s2162_s29, %s2157_s26  ;;  %635 = vmatpush.msra.mxu3 %v615_v15  ;;  %s2159_s26 = smov 8   ;;  %v1844_v19 = vld [vmem:[%s2140_s2] sm:$0xff]  ;;  %vm954_vm7 = vcmask 130112   ;;  %vm1112_vm8 = vcmask 195712   ;;  %vm1270_vm9 = vcmask 261312  }
  0x10   : > { %v1808_v0 = vld [vmem:[%s558_s0] sm:$0xff]  ;;  %s1674_s0 = smov 32   ;;  %s1685_s29 = smov 52  }
  0x11   : > { %v575_v1 = vsel %vm574_vm0, %v1808_v0, 0.0  ;;  %636 = vmatpush.msra.mxu3 %v614_v16  ;;  %v1629_v29 = vld [vmem:[%s2142_s4] ss:$0 sm:$0xff] }
  0x12   : > { %576 = vadd.xlane.f32.xlu0 %v575_v1  ;;  %v1630_v32 = vld [vmem:[%s2143_s5] ss:$0 sm:$0xff] }
  0x13   : > { %637 = vmatpush.msra.mxu3 %v613_v17  ;;  %v1631_v36 = vld [vmem:[%s2145_s7] ss:$0 sm:$0xff] }
  0x14   : > { %v1639_v3 = vpop.eup %1638 }
  0x15   : > { %v579_v4 = vmul.f32 32.0, %v1639_v3  ;;  %vm583_vm1 = vweird.f32 %v1639_v3  ;;  %638 = vmatpush.msra.mxu3 %v612_v18 }
  0x16   : > { %688 = vrot.lane.b32.xlu1 %v1820_v14, %s1674_s0  ;;  %815 = vrot.lane.b32.xlu2 %v1820_v14, %s2159_s26 }
  0x17   : > { %v580_v5 = vsub.f32 1.0, %v579_v4 }
  0x19   : > { %v581_v6 = vmul.f32 %v1639_v3, %v580_v5 }
  0x1b   : > { %v582_v7 = vadd.f32 %v1639_v3, %v581_v6 }
  0x1d   : > { %v1812_v8 = vsel %vm583_vm1, %v1639_v3, %v582_v7 }
  0x1e   : > { %802 = vrot.lane.b32.xlu1 %v1820_v14, %s1676_s23  ;;  %671 = vrot.lane.b32.xlu2 %v1844_v19, %s1674_s0  ;;  %s1686_s0 = smov 56  }
  0x26   : > { %684 = vrot.lane.b32.xlu1 %v1844_v19, %s1671_s19  ;;  %651 = vrot.lane.b32.xlu2 %v1820_v14, %s1677_s27  ;;  %s1684_s19 = smov 88  }
  0x2e   : > { %661 = vrot.lane.b32.xlu1 %v1844_v19, %s1677_s27 }
  0x68   : > { %v842_v39 = vpop.permute.xlu2 %841 }
  0x70   : > { %v816_v45 = vpop.permute.xlu2 %815 }
  0x78   : > { %v672_v51 = vpop.permute.xlu2 %671 }
  0x80   : > { %v676_v35 = vpop.permute.xlu1 %675  ;;  %v652_v52 = vpop.permute.xlu2 %651 }
  0x85   : > { %v577_v9 = vpop.xlane.xlu0 %576 }
  0x86   : > { %v585_v10 = vmul.f32 %v1812_v8, %v577_v9 }
  0x88   : > { %v586_v11 = vsub.f32 %v1808_v0, %v585_v10  ;;  %v689_v40 = vpop.permute.xlu1 %688 }
  0x8a   : > { %v587_v12 = vmul.f32 %v586_v11, %v586_v11 }
  0x8c   : > { %v588_v13 = vsel %vm574_vm0, %v587_v12, 0.0 }
  0x8d   : > { %589 = vadd.xlane.f32.xlu0 %v588_v13 }
  0x90   : > { %v803_v46 = vpop.permute.xlu1 %802 }
  0x98   : > { %v685_v54 = vpop.permute.xlu1 %684 }
  0xa0   : > { %v662_v60 = vpop.permute.xlu1 %661 }
  0xa1   : > { %828 = vrot.lane.b32.xlu0 %v1820_v14, %s1672_s1 }
  0xa9   : > { %837 = vrot.lane.b32.xlu0 %v1844_v19, %s1672_s1  ;;  %s1682_s1 = smov 120  }
  0xb1   : > { %824 = vrot.lane.b32.xlu0 %v1844_v19, %s1673_s20 }
 0x100   : > { %v590_v20 = vpop.xlane.xlu0 %589 }
 0x101   : > { %v591_v21 = vmul.f32 %v590_v20, %v1812_v8 }
 0x103   : > { %v592_v22 = vadd.f32 1e-12, %v591_v21 }
 0x105   : > { %1640 = vrsqrt.f32 %v592_v22  ;;  %vm599_vm3 = vweird.f32 %v592_v22 }
 0x10b   : > { %v1641_v23 = vpop.eup %1640 }
 0x10c   : > { %v594_v24 = vmul.f32 %v1641_v23, %v592_v22  ;;  %vm600_vm2 = vweird.f32 %v1641_v23 }
 0x10d   : > { %vm601_vm4 = vmor %vm599_vm3, %vm600_vm2 }
 0x10e   : > { %v595_v25 = vmul.f32 %v1641_v23, %v594_v24 }
 0x110   : > { %v596_v26 = vmul.f32 0.5, %v595_v25 }
 0x112   : > { %v597_v27 = vsub.f32 1.5, %v596_v26 }
 0x113   : > { %v829_v48 = vpop.permute.xlu0 %828 }
 0x114   : > { %v598_v28 = vmul.f32 %v1641_v23, %v597_v27 }
 0x116   : > { %v602_v30 = vsel %vm601_vm4, %v1641_v23, %v598_v28 }
 0x117   : > { %v603_v31 = vmul.f32 %v602_v30, %v586_v11 }
 0x119   : > { %v607_v33 = vmul.f32 %v1629_v29, %v603_v31 }
 0x11b   : > { %v611_v34 = vadd.f32 %v1630_v32, %v607_v33  ;;  %v838_v58 = vpop.permute.xlu0 %837 }
 0x11d   : > { %1559 = vmatmul.msk.f32.vlgmr.msra.gmra.mxu3 %vm574_vm0, %v611_v34 }
 0x123   : > { %v825_v61 = vpop.permute.xlu0 %824 }
 0x1a0   : > { %v640_v37 = vpop.f32.mrf.mxu3 }
 0x1a1   : > { %v1868_v38 = vadd.f32 %v1631_v36, %v640_v37 }
 0x1a3   : > { %v678_v41 = vmul.f32 %v676_v35, %v1868_v38  ;;  %v691_v42 = vmul.f32 %v689_v40, %v1868_v38  ;;  %v665_v43 = vmul.f32 %v1820_v14, %v1868_v38  ;;  %v844_v44 = vmul.f32 %v842_v39, %v1868_v38 }
 0x1a4   : > { %v805_v47 = vmul.f32 %v803_v46, %v1868_v38  ;;  %v818_v49 = vmul.f32 %v816_v45, %v1868_v38  ;;  %v831_v50 = vmul.f32 %v829_v48, %v1868_v38  ;;  %v654_v53 = vmul.f32 %v652_v52, %v1868_v38 }
 0x1a5   : > { %693 = vrot.lane.b32.xlu2 %v691_v42, %s1677_s27  ;;  %680 = vrot.lane.b32.xlu1 %v678_v41, %s1678_s18  ;;  %v687_v55 = vmul.f32 %v685_v54, %v1868_v38  ;;  %v674_v63 = vmul.f32 %v672_v51, %v1868_v38  ;;  %v664_v2 = vmul.f32 %v662_v60, %v1868_v38 }
 0x1a6   : > { %667 = vrot.lane.b32.xlu0 %v665_v43, %s1677_s27  ;;  %v840_v7 = vmul.f32 %v838_v58, %v1868_v38  ;;  %v827_v17 = vmul.f32 %v825_v61, %v1868_v38 }
 0x1ad   : > { %846 = vrot.lane.b32.xlu2 %v844_v44, %s1677_s27  ;;  %811 = vrot.lane.b32.xlu1 %v1844_v19, %s1676_s23  ;;  %s1681_s23 = smov 84  }
 0x1ae   : > { %807 = vrot.lane.b32.xlu0 %v805_v47, %s1678_s18 }
 0x1b5   : > { %820 = vrot.lane.b32.xlu2 %v818_v49, %s1677_s27  ;;  %833 = vrot.lane.b32.xlu1 %v831_v50, %s1678_s18 }
 0x1bd   : > { %798 = vrot.lane.b32.xlu2 %v1844_v19, %s2159_s26 }
 0x1c5   : > { %656 = vrot.lane.b32.xlu2 %v654_v53, %s1678_s18 }
 0x1ff   : > { %v694_v56 = vpop.permute.xlu2 %693 }
 0x200   : > { %v696_v57 = vadd.f32 %v694_v56, %v687_v55 }
 0x202   : > { %701 = vrot.lane.b32.xlu0 %v696_v57, %s1679_s21  ;;  %s1688_s21 = smov 20  }
 0x207   : > { %v847_v59 = vpop.permute.xlu2 %846 }
 0x208   : > { %v849_v10 = vadd.f32 %v847_v59, %v840_v7 }
 0x20f   : > { %v821_v62 = vpop.permute.xlu2 %820 }
 0x217   : > { %v681_v1 = vpop.permute.xlu1 %680  ;;  %v799_v6 = vpop.permute.xlu2 %798 }
 0x218   : > { %v683_v3 = vsub.f32 %v674_v63, %v681_v1  ;;  %v668_v4 = vpop.permute.xlu0 %667  ;;  %v801_v11 = vmul.f32 %v799_v6, %v1868_v38 }
 0x219   : > { %v670_v5 = vadd.f32 %v668_v4, %v664_v2 }
 0x21a   : > { %729 = vrot.lane.b32.xlu1 %v683_v3, %s1680_s22  ;;  %s1689_s22 = smov 60  }
 0x21b   : > { %698 = vrot.lane.b32.xlu2 %v670_v5, %s1678_s18 }
 0x21f   : > { %v812_v9 = vpop.permute.xlu1 %811  ;;  %v657_v21 = vpop.permute.xlu2 %656 }
 0x220   : > { %v814_v12 = vmul.f32 %v812_v9, %v1868_v38  ;;  %v808_v13 = vpop.permute.xlu0 %807 }
 0x221   : > { %v810_v16 = vsub.f32 %v801_v11, %v808_v13 }
 0x222   : > { %v823_v15 = vadd.f32 %v821_v62, %v814_v12  ;;  %854 = vrot.lane.b32.xlu1 %v849_v10, %s1681_s23  ;;  %s2158_s23 = smov 48  }
 0x223   : > { %881 = vrot.lane.b32.xlu2 %v810_v16, %s1682_s1  ;;  %s1691_s1 = smov 28  }
 0x224   : > { %851 = vrot.lane.b32.xlu0 %v823_v15, %s1683_s28  ;;  %s1692_s28 = smov 16  }
 0x227   : > { %v834_v18 = vpop.permute.xlu1 %833 }
 0x228   : > { %v836_v20 = vsub.f32 %v827_v17, %v834_v18 }
 0x22a   : > { %884 = vrot.lane.b32.xlu1 %v836_v20, %s1684_s19  ;;  %s1588_s19 = sshll.u32 %s2168_s25, 5 }
 0x22b   : > { %986 = vrot.lane.b32.xlu2 %v1820_v14, %s1685_s29 }
 0x22c   : > { %1157 = vrot.lane.b32.xlu0 %v1820_v14, %s1686_s0 }
 0x232   : > { %1131 = vrot.lane.b32.xlu1 %v1820_v14, %s1687_s30 }
 0x233   : > { %960 = vrot.lane.b32.xlu2 %v1820_v14, %s1688_s21 }
 0x234   : > { %1144 = vrot.lane.b32.xlu0 %v1820_v14, %s1689_s22 }
 0x23a   : > { %982 = vrot.lane.b32.xlu1 %v1844_v19, %s2158_s23 }
 0x23b   : > { %999 = vrot.lane.b32.xlu2 %v1820_v14, %s2158_s23  ;;  %s2163_s23 = sld [smem:[#allocation4_spill]] }
 0x23c   : > { %1118 = vrot.lane.b32.xlu0 %v1820_v14, %s1691_s1 }
 0x241   : > { %s561_s26 = scalar_lea.vmem %s2163_s23, %s2168_s25 }
 0x242   : > { %v1965_v49 = vld [vmem:[%s561_s26] ss:$0 sm:$0xff]  ;;  %s1694_s26 = smov 68  }
 0x244   : > { %973 = vrot.lane.b32.xlu0 %v1820_v14, %s1692_s28  ;;  %v649_v14 = vmul.f32 %v1844_v19, %v1868_v38 }
 0x246   : > { %v659_v28 = vsub.f32 %v649_v14, %v657_v21 }
 0x24c   : > { %1153 = vrot.lane.b32.xlu0 %v1844_v19, %s1689_s22  ;;  %s1699_s22 = smov 108  }
 0x274   : > { %v702_v22 = vpop.permute.xlu0 %701 }
 0x275   : > { %1560 = vmatpush.xpose.msk.msra.mxu1 %vm703_vm5, %v702_v22  ;;  %v699_v23 = vpop.permute.xlu2 %698 }
 0x278   : > { %1561 = vmatmul.msk.f32.vlgmr.msra.gmra.mxu1 %vm703_vm5, %v699_v23 }
 0x27d   : > { %v882_v24 = vpop.permute.xlu2 %881 }
 0x285   : > { %v987_v25 = vpop.permute.xlu2 %986 }
 0x286   : > { %v989_v26 = vmul.f32 %v987_v25, %v1868_v38 }
 0x288   : > { %991 = vrot.lane.b32.xlu2 %v989_v26, %s1678_s18 }
 0x28c   : > { %v730_v27 = vpop.permute.xlu1 %729 }
 0x28d   : > { %1562 = vmatpush.xpose.msk.msra.mxu2 %vm703_vm5, %v730_v27  ;;  %v961_v36 = vpop.permute.xlu2 %960 }
 0x28e   : > { %v963_v40 = vmul.f32 %v961_v36, %v1868_v38 }
 0x290   : > { %1563 = vmatmul.msk.f32.vlgmr.msra.gmra.mxu2 %vm703_vm5, %v659_v28 }
 0x294   : > { %v855_v29 = vpop.permute.xlu1 %854 }
 0x295   : > { %1565 = vmatpush.xpose.msk.msrb.mxu3 %vm703_vm5, %v855_v29  ;;  %v1000_v45 = vpop.permute.xlu2 %999 }
 0x296   : > { %v852_v30 = vpop.permute.xlu0 %851  ;;  %v1002_v2 = vmul.f32 %v1000_v45, %v1868_v38 }
 0x298   : > { %1566 = vmatmul.msk.f32.vlgmr.msrb.gmra.mxu3 %vm703_vm5, %v852_v30 }
 0x29c   : > { %v885_v31 = vpop.permute.xlu1 %884 }
 0x29d   : > { %1567 = vmatpush.xpose.msk.msrb.mxu1 %vm703_vm5, %v885_v31 }
 0x29e   : > { %v1158_v32 = vpop.permute.xlu0 %1157 }
 0x29f   : > { %v1160_v33 = vmul.f32 %v1158_v32, %v1868_v38 }
 0x2a0   : > { %1568 = vmatmul.msk.f32.vlgmr.msrb.gmra.mxu1 %vm703_vm5, %v882_v24 }
 0x2a1   : > { %1162 = vrot.lane.b32.xlu0 %v1160_v33, %s1677_s27 }
 0x2a4   : > { %v1132_v37 = vpop.permute.xlu1 %1131 }
 0x2a5   : > { %v1134_v41 = vmul.f32 %v1132_v37, %v1868_v38 }
 0x2a6   : > { %v1145_v34 = vpop.permute.xlu0 %1144 }
 0x2a7   : > { %v1147_v35 = vmul.f32 %v1145_v34, %v1868_v38 }
 0x2a9   : > { %1127 = vrot.lane.b32.xlu0 %v1844_v19, %s1691_s1  ;;  %1149 = vrot.lane.b32.xlu1 %v1147_v35, %s1678_s18  ;;  %s1693_s1 = smov 64  }
 0x2ac   : > { %v983_v10 = vpop.permute.xlu1 %982 }
 0x2ad   : > { %v985_v11 = vmul.f32 %v983_v10, %v1868_v38 }
 0x2ae   : > { %v1119_v39 = vpop.permute.xlu0 %1118 }
 0x2af   : > { %v1121_v42 = vmul.f32 %v1119_v39, %v1868_v38 }
 0x2b1   : > { %1136 = vrot.lane.b32.xlu0 %v1134_v41, %s1677_s27  ;;  %965 = vrot.lane.b32.xlu1 %v963_v40, %s1678_s18 }
 0x2b2   : > { %1123 = vrot.lane.b32.xlu2 %v1121_v42, %s1678_s18  ;;  %s1701_s18 = smov 112  }
 0x2b6   : > { %v974_v43 = vpop.permute.xlu0 %973 }
 0x2b7   : > { %v976_v44 = vmul.f32 %v974_v43, %v1868_v38 }
 0x2b9   : > { %1140 = vrot.lane.b32.xlu0 %v1844_v19, %s1686_s0 }
 0x2ba   : > { %978 = vrot.lane.b32.xlu2 %v976_v44, %s1677_s27 }
 0x2be   : > { %v1154_v48 = vpop.permute.xlu0 %1153 }
 0x2bf   : > { %v1156_v4 = vmul.f32 %v1154_v48, %v1868_v38 }
 0x2c1   : > { %956 = vrot.lane.b32.xlu0 %v1844_v19, %s1692_s28 }
 0x2c2   : > { %771 = vrot.lane.b32.xlu2 %v1868_v38, %s1693_s1  ;;  %s1700_s1 = smov 72  }
 0x2c9   : > { %1114 = vrot.lane.b32.xlu0 %v1844_v19, %s1687_s30 }
 0x2ca   : > { %924 = vrot.lane.b32.xlu2 %v1868_v38, %s1686_s0  ;;  %s1696_s0 = smov 80  }
 0x2d1   : > { %995 = vrot.lane.b32.xlu0 %v1844_v19, %s1685_s29  ;;  %s1695_s29 = smov 100  }
 0x2d9   : > { %969 = vrot.lane.b32.xlu0 %v1844_v19, %s1688_s21  ;;  %s1698_s21 = smov 76  }
 0x2e2   : > { %v992_v46 = vpop.permute.xlu2 %991 }
 0x2e3   : > { %v994_v12 = vsub.f32 %v985_v11, %v992_v46 }
 0x2f5   : > { %v725_v50 = vpop.f32.mrf.mxu1 }
 0x30c   : > { %v1124_v47 = vpop.permute.xlu2 %1123 }
 0x313   : > { %v753_v51 = vpop.f32.mrf.mxu2  ;;  %v1163_v55 = vpop.permute.xlu0 %1162 }
 0x314   : > { %v754_v52 = vadd.f32 %v753_v51, %v725_v50  ;;  %v1967_v53 = vpop.permute.xlu2 %978  ;;  %v1165_v5 = vadd.f32 %v1163_v55, %v1156_v4 }
 0x316   : > { %v756_v54 = vadd.f32 %v1965_v49, %v754_v52 }
 0x318   : > { %v758_v19 = vsel %vm757_vm6, %v756_v54, -inf }
 0x319   : > { %759 = vmax.xlane.f32.xlu1 %v758_v19 }
 0x31b   : > { %v877_v57 = vpop.f32.mrf.mxu3  ;;  %v1128_v61 = vpop.permute.xlu0 %1127 }
 0x31c   : > { %v772_v56 = vpop.permute.xlu2 %771  ;;  %v1130_v6 = vmul.f32 %v1128_v61, %v1868_v38  ;;  %v1150_v17 = vpop.permute.xlu1 %1149 }
 0x31d   : > { %792 = vmatpush.msrb.mxu2 %v772_v56  ;;  %v907_v58 = vpop.f32.mrf.mxu1 }
 0x31e   : > { %v908_v59 = vadd.f32 %v907_v58, %v877_v57 }
 0x320   : > { %v910_v60 = vadd.f32 %v1965_v49, %v908_v59 }
 0x322   : > { %v911_v62 = vsel %vm757_vm6, %v910_v60, -inf }
 0x323   : > { %912 = vmax.xlane.f32.xlu2 %v911_v62  ;;  %v1137_v1 = vpop.permute.xlu0 %1136 }
 0x324   : > { %v925_v63 = vpop.permute.xlu2 %924  ;;  %v1139_v9 = vadd.f32 %v1137_v1, %v1130_v6  ;;  %v966_v18 = vpop.permute.xlu1 %965 }
 0x325   : > { %945 = vmatpush.msra.mxu2 %v925_v63 }
 0x32b   : > { %v1141_v3 = vpop.permute.xlu0 %1140 }
 0x32c   : > { %v1143_v37 = vmul.f32 %v1141_v3, %v1868_v38 }
 0x32e   : > { %v1152_v41 = vsub.f32 %v1143_v37, %v1150_v17 }
 0x332   : > { %1004 = vrot.lane.b32.xlu1 %v1002_v2, %s1677_s27  ;;  %s1697_s27 = smov 104  }
 0x333   : > { %v957_v7 = vpop.permute.xlu0 %956 }
 0x334   : > { %v959_v42 = vmul.f32 %v957_v7, %v1868_v38 }
 0x336   : > { %v968_v43 = vsub.f32 %v959_v42, %v966_v18 }
 0x33b   : > { %1170 = vrot.lane.b32.xlu2 %v1165_v5, %s1694_s26  ;;  %v1115_v13 = vpop.permute.xlu0 %1114 }
 0x33c   : > { %v1117_v15 = vmul.f32 %v1115_v13, %v1868_v38 }
 0x33e   : > { %v1126_v16 = vsub.f32 %v1117_v15, %v1124_v47 }
 0x343   : > { %1167 = vrot.lane.b32.xlu2 %v1139_v9, %s1695_s29  ;;  %v996_v27 = vpop.permute.xlu0 %995 }
 0x344   : > { %v998_v31 = vmul.f32 %v996_v27, %v1868_v38  ;;  %v1274_v27 = vld [vmem:[%s2146_s8 + $0x8] sm:$0xff] }
 0x34b   : > { %1042 = vrot.lane.b32.xlu2 %v994_v12, %s1696_s0  ;;  %v970_v34 = vpop.permute.xlu0 %969  ;;  %s1993_s0 = scalar_lea.vmem %s2155_s17, %s1588_s19 }
 0x34c   : > { %v972_v36 = vmul.f32 %v970_v34, %v1868_v38 }
 0x34e   : > { %v981_v39 = vadd.f32 %v1967_v53, %v972_v36 }
 0x353   : > { %1197 = vrot.lane.b32.xlu2 %v1126_v16, %s1697_s27  ;;  %s2165_s27 = smov 48  }
 0x38c   : > { %v760_v20 = vpop.xlane.xlu1 %759 }
 0x38d   : > { %v761_v21 = vsub.f32 %v756_v54, %v760_v20 }
 0x38f   : > { %v762_v22 = vmul.f32 1.442695, %v761_v21 }
 0x391   : > { %1642 = vpow2.f32 %v762_v22 }
 0x396   : > { %v913_v23 = vpop.xlane.xlu2 %912 }
 0x397   : > { %v1643_v24 = vpop.eup %1642  ;;  %v914_v25 = vsub.f32 %v910_v60, %v913_v23 }
 0x398   : > { %v764_v26 = vsel %vm757_vm6, %v1643_v24, 0.0 }
 0x399   : > { %v915_v14 = vmul.f32 1.442695, %v914_v25  ;;  %765 = vadd.xlane.f32.xlu1 %v764_v26  ;;  %v1276_v26 = vld [vmem:[%s2146_s8 + $0x18] sm:$0xff] }
 0x39b   : > { %1644 = vpow2.f32 %v915_v14  ;;  %v1275_v14 = vld [vmem:[%s2146_s8 + $0x10] sm:$0xff] }
 0x39e   : > { %v1171_v28 = vpop.permute.xlu2 %1170 }
 0x3a1   : > { %v1645_v29 = vpop.eup %1644 }
 0x3a2   : > { %v917_v30 = vsel %vm757_vm6, %v1645_v29, 0.0 }
 0x3a3   : > { %918 = vadd.xlane.f32.xlu0 %v917_v30 }
 0x3a4   : > { %v1005_v32 = vpop.permute.xlu1 %1004 }
 0x3a5   : > { %v1007_v33 = vadd.f32 %v1005_v32, %v998_v31  ;;  %v1633_v32 = vld [vmem:[%s2147_s9] ss:$0 sm:$0xff] }
 0x3a6   : > { %v1168_v35 = vpop.permute.xlu2 %1167 }
 0x3a7   : > { %1012 = vrot.lane.b32.xlu2 %v1007_v33, %s1698_s21 }
 0x3ae   : > { %v1043_v40 = vpop.permute.xlu2 %1042 }
 0x3af   : > { %1573 = vmatpush.xpose.msk.msra.mxu3 %vm703_vm5, %v1043_v40  ;;  %1009 = vrot.lane.b32.xlu2 %v981_v39, %s1699_s22 }
 0x3b2   : > { %1200 = vrot.lane.b32.xlu1 %v1152_v41, %s1700_s1 }
 0x3b6   : > { %v1198_v44 = vpop.permute.xlu2 %1197 }
 0x3b7   : > { %1039 = vrot.lane.b32.xlu0 %v968_v43, %s1701_s18  ;;  %v1341_v43 = vld [vmem:[%s2150_s12 + $0x18] sm:$0xff] }
 0x401   : > { %v1013_v45 = vpop.permute.xlu2 %1012 }
 0x402   : > { %1571 = vmatpush.xpose.msk.msra.mxu1 %vm703_vm5, %v1013_v45  ;;  %v1338_v45 = vld [vmem:[%s2150_s12] sm:$0xff] }
 0x409   : > { %v1010_v46 = vpop.permute.xlu2 %1009 }
 0x40a   : > { %1572 = vmatmul.msk.f32.vlgmr.msra.gmra.mxu1 %vm703_vm5, %v1010_v46 }
 0x40c   : > { %v766_v47 = vpop.xlane.xlu1 %765 }
 0x40d   : > { %1646 = vrcp.f32 %v766_v47 }
 0x413   : > { %v1647_v48 = vpop.eup %1646 }
 0x414   : > { %v768_v50 = vmul.f32 %v1647_v48, %v1643_v24 }
 0x416   : > { %769 = vst.msk [vmem:[%s1993_s0] sm:$0xff] %vm757_vm6, %v768_v50  ;;  %1564 = vmatmul.msk.f32.vlgmr.msrb.gmra.mxu2 %vm757_vm6, %v768_v50  ;;  %v919_v51 = vpop.xlane.xlu0 %918 }
 0x417   : > { %1577 = vmatpush.xpose.msk.msrb.mxu2 %vm703_vm5, %v1171_v28  ;;  %1648 = vrcp.f32 %v919_v51  ;;  %v1273_v28 = vld [vmem:[%s2146_s8] sm:$0xff] }
 0x41d   : > { %v1649_v52 = vpop.eup %1648 }
 0x41e   : > { %v921_v53 = vmul.f32 %v1649_v52, %v1645_v29 }
 0x420   : > { %1569 = vst.msk [vmem:[%s1993_s0 + $0x8] sm:$0xff] %vm757_vm6, %v921_v53  ;;  %1570 = vmatmul.msk.f32.vlgmr.msra.gmra.mxu2 %vm757_vm6, %v921_v53 }
 0x421   : > { %1361 = vmatpush.msra.mxu2 %v1341_v43 }
 0x424   : > { %v1201_v54 = vpop.permute.xlu1 %1200 }
 0x425   : > { %1579 = vmatpush.xpose.msk.msra.mxu0 %vm703_vm5, %v1201_v54 }
 0x428   : > { %1578 = vmatmul.msk.f32.vlgmr.msrb.gmra.mxu2 %vm703_vm5, %v1168_v35  ;;  %1580 = vmatmul.msk.f32.vlgmr.msra.gmra.mxu0 %vm703_vm5, %v1198_v44  ;;  %v1339_v44 = vld [vmem:[%s2150_s12 + $0x8] sm:$0xff] }
 0x429   : > { %v1040_v55 = vpop.permute.xlu0 %1039 }
 0x42a   : > { %1574 = vmatmul.msk.f32.vlgmr.msra.gmra.mxu3 %vm703_vm5, %v1040_v55 }
 0x487   : > { %v1035_v60 = vpop.f32.mrf.mxu1 }
 0x499   : > { %v794_v19 = vpop.f32.mrf.mxu2 }
 0x49a   : > { %797 = vst.msk [vmem:[#allocation2] sm:$0xff] %vm757_vm6, %v794_v19  ;;  %v1634_v19 = vld [vmem:[%s2148_s10] ss:$0 sm:$0xff] }
 0x4a3   : > { %v947_v56 = vpop.f32.mrf.mxu2 }
 0x4a5   : > { %v1223_v57 = vpop.f32.mrf.mxu0 }
 0x4ab   : > { %v1193_v58 = vpop.f32.mrf.mxu2 }
 0x4ac   : > { %v1224_v59 = vadd.f32 %v1223_v57, %v1193_v58 }
 0x4ad   : > { %v1065_v61 = vpop.f32.mrf.mxu3 }
 0x4ae   : > { %v1066_v62 = vadd.f32 %v1065_v61, %v1035_v60  ;;  %v1226_v63 = vadd.f32 %v1965_v49, %v1224_v59  ;;  %v1428_v60 = vld [vmem:[%s2152_s14 + $0x78] sm:$0xff]  ;;  %v1427_v61 = vld [vmem:[%s2152_s14 + $0x70] sm:$0xff] }
 0x4af   : > { %1433 = vmatpush.msrb.mxu0 %v1428_v60 }
 0x4b0   : > { %v1227_v1 = vsel %vm757_vm6, %v1226_v63, -inf  ;;  %v1068_v2 = vadd.f32 %v1965_v49, %v1066_v62  ;;  %v1426_v62 = vld [vmem:[%s2152_s14 + $0x68] sm:$0xff] }
 0x4b1   : > { %1228 = vmax.xlane.f32.xlu0 %v1227_v1  ;;  %1434 = vmatpush.msrb.mxu0 %v1427_v61  ;;  %v1425_v1 = vld [vmem:[%s2152_s14 + $0x60] sm:$0xff] }
 0x4b2   : > { %v1069_v3 = vsel %vm757_vm6, %v1068_v2, -inf }
 0x4b3   : > { %1070 = vmax.xlane.f32.xlu1 %v1069_v3  ;;  %1435 = vmatpush.msrb.mxu0 %v1426_v62  ;;  %v1424_v3 = vld [vmem:[%s2152_s14 + $0x58] sm:$0xff] }
 0x4b5   : > { %1436 = vmatpush.msrb.mxu0 %v1425_v1 }
 0x4b7   : > { %1437 = vmatpush.msrb.mxu0 %v1424_v3 }
 0x4cc   : > { %1240 = vrot.lane.b32.xlu1 %v1868_v38, %s1673_s20  ;;  %s2164_s20 = smov 8  }
 0x524   : > { %v1229_v4 = vpop.xlane.xlu0 %1228 }
 0x525   : > { %v1230_v5 = vsub.f32 %v1226_v63, %v1229_v4  ;;  %v1636_v63 = vld [vmem:[%s2151_s13] ss:$0 sm:$0xff] }
 0x526   : > { %v1071_v6 = vpop.xlane.xlu1 %1070 }
 0x527   : > { %v1231_v7 = vmul.f32 1.442695, %v1230_v5  ;;  %v1072_v9 = vsub.f32 %v1068_v2, %v1071_v6  ;;  %v1423_v5 = vld [vmem:[%s2152_s14 + $0x50] sm:$0xff] }
 0x528   : > { %1438 = vmatpush.msrb.mxu0 %v1423_v5 }
 0x529   : > { %1650 = vpow2.f32 %v1231_v7  ;;  %v1073_v10 = vmul.f32 1.442695, %v1072_v9  ;;  %v1422_v7 = vld [vmem:[%s2152_s14 + $0x48] sm:$0xff] }
 0x52a   : > { %1439 = vmatpush.msrb.mxu0 %v1422_v7 }
 0x52b   : > { %1652 = vpow2.f32 %v1073_v10  ;;  %v1421_v10 = vld [vmem:[%s2152_s14 + $0x40] sm:$0xff] }
 0x52c   : > { %1440 = vmatpush.msrb.mxu0 %v1421_v10 }
 0x52f   : > { %v1651_v11 = vpop.eup %1650 }
 0x530   : > { %v1233_v12 = vsel %vm757_vm6, %v1651_v11, 0.0 }
 0x531   : > { %v1653_v13 = vpop.eup %1652  ;;  %1234 = vadd.xlane.f32.xlu2 %v1233_v12  ;;  %v1420_v12 = vld [vmem:[%s2152_s14 + $0x38] sm:$0xff] }
 0x532   : > { %v1075_v49 = vsel %vm757_vm6, %v1653_v13, 0.0  ;;  %1441 = vmatpush.msrb.mxu0 %v1420_v12 }
 0x533   : > { %1076 = vadd.xlane.f32.xlu0 %v1075_v49 }
 0x53e   : > { %v1241_v15 = vpop.permute.xlu1 %1240 }
 0x53f   : > { %1261 = vmatpush.msrb.mxu3 %v1241_v15  ;;  %v1419_v15 = vld [vmem:[%s2152_s14 + $0x30] sm:$0xff] }
 0x540   : > { %1442 = vmatpush.msrb.mxu0 %v1419_v15 }
 0x547   : > { %951 = vrot.lane.b32.xlu0 %v947_v56, %s2164_s20  ;;  %s2166_s20 = sshll.u32 %s2168_s25, 3 }
 0x548   : > { %s565_s22 = scalar_lea.vmem %s2154_s16, %s2166_s20 }
 0x549   : > { %1082 = vrot.lane.b32.xlu2 %v1868_v38, %s2165_s27 }
 0x5a4   : > { %v1235_v16 = vpop.xlane.xlu2 %1234 }
 0x5a5   : > { %1654 = vrcp.f32 %v1235_v16 }
 0x5a6   : > { %v1077_v17 = vpop.xlane.xlu0 %1076 }
 0x5a7   : > { %1656 = vrcp.f32 %v1077_v17 }
 0x5ab   : > { %v1655_v18 = vpop.eup %1654 }
 0x5ac   : > { %v1237_v20 = vmul.f32 %v1655_v18, %v1651_v11  ;;  %v1083_v21 = vpop.permute.xlu2 %1082  ;;  %v1418_v18 = vld [vmem:[%s2152_s14 + $0x28] sm:$0xff] }
 0x5ad   : > { %v1657_v22 = vpop.eup %1656  ;;  %1103 = vmatpush.msrb.mxu1 %v1083_v21  ;;  %1443 = vmatpush.msrb.mxu0 %v1418_v18 }
 0x5ae   : > { %1581 = vst.msk [vmem:[%s1993_s0 + $0x18] sm:$0xff] %vm757_vm6, %v1237_v20  ;;  %v1079_v23 = vmul.f32 %v1657_v22, %v1653_v13  ;;  %1582 = vmatmul.msk.f32.vlgmr.msrb.gmra.mxu3 %vm757_vm6, %v1237_v20  ;;  %v1417_v22 = vld [vmem:[%s2152_s14 + $0x20] sm:$0xff] }
 0x5af   : > { %1292 = vmatpush.msra.mxu1 %v1276_v26  ;;  %1444 = vmatpush.msrb.mxu0 %v1417_v22 }
 0x5b0   : > { %1575 = vst.msk [vmem:[%s1993_s0 + $0x10] sm:$0xff] %vm757_vm6, %v1079_v23  ;;  %1576 = vmatmul.msk.f32.vlgmr.msrb.gmra.mxu1 %vm757_vm6, %v1079_v23  ;;  %v1416_v23 = vld [vmem:[%s2152_s14 + $0x18] sm:$0xff] }
 0x5b1   : > { %1293 = vmatpush.msra.mxu1 %v1275_v14  ;;  %1445 = vmatpush.msrb.mxu0 %v1416_v23  ;;  %v1414_v14 = vld [vmem:[%s2152_s14 + $0x8] sm:$0xff] }
 0x5b3   : > { %1294 = vmatpush.msra.mxu1 %v1274_v27 }
 0x5b5   : > { %1295 = vmatpush.msra.mxu1 %v1273_v28 }
 0x5b9   : > { %v952_v38 = vpop.permute.xlu0 %951 }
 0x5ba   : > { %955 = vst.msk [vmem:[#allocation2] sm:$0xff] %vm954_vm7, %v952_v38 }
 0x62d   : > { %v1105_v24 = vpop.f32.mrf.mxu1 }
 0x62e   : > { %1109 = vrot.lane.b32.xlu0 %v1105_v24, %s1692_s28 }
 0x631   : > { %v1263_v25 = vpop.f32.mrf.mxu3 }
 0x632   : > { %1267 = vrot.lane.b32.xlu1 %v1263_v25, %s1687_s30  ;;  %v1415_v25 = vld [vmem:[%s2152_s14 + $0x10] sm:$0xff] }
 0x633   : > { %1446 = vmatpush.msrb.mxu0 %v1415_v25 }
 0x635   : > { %1447 = vmatpush.msrb.mxu0 %v1414_v14 }
 0x6a0   : > { %v1110_v29 = vpop.permute.xlu0 %1109 }
 0x6a1   : > { %1113 = vst.msk [vmem:[#allocation2] sm:$0xff] %vm1112_vm8, %v1110_v29  ;;  %v1413_v29 = vld [vmem:[%s2152_s14] sm:$0xff] }
 0x6a2   : > { %1448 = vmatpush.msrb.mxu0 %v1413_v29 }
 0x6a4   : > { %v1268_v30 = vpop.permute.xlu1 %1267 }
 0x6a5   : > { %1271 = vst.msk [vmem:[#allocation2] sm:$0xff] %vm1270_vm9, %v1268_v30 }
 0x6ac   : > { %v1272_v31 = vld [vmem:[#allocation2] sm:$0xff] }
 0x6ad   : > { %1583 = vmatmul.msk.f32.vlgmr.msra.gmra.mxu1 %vm574_vm0, %v1272_v31 }
 0x72a   : > { %v1297_v33 = vpop.f32.mrf.mxu1 }
 0x72b   : > { %v1300_v34 = vadd.f32 %v1297_v33, %v1808_v0  ;;  %v1340_v0 = vld [vmem:[%s2150_s12 + $0x10] sm:$0xff] }
 0x72c   : > { %1362 = vmatpush.msra.mxu2 %v1340_v0 }
 0x72d   : > { %v2043_v35 = vadd.f32 %v1633_v32, %v1300_v34 }
 0x72e   : > { %1363 = vmatpush.msra.mxu2 %v1339_v44 }
 0x72f   : > { %v1308_v36 = vsel %vm574_vm0, %v2043_v35, 0.0 }
 0x730   : > { %1309 = vadd.xlane.f32.xlu2 %v1308_v36  ;;  %1364 = vmatpush.msra.mxu2 %v1338_v45 }
 0x7a3   : > { %v1310_v37 = vpop.xlane.xlu2 %1309 }
 0x7a4   : > { %v1311_v39 = vmul.f32 %v1310_v37, %v1812_v8 }
 0x7a6   : > { %v1312_v40 = vsub.f32 %v2043_v35, %v1311_v39 }
 0x7a8   : > { %v1313_v41 = vmul.f32 %v1312_v40, %v1312_v40 }
 0x7aa   : > { %v1314_v42 = vsel %vm574_vm0, %v1313_v41, 0.0 }
 0x7ab   : > { %1315 = vadd.xlane.f32.xlu0 %v1314_v42 }
 0x81e   : > { %v1316_v46 = vpop.xlane.xlu0 %1315 }
 0x81f   : > { %v1317_v47 = vmul.f32 %v1316_v46, %v1812_v8  ;;  %v1635_v8 = vld [vmem:[%s2149_s11] ss:$0 sm:$0xff] }
 0x821   : > { %v1318_v48 = vadd.f32 1e-12, %v1317_v47 }
 0x823   : > { %1658 = vrsqrt.f32 %v1318_v48  ;;  %vm1325_vm11 = vweird.f32 %v1318_v48 }
 0x829   : > { %v1659_v50 = vpop.eup %1658 }
 0x82a   : > { %v1320_v51 = vmul.f32 %v1659_v50, %v1318_v48  ;;  %vm1326_vm10 = vweird.f32 %v1659_v50 }
 0x82b   : > { %vm1327_vm12 = vmor %vm1325_vm11, %vm1326_vm10 }
 0x82c   : > { %v1321_v52 = vmul.f32 %v1659_v50, %v1320_v51 }
 0x82e   : > { %v1322_v53 = vmul.f32 0.5, %v1321_v52 }
 0x830   : > { %v1323_v54 = vsub.f32 1.5, %v1322_v53 }
 0x832   : > { %v1324_v55 = vmul.f32 %v1659_v50, %v1323_v54 }
 0x834   : > { %v1328_v56 = vsel %vm1327_vm12, %v1659_v50, %v1324_v55 }
 0x835   : > { %v1329_v57 = vmul.f32 %v1328_v56, %v1312_v40  ;;  %v1637_v56 = vld [vmem:[%s2153_s15] ss:$0 sm:$0xff] }
 0x837   : > { %v1333_v58 = vmul.f32 %v1634_v19, %v1329_v57 }
 0x839   : > { %v1337_v59 = vadd.f32 %v1635_v8, %v1333_v58 }
 0x83b   : > { %1584 = vmatmul.msk.f32.vlgmr.msra.gmra.mxu2 %vm574_vm0, %v1337_v59 }
 0x8be   : > { %v1366_v2 = vpop.f32.mrf.mxu2 }
 0x8bf   : > { %v2088_v4 = vadd.f32 %v1636_v63, %v1366_v2 }
 0x8c1   : > { %v1370_v6 = vmul.f32 0.70710677, %v2088_v4  ;;  %v1369_v54 = vmul.f32 0.5, %v2088_v4 }
 0x8c3   : > { %v1371_v9 = vmul.f32 %v1370_v6, %v1370_v6 }
 0x8c5   : > { %v1372_v11 = vmin.f32 %v1371_v9, 16.0 }
 0x8c7   : > { %v1373_v13 = vmul.f32 2.1237322e-06, %v1372_v11  ;;  %v1384_v49 = vmul.f32 3.8918573e-05, %v1372_v11 }
 0x8c9   : > { %v1374_v16 = vadd.f32 0.00028619796, %v1373_v13  ;;  %v1385_v17 = vadd.f32 0.001143296, %v1384_v49 }
 0x8cb   : > { %v1375_v20 = vmul.f32 %v1374_v16, %v1372_v11  ;;  %v1386_v21 = vmul.f32 %v1385_v17, %v1372_v11 }
 0x8cd   : > { %v1387_v38 = vadd.f32 0.014752088, %v1386_v21  ;;  %v1376_v24 = vadd.f32 0.0036580483, %v1375_v20 }
 0x8cf   : > { %v1388_v26 = vmul.f32 %v1387_v38, %v1372_v11  ;;  %v1377_v28 = vmul.f32 %v1376_v24, %v1372_v11 }
 0x8d1   : > { %v1389_v27 = vadd.f32 0.112945676, %v1388_v26  ;;  %v1378_v32 = vadd.f32 0.05243302, %v1377_v28 }
 0x8d3   : > { %v1390_v30 = vmul.f32 %v1389_v27, %v1372_v11  ;;  %v1379_v36 = vmul.f32 %v1378_v32, %v1372_v11 }
 0x8d5   : > { %v1391_v31 = vadd.f32 0.4994258, %v1390_v30  ;;  %v1380_v37 = vadd.f32 0.18741608, %v1379_v36 }
 0x8d7   : > { %v1392_v33 = vmul.f32 %v1391_v31, %v1372_v11  ;;  %v1381_v40 = vmul.f32 %v1380_v37, %v1372_v11 }
 0x8d9   : > { %v1393_v34 = vadd.f32 1.0, %v1392_v33  ;;  %v1382_v0 = vadd.f32 1.1283791, %v1381_v40 }
 0x8db   : > { %1660 = vrcp.f32 %v1393_v34  ;;  %v1405_v43 = vand.u32 2147483648, %v1393_v34  ;;  %v1403_v45 = vand.u32 2147483647, %v1393_v34  ;;  %vm1399_vm14 = vweird.f32 %v1393_v34 }
 0x8dc   : > { %v1383_v48 = vmul.f32 %v1382_v0, %v1370_v6 }
 0x8dd   : > { %v1406_v47 = vor.u32 1.1754944e-38, %v1405_v43  ;;  %vm1404_vm1 = vcmp.eq.f32.partialorder %v1403_v45, 8.507059e+37 }
 0x8e1   : > { %v1661_v39 = vpop.eup %1660 }
 0x8e2   : > { %v1395_v41 = vmul.f32 %v1661_v39, %v1393_v34  ;;  %vm1400_vm13 = vweird.f32 %v1661_v39 }
 0x8e3   : > { %vm1401_vm15 = vmor %vm1399_vm14, %vm1400_vm13 }
 0x8e4   : > { %v1396_v42 = vsub.f32 1.0, %v1395_v41 }
 0x8e6   : > { %v1397_v44 = vmul.f32 %v1661_v39, %v1396_v42 }
 0x8e8   : > { %v1398_v46 = vadd.f32 %v1661_v39, %v1397_v44 }
 0x8ea   : > { %v1402_v50 = vsel %vm1401_vm15, %v1661_v39, %v1398_v46 }
 0x8eb   : > { %v1407_v51 = vsel %vm1404_vm1, %v1406_v47, %v1402_v50 }
 0x8ec   : > { %v1408_v52 = vmul.f32 %v1407_v51, %v1383_v48 }
 0x8ee   : > { %v1585_v53 = vclamps-f32 %v1408_v52, 1.0 }
 0x8f0   : > { %v1411_v55 = vadd.f32 1.0, %v1585_v53 }
 0x8f2   : > { %v1412_v19 = vmul.f32 %v1411_v55, %v1369_v54 }
 0x8f4   : > { %1449 = vmatmul.f32.vlgmr.msrb.gmra.mxu0 %v1412_v19 }
 0x971   : > { %v1450_v57 = vpop.f32.mrf.mxu0 }
 0x972   : > { %v1451_v8 = vadd.f32 %v1637_v56, %v1450_v57 }
 0x974   : > { %v1453_v58 = vadd.f32 %v1451_v8, %v2043_v35 }
 0x976   : > { %1454 = vst.msk [vmem:[%s565_s22] sm:$0xff] %vm574_vm0, %v1453_v58 }
 0x977 PF: > { %s28_s24 = sadd.s32 1, %s1668_s24  }
 0x978   : > { %p25_p4 = scmp.ge.s32.totalorder %s28_s24, 4  }
 0x97a   :  { %27 = sbr.rel (!%p25_p4) target bundleno = 3 (0x3), region = 132 }

</bundles_post_ra>
